<compile_context>
chip_gen: v7x
topology: tpu7x:2x2x1
jax: 0.10.0
libtpu: 0.0.40
codegen_flags: <defaults>
</compile_context>

<pallas_src>
import numpy as np

import jax
import jax.numpy as jnp
from jax.experimental import pallas as pl
from jax.experimental.pallas import tpu as pltpu  # noqa: F401  (TPU backend)

LANES = 128
_BN_EPS = 1e-5


def _round_up(x, m):
    return (x + m - 1) // m * m


# ----------------------------------------------------------------------------
# Pallas kernels
# ----------------------------------------------------------------------------
def _bn_epilogue(y, g, b):
    """BatchNorm with batch statistics over axis 0 (biased variance)."""
    mean = jnp.mean(y, axis=0, keepdims=True)
    var = jnp.maximum(jnp.mean(y * y, axis=0, keepdims=True) - mean * mean, 0.0)
    return (y - mean) * jax.lax.rsqrt(var + _BN_EPS) * g + b


def _conv_bn_kernel(a_ref, w_ref, g_ref, b_ref, o_ref):
    """Fused ReLU -> (im2col'd) conv matmul -> BatchNorm."""
    a = jnp.maximum(a_ref[...], 0.0).astype(jnp.bfloat16)   # ReLU in f32 first
    y = jnp.dot(a, w_ref[...], preferred_element_type=jnp.float32)
    o_ref[...] = _bn_epilogue(y, g_ref[...], b_ref[...])


def _deconv_bn_kernel(a0_ref, a1_ref, a2_ref, a3_ref,
                      w0_ref, w1_ref, w2_ref, w3_ref,
                      g_ref, b_ref, o_ref):
    """Sub-pixel ConvTranspose (4 output parities, 2x2 taps each) + fused BN.

    Output rows are the 4 parity blocks stacked along axis 0; per-channel
    statistics over all 4*M rows equal the batch statistics of the full
    2x-upsampled output, so the BatchNorm fusion is exact.
    """
    ys = []
    for ar, wr in ((a0_ref, w0_ref), (a1_ref, w1_ref),
                   (a2_ref, w2_ref), (a3_ref, w3_ref)):
        a = jnp.maximum(ar[...], 0.0).astype(jnp.bfloat16)
        ys.append(jnp.dot(a, wr[...], preferred_element_type=jnp.float32))
    m = ys[0].shape[0]
    cnt = 4.0 * m
    s1 = sum(jnp.sum(y, axis=0, keepdims=True) for y in ys)
    s2 = sum(jnp.sum(y * y, axis=0, keepdims=True) for y in ys)
    mean = s1 / cnt
    var = jnp.maximum(s2 / cnt - mean * mean, 0.0)
    scale = jax.lax.rsqrt(var + _BN_EPS) * g_ref[...]
    shift = b_ref[...] - mean * scale
    for p, y in enumerate(ys):
        o_ref[p * m:(p + 1) * m, :] = y * scale + shift


def _middle_kernel(a2_ref, w2_ref, g2_ref, b2_ref, p_ref,
                   er1w3_ref, er1w1_ref, er2w3_ref, er2w1_ref,
                   emb_ref, embt_ref, esq_ref,
                   dr1w3_ref, dr1w1_ref, dr2w3_ref, dr2w1_ref,
                   o_ref):
    """enc2 (ReLU->conv->BN) -> 2 residual layers -> VQ -> 2 residual layers.

    3x3 convs are done without any HBM im2col: the constant 0/1 gather matrix
    P (rows grouped by tap) builds all 9 shifted copies with one MXU matmul,
    then 9 small tap matmuls accumulate the convolution.
    """
    f32, bf16 = jnp.float32, jnp.bfloat16

    # --- enc2: ReLU -> 4x4/s2 conv (patches im2col'd by the wrapper) -> BN ---
    a2 = jnp.maximum(a2_ref[...], 0.0).astype(bf16)
    y = jnp.dot(a2, w2_ref[...], preferred_element_type=f32)       # (M, C)
    x = _bn_epilogue(y, g2_ref[...], b2_ref[...])

    m, c = x.shape
    p_all = p_ref[...]                                             # (9M, M) 0/1

    def conv3x3(xin, w3):
        gath = jnp.dot(p_all, jnp.maximum(xin, 0.0),
                       preferred_element_type=f32)                 # (9M, C)
        acc = jnp.zeros((m, c), f32)
        for t in range(9):
            acc = acc + jnp.dot(gath[t * m:(t + 1) * m, :].astype(bf16),
                                w3[t * c:(t + 1) * c, :],
                                preferred_element_type=f32)
        return acc

    def residual(xin, w3_ref, w1_ref):
        h1 = conv3x3(xin, w3_ref[...])
        h2 = jnp.dot(jnp.maximum(h1, 0.0).astype(bf16), w1_ref[...],
                     preferred_element_type=f32)
        return xin + h2

    x = residual(x, er1w3_ref, er1w1_ref)
    x = residual(x, er2w3_ref, er2w1_ref)

    # --- VQ nearest-code lookup (codes padded to a lane-dense 128; padded
    # codes carry +1e30 distance so they are never selected). ||z||^2 is
    # constant over codes and can be dropped from the argmin. ---
    scores = jnp.dot(x, embt_ref[...], preferred_element_type=f32)  # (M, Kp)
    d = esq_ref[...] - 2.0 * scores
    idx = jnp.argmin(d, axis=1).astype(jnp.int32)
    onehot = (idx[:, None] ==
              jax.lax.broadcasted_iota(jnp.int32, d.shape, 1)).astype(f32)
    x = jnp.dot(onehot, emb_ref[...], preferred_element_type=f32)   # (M, C)

    x = residual(x, dr1w3_ref, dr1w1_ref)
    x = residual(x, dr2w3_ref, dr2w1_ref)
    o_ref[...] = x


# ----------------------------------------------------------------------------
# Wrapper-side (XLA) layout preparation
# ----------------------------------------------------------------------------
def _im2col(x_nhwc, kh, kw, stride, padding):
    """(B,H,W,C) -> (B*oh*ow, kh*kw*C); columns are tap-major (kh, kw, c)."""
    b, h, w, c = x_nhwc.shape
    xp = jnp.pad(x_nhwc, ((0, 0), (padding, padding), (padding, padding), (0, 0)))
    oh = (h + 2 * padding - kh) // stride + 1
    ow = (w + 2 * padding - kw) // stride + 1
    cols = []
    for ih in range(kh):
        for iw in range(kw):
            cols.append(xp[:, ih:ih + oh * stride:stride,
                           iw:iw + ow * stride:stride, :])
    patches = jnp.concatenate(cols, axis=-1)
    return patches.reshape(b * oh * ow, kh * kw * c), oh, ow


def _conv_weight(w_pt, n_pad=None):
    """(C_out, C_in, kH, kW) -> (kH*kW*C_in, C_out [padded to n_pad]) bf16."""
    c_out, c_in, kh, kw = w_pt.shape
    wm = w_pt.transpose(2, 3, 1, 0).reshape(kh * kw * c_in, c_out)
    if n_pad is not None and n_pad > c_out:
        wm = jnp.pad(wm, ((0, 0), (0, n_pad - c_out)))
    return wm.astype(jnp.bfloat16)


def _pad_vec(v, n):
    v = v.astype(jnp.float32)
    if n > v.shape[0]:
        v = jnp.pad(v, (0, n - v.shape[0]))
    return v.reshape(1, -1)


def _conv3x3_gather_matrix(b, h, w):
    """0/1 matrix P (9*B*H*W, B*H*W); rows grouped by tap t=(dh+1)*3+(dw+1):
    P[t*n+m, m'] = 1 iff the (dh,dw) spatial neighbour of flat pixel m is m'."""
    n = b * h * w
    mat = np.zeros((9 * n, n), np.float32)
    for bb in range(b):
        for hh in range(h):
            for ww in range(w):
                m = (bb * h + hh) * w + ww
                for dh in (-1, 0, 1):
                    for dw in (-1, 0, 1):
                        t = (dh + 1) * 3 + (dw + 1)
                        h2, w2 = hh + dh, ww + dw
                        if 0 <= h2 < h and 0 <= w2 < w:
                            mat[t * n + m, (bb * h + h2) * w + w2] = 1.0
    return jnp.asarray(mat)


def _subpixel_patches(x_nhwc):
    """4 parity patch matrices for a 4x4/s2/p1 ConvTranspose, each (B*H*W, 4*C).

    Parity (r,s) gathers the 2x2 window starting at (h+r, w+s) of the 1-padded
    input; taps ordered (row_off, col_off) row-major."""
    b, h, w, c = x_nhwc.shape
    xp = jnp.pad(x_nhwc, ((0, 0), (1, 1), (1, 1), (0, 0)))
    mats = []
    for r in (0, 1):
        for s in (0, 1):
            taps = []
            for ro in (0, 1):
                for co in (0, 1):
                    taps.append(xp[:, r + ro:r + ro + h, s + co:s + co + w, :])
            mats.append(jnp.concatenate(taps, axis=-1).reshape(b * h * w, 4 * c))
    return mats


def _subpixel_weights(w_pt, n_pad):
    """PyTorch ConvTranspose weight (C_in, C_out, 4, 4) -> 4 parity matrices
    (4*C_in, n_pad) bf16; parity (r,s) tap (ro,co) uses w[:,:,3-r-2*ro,3-s-2*co]."""
    c_out = w_pt.shape[1]
    mats = []
    for r in (0, 1):
        for s in (0, 1):
            taps = []
            for ro in (0, 1):
                for co in (0, 1):
                    taps.append(w_pt[:, :, 3 - r - 2 * ro, 3 - s - 2 * co])
            wm = jnp.concatenate(taps, axis=0)                  # (4*C_in, C_out)
            if n_pad > c_out:
                wm = jnp.pad(wm, ((0, 0), (0, n_pad - c_out)))
            mats.append(wm.astype(jnp.bfloat16))
    return mats


def _depth_to_space(y, b, h, w, c_out):
    """(4*B*H*W, LANES) parity-stacked kernel output -> (B, 2H, 2W, C_out)."""
    y = y[:, :c_out].reshape(2, 2, b, h, w, c_out)
    return jnp.transpose(y, (2, 3, 0, 4, 1, 5)).reshape(b, 2 * h, 2 * w, c_out)


# ----------------------------------------------------------------------------
# pallas_call wrappers (whole-array, single invocation; everything fits VMEM)
# ----------------------------------------------------------------------------
def _conv_bn_call(a, wm, g, b):
    m, k = a.shape
    n = wm.shape[1]
    cost = pl.CostEstimate(flops=2 * m * k * n + 10 * m * n, transcendentals=0,
                           bytes_accessed=4 * a.size + 2 * wm.size + 4 * m * n)
    return pl.pallas_call(
        _conv_bn_kernel,
        out_shape=jax.ShapeDtypeStruct((m, n), jnp.float32),
        cost_estimate=cost,
    )(a, wm, g, b)


def _deconv_bn_call(a_list, w_list, g, b):
    m, k = a_list[0].shape
    n = w_list[0].shape[1]
    cost = pl.CostEstimate(flops=4 * 2 * m * k * n + 40 * m * n, transcendentals=0,
                           bytes_accessed=4 * 4 * m * k + 2 * 4 * k * n + 4 * 4 * m * n)
    return pl.pallas_call(
        _deconv_bn_kernel,
        out_shape=jax.ShapeDtypeStruct((4 * m, n), jnp.float32),
        cost_estimate=cost,
    )(*a_list, *w_list, g, b)


def _middle_call(a2, w2, g2, b2, p_all, er1w3, er1w1, er2w3, er2w1,
                 emb_pad, embt_pad, esq_pad, dr1w3, dr1w1, dr2w3, dr2w1):
    m = a2.shape[0]
    c = w2.shape[1]
    kp = emb_pad.shape[0]
    res_flops = 2 * 9 * m * m * c + 9 * 2 * m * c * c + 2 * m * c * c
    flops = 2 * m * a2.shape[1] * c + 4 * res_flops + 4 * m * c * kp
    by = (4 * a2.size + 4 * p_all.size + 4 * (emb_pad.size + embt_pad.size)
          + 2 * (er1w3.size + er2w3.size + dr1w3.size + dr2w3.size) + 4 * m * c)
    cost = pl.CostEstimate(flops=flops, transcendentals=0, bytes_accessed=by)
    return pl.pallas_call(
        _middle_kernel,
        out_shape=jax.ShapeDtypeStruct((m, c), jnp.float32),
        cost_estimate=cost,
    )(a2, w2, g2, b2, p_all, er1w3, er1w1, er2w3, er2w1,
      emb_pad, embt_pad, esq_pad, dr1w3, dr1w1, dr2w3, dr2w1)


# ----------------------------------------------------------------------------
# VQ-VAE forward (encoder -> VQ -> decoder), NCHW in / NCHW out
# ----------------------------------------------------------------------------
def vqvae_forward(x_nchw, p):
    x = jnp.transpose(x_nchw, (0, 2, 3, 1)).astype(jnp.float32)       # NHWC
    b = x.shape[0]
    dim = p['eres1_w1'].shape[0]

    # ---- enc1: ReLU -> conv4x4/s2/p1 -> BN (one fused call, 128-lane out) ----
    a1, oh1, ow1 = _im2col(x, 4, 4, 2, 1)
    c1 = p['enc1_w'].shape[0]
    h1 = _conv_bn_call(a1, _conv_weight(p['enc1_w'], LANES),
                       _pad_vec(p['enc1_g'], LANES), _pad_vec(p['enc1_b'], LANES))
    h1 = h1[:, :c1].reshape(b, oh1, ow1, c1)

    # ---- middle: enc2 conv+BN, eres1/2, VQ, dres1/2 (single fused kernel) ----
    a2, oh2, ow2 = _im2col(h1, 4, 4, 2, 1)
    p_all = _conv3x3_gather_matrix(b, oh2, ow2)
    emb = p['emb'].astype(jnp.float32)
    k = emb.shape[0]
    kp = _round_up(max(k, 1), LANES)
    emb_pad = jnp.pad(emb, ((0, kp - k), (0, 0)))
    esq_pad = jnp.concatenate(
        [jnp.sum(emb * emb, axis=1),
         jnp.full((kp - k,), 1e30, jnp.float32)]).reshape(1, kp)
    z = _middle_call(
        a2, _conv_weight(p['enc2_w']),
        _pad_vec(p['enc2_g'], dim), _pad_vec(p['enc2_b'], dim), p_all,
        _conv_weight(p['eres1_w3']), _conv_weight(p['eres1_w1']),
        _conv_weight(p['eres2_w3']), _conv_weight(p['eres2_w1']),
        emb_pad, emb_pad.T, esq_pad,
        _conv_weight(p['dres1_w3']), _conv_weight(p['dres1_w1']),
        _conv_weight(p['dres2_w3']), _conv_weight(p['dres2_w1']))
    z = z.reshape(b, oh2, ow2, dim)

    # ---- dec1: ReLU -> ConvTranspose4x4/s2/p1 -> BN (sub-pixel, fused) ----
    cd1 = p['dec1_w'].shape[1]
    y = _deconv_bn_call(_subpixel_patches(z),
                        _subpixel_weights(p['dec1_w'], LANES),
                        _pad_vec(p['dec1_g'], LANES), _pad_vec(p['dec1_b'], LANES))
    d1 = _depth_to_space(y, b, oh2, ow2, cd1)

    # ---- dec2: ReLU -> ConvTranspose4x4/s2/p1 -> BN (sub-pixel, fused) ----
    cd2 = p['dec2_w'].shape[1]
    y = _deconv_bn_call(_subpixel_patches(d1),
                        _subpixel_weights(p['dec2_w'], LANES),
                        _pad_vec(p['dec2_g'], LANES), _pad_vec(p['dec2_b'], LANES))
    out = _depth_to_space(y, b, oh1, ow1, cd2)

    return jnp.transpose(out, (0, 3, 1, 2))                            # NCHW


# ----------------------------------------------------------------------------
# Deterministic parameter init (PyTorch shapes; BN affine = ones/zeros)
# ----------------------------------------------------------------------------
def init_params(key, k=64, dim=32):
    keys = jax.random.split(key, 16)

    def w(kk, shape, scale=0.05):
        return scale * jax.random.normal(kk, shape, jnp.float32)

    ones = lambda c: jnp.ones((c,), jnp.float32)
    zeros = lambda c: jnp.zeros((c,), jnp.float32)
    p = {
        'enc1_w': w(keys[0], (dim // 2, 3, 4, 4)),
        'enc1_g': ones(dim // 2), 'enc1_b': zeros(dim // 2),
        'enc2_w': w(keys[1], (dim, dim // 2, 4, 4)),
        'enc2_g': ones(dim), 'enc2_b': zeros(dim),
        'eres1_w3': w(keys[2], (dim, dim, 3, 3)),
        'eres1_w1': w(keys[3], (dim, dim, 1, 1)),
        'eres2_w3': w(keys[4], (dim, dim, 3, 3)),
        'eres2_w1': w(keys[5], (dim, dim, 1, 1)),
        'emb': jax.random.normal(keys[6], (k, dim), jnp.float32),
        'dres1_w3': w(keys[7], (dim, dim, 3, 3)),
        'dres1_w1': w(keys[8], (dim, dim, 1, 1)),
        'dres2_w3': w(keys[9], (dim, dim, 3, 3)),
        'dres2_w1': w(keys[10], (dim, dim, 1, 1)),
        'dec1_w': w(keys[11], (dim, dim // 2, 4, 4)),   # ConvTranspose: (C_in, C_out, kH, kW)
        'dec1_g': ones(dim // 2), 'dec1_b': zeros(dim // 2),
        'dec2_w': w(keys[12], (dim // 2, 3, 4, 4)),
        'dec2_g': ones(3), 'dec2_b': zeros(3),
    }
    return p


if __name__ == "__main__":
    key = jax.random.PRNGKey(0)
    k_params, k_x = jax.random.split(key)
    params = init_params(k_params, k=64, dim=32)
    x = jax.random.normal(k_x, (2, 3, 16, 16), jnp.float32)   # NCHW, like PyTorch

    recon = jax.jit(vqvae_forward)(x, params)
    recon = jax.block_until_ready(recon)

    assert recon.shape == (2, 3, 16, 16), recon.shape
    assert recon.dtype == jnp.float32
    assert bool(jnp.all(jnp.isfinite(recon)))
    print("KERNEL_OK")
</pallas_src>

<mosaic_0001>
module attributes {stable_mosaic.version = 11 : i64} {
  func.func @_conv_bn_kernel(%arg0: memref<128x48xf32, #tpu.memory_space<vmem>>, %arg1: memref<48x128xbf16, #tpu.memory_space<vmem>>, %arg2: memref<1x128xf32, #tpu.memory_space<vmem>>, %arg3: memref<1x128xf32, #tpu.memory_space<vmem>>, %arg4: memref<128x128xf32, #tpu.memory_space<vmem>>) attributes {dimension_semantics = [], scalar_prefetch = 0 : i64, scratch_operands = 0 : i64, tpu.core_type = #tpu.core_type<tc>} {
    %c0 = arith.constant 0 : index
    %c0_0 = arith.constant 0 : index
    %0 = vector.load %arg0[%c0, %c0_0] : memref<128x48xf32, #tpu.memory_space<vmem>>, vector<128x48xf32>
    %cst = arith.constant 0.000000e+00 : f32
    %1 = vector.broadcast %cst : f32 to vector<128x48xf32>
    %2 = arith.maximumf %0, %1 : vector<128x48xf32>
    %3 = arith.truncf %2 : vector<128x48xf32> to vector<128x48xbf16>
    %c0_1 = arith.constant 0 : index
    %c0_2 = arith.constant 0 : index
    %4 = vector.load %arg1[%c0_1, %c0_2] : memref<48x128xbf16, #tpu.memory_space<vmem>>, vector<48x128xbf16>
    %cst_3 = arith.constant dense<0.000000e+00> : vector<128x128xf32>
    %5 = tpu.matmul %3, %4, %cst_3 {dimension_numbers = #tpu.dot_dimension_numbers<[1], [0], [0], [1], [0, 0, 1, 1], [], []>} : vector<128x48xbf16>, vector<48x128xbf16>, vector<128x128xf32> -> vector<128x128xf32>
    %c0_4 = arith.constant 0 : index
    %c0_5 = arith.constant 0 : index
    %6 = vector.load %arg2[%c0_4, %c0_5] : memref<1x128xf32, #tpu.memory_space<vmem>>, vector<1x128xf32>
    %c0_6 = arith.constant 0 : index
    %c0_7 = arith.constant 0 : index
    %7 = vector.load %arg3[%c0_6, %c0_7] : memref<1x128xf32, #tpu.memory_space<vmem>>, vector<1x128xf32>
    %cst_8 = arith.constant dense<0.000000e+00> : vector<128xf32>
    %8 = vector.multi_reduction <add>, %5, %cst_8 [0] : vector<128x128xf32> to vector<128xf32>
    %9 = vector.shape_cast %8 : vector<128xf32> to vector<1x128xf32>
    %cst_9 = arith.constant 1.280000e+02 : f32
    %10 = vector.broadcast %cst_9 : f32 to vector<1x128xf32>
    %11 = arith.divf %9, %10 : vector<1x128xf32>
    %12 = arith.mulf %5, %5 : vector<128x128xf32>
    %cst_10 = arith.constant dense<0.000000e+00> : vector<128xf32>
    %13 = vector.multi_reduction <add>, %12, %cst_10 [0] : vector<128x128xf32> to vector<128xf32>
    %14 = vector.shape_cast %13 : vector<128xf32> to vector<1x128xf32>
    %cst_11 = arith.constant 1.280000e+02 : f32
    %15 = vector.broadcast %cst_11 : f32 to vector<1x128xf32>
    %16 = arith.divf %14, %15 : vector<1x128xf32>
    %17 = arith.mulf %11, %11 : vector<1x128xf32>
    %18 = arith.subf %16, %17 : vector<1x128xf32>
    %cst_12 = arith.constant 0.000000e+00 : f32
    %19 = vector.broadcast %cst_12 : f32 to vector<1x128xf32>
    %20 = arith.maximumf %18, %19 : vector<1x128xf32>
    %21 = vector.broadcast %11 : vector<1x128xf32> to vector<128x128xf32>
    %22 = arith.subf %5, %21 : vector<128x128xf32>
    %cst_13 = arith.constant 9.99999974E-6 : f32
    %23 = vector.broadcast %cst_13 : f32 to vector<1x128xf32>
    %24 = arith.addf %20, %23 : vector<1x128xf32>
    %25 = math.rsqrt %24 : vector<1x128xf32>
    %26 = vector.broadcast %25 : vector<1x128xf32> to vector<128x128xf32>
    %27 = arith.mulf %22, %26 : vector<128x128xf32>
    %28 = vector.broadcast %6 : vector<1x128xf32> to vector<128x128xf32>
    %29 = arith.mulf %27, %28 : vector<128x128xf32>
    %30 = vector.broadcast %7 : vector<1x128xf32> to vector<128x128xf32>
    %31 = arith.addf %29, %30 : vector<128x128xf32>
    %c0_14 = arith.constant 0 : index
    %c0_15 = arith.constant 0 : index
    %32 = vector.load %arg4[%c0_14, %c0_15] : memref<128x128xf32, #tpu.memory_space<vmem>>, vector<128x128xf32>
    tpu.vector_store %arg4[%c0_14, %c0_15], %31 {strides = array<i32>} : memref<128x128xf32, #tpu.memory_space<vmem>>, vector<128x128xf32>,
    return
  }
}

module attributes {stable_mosaic.version = 11 : i64} {
  func.func @_middle_kernel(%arg0: memref<32x256xf32, #tpu.memory_space<vmem>>, %arg1: memref<256x32xbf16, #tpu.memory_space<vmem>>, %arg2: memref<1x32xf32, #tpu.memory_space<vmem>>, %arg3: memref<1x32xf32, #tpu.memory_space<vmem>>, %arg4: memref<288x32xf32, #tpu.memory_space<vmem>>, %arg5: memref<288x32xbf16, #tpu.memory_space<vmem>>, %arg6: memref<32x32xbf16, #tpu.memory_space<vmem>>, %arg7: memref<288x32xbf16, #tpu.memory_space<vmem>>, %arg8: memref<32x32xbf16, #tpu.memory_space<vmem>>, %arg9: memref<128x32xf32, #tpu.memory_space<vmem>>, %arg10: memref<32x128xf32, #tpu.memory_space<vmem>>, %arg11: memref<1x128xf32, #tpu.memory_space<vmem>>, %arg12: memref<288x32xbf16, #tpu.memory_space<vmem>>, %arg13: memref<32x32xbf16, #tpu.memory_space<vmem>>, %arg14: memref<288x32xbf16, #tpu.memory_space<vmem>>, %arg15: memref<32x32xbf16, #tpu.memory_space<vmem>>, %arg16: memref<32x32xf32, #tpu.memory_space<vmem>>) attributes {dimension_semantics = [], scalar_prefetch = 0 : i64, scratch_operands = 0 : i64, tpu.core_type = #tpu.core_type<tc>} {
    %c0 = arith.constant 0 : index
    %c0_0 = arith.constant 0 : index
    %0 = vector.load %arg0[%c0, %c0_0] : memref<32x256xf32, #tpu.memory_space<vmem>>, vector<32x256xf32>
    %cst = arith.constant 0.000000e+00 : f32
    %1 = vector.broadcast %cst : f32 to vector<32x256xf32>
    %2 = arith.maximumf %0, %1 : vector<32x256xf32>
    %3 = arith.truncf %2 : vector<32x256xf32> to vector<32x256xbf16>
    %c0_1 = arith.constant 0 : index
    %c0_2 = arith.constant 0 : index
    %4 = vector.load %arg1[%c0_1, %c0_2] : memref<256x32xbf16, #tpu.memory_space<vmem>>, vector<256x32xbf16>
    %cst_3 = arith.constant dense<0.000000e+00> : vector<32x32xf32>
    %5 = tpu.matmul %3, %4, %cst_3 {dimension_numbers = #tpu.dot_dimension_numbers<[1], [0], [0], [1], [0, 0, 1, 1], [], []>} : vector<32x256xbf16>, vector<256x32xbf16>, vector<32x32xf32> -> vector<32x32xf32>
    %c0_4 = arith.constant 0 : index
    %c0_5 = arith.constant 0 : index
    %6 = vector.load %arg2[%c0_4, %c0_5] : memref<1x32xf32, #tpu.memory_space<vmem>>, vector<1x32xf32>
    %c0_6 = arith.constant 0 : index
    %c0_7 = arith.constant 0 : index
    %7 = vector.load %arg3[%c0_6, %c0_7] : memref<1x32xf32, #tpu.memory_space<vmem>>, vector<1x32xf32>
    %cst_8 = arith.constant dense<0.000000e+00> : vector<32xf32>
    %8 = vector.multi_reduction <add>, %5, %cst_8 [0] : vector<32x32xf32> to vector<32xf32>
    %9 = vector.shape_cast %8 : vector<32xf32> to vector<1x32xf32>
    %cst_9 = arith.constant 3.200000e+01 : f32
    %10 = vector.broadcast %cst_9 : f32 to vector<1x32xf32>
    %11 = arith.divf %9, %10 : vector<1x32xf32>
    %12 = arith.mulf %5, %5 : vector<32x32xf32>
    %cst_10 = arith.constant dense<0.000000e+00> : vector<32xf32>
    %13 = vector.multi_reduction <add>, %12, %cst_10 [0] : vector<32x32xf32> to vector<32xf32>
    %14 = vector.shape_cast %13 : vector<32xf32> to vector<1x32xf32>
    %cst_11 = arith.constant 3.200000e+01 : f32
    %15 = vector.broadcast %cst_11 : f32 to vector<1x32xf32>
    %16 = arith.divf %14, %15 : vector<1x32xf32>
    %17 = arith.mulf %11, %11 : vector<1x32xf32>
    %18 = arith.subf %16, %17 : vector<1x32xf32>
    %cst_12 = arith.constant 0.000000e+00 : f32
    %19 = vector.broadcast %cst_12 : f32 to vector<1x32xf32>
    %20 = arith.maximumf %18, %19 : vector<1x32xf32>
    %21 = vector.broadcast %11 : vector<1x32xf32> to vector<32x32xf32>
    %22 = arith.subf %5, %21 : vector<32x32xf32>
    %cst_13 = arith.constant 9.99999974E-6 : f32
    %23 = vector.broadcast %cst_13 : f32 to vector<1x32xf32>
    %24 = arith.addf %20, %23 : vector<1x32xf32>
    %25 = math.rsqrt %24 : vector<1x32xf32>
    %26 = vector.broadcast %25 : vector<1x32xf32> to vector<32x32xf32>
    %27 = arith.mulf %22, %26 : vector<32x32xf32>
    %28 = vector.broadcast %6 : vector<1x32xf32> to vector<32x32xf32>
    %29 = arith.mulf %27, %28 : vector<32x32xf32>
    %30 = vector.broadcast %7 : vector<1x32xf32> to vector<32x32xf32>
    %31 = arith.addf %29, %30 : vector<32x32xf32>
    %c0_14 = arith.constant 0 : index
    %c0_15 = arith.constant 0 : index
    %32 = vector.load %arg4[%c0_14, %c0_15] : memref<288x32xf32, #tpu.memory_space<vmem>>, vector<288x32xf32>
    %c0_16 = arith.constant 0 : index
    %c0_17 = arith.constant 0 : index
    %33 = vector.load %arg5[%c0_16, %c0_17] : memref<288x32xbf16, #tpu.memory_space<vmem>>, vector<288x32xbf16>
    %cst_18 = arith.constant 0.000000e+00 : f32
    %34 = vector.broadcast %cst_18 : f32 to vector<32x32xf32>
    %35 = arith.maximumf %31, %34 : vector<32x32xf32>
    %cst_19 = arith.constant dense<0.000000e+00> : vector<288x32xf32>
    %36 = tpu.matmul %32, %35, %cst_19 {dimension_numbers = #tpu.dot_dimension_numbers<[1], [0], [0], [1], [0, 0, 1, 1], [], []>} : vector<288x32xf32>, vector<32x32xf32>, vector<288x32xf32> -> vector<288x32xf32>
    %cst_20 = arith.constant 0.000000e+00 : f32
    %37 = vector.broadcast %cst_20 : f32 to vector<32x32xf32>
    %38 = vector.extract_strided_slice %36 {offsets = [0, 0], sizes = [32, 32], strides = [1, 1]} : vector<288x32xf32> to vector<32x32xf32>
    %39 = arith.truncf %38 : vector<32x32xf32> to vector<32x32xbf16>
    %40 = vector.extract_strided_slice %33 {offsets = [0, 0], sizes = [32, 32], strides = [1, 1]} : vector<288x32xbf16> to vector<32x32xbf16>
    %cst_21 = arith.constant dense<0.000000e+00> : vector<32x32xf32>
    %41 = tpu.matmul %39, %40, %cst_21 {dimension_numbers = #tpu.dot_dimension_numbers<[1], [0], [0], [1], [0, 0, 1, 1], [], []>} : vector<32x32xbf16>, vector<32x32xbf16>, vector<32x32xf32> -> vector<32x32xf32>
    %42 = arith.addf %37, %41 : vector<32x32xf32>
    %43 = vector.extract_strided_slice %36 {offsets = [32, 0], sizes = [32, 32], strides = [1, 1]} : vector<288x32xf32> to vector<32x32xf32>
    %44 = arith.truncf %43 : vector<32x32xf32> to vector<32x32xbf16>
    %45 = vector.extract_strided_slice %33 {offsets = [32, 0], sizes = [32, 32], strides = [1, 1]} : vector<288x32xbf16> to vector<32x32xbf16>
    %cst_22 = arith.constant dense<0.000000e+00> : vector<32x32xf32>
    %46 = tpu.matmul %44, %45, %cst_22 {dimension_numbers = #tpu.dot_dimension_numbers<[1], [0], [0], [1], [0, 0, 1, 1], [], []>} : vector<32x32xbf16>, vector<32x32xbf16>, vector<32x32xf32> -> vector<32x32xf32>
    %47 = arith.addf %42, %46 : vector<32x32xf32>
    %48 = vector.extract_strided_slice %36 {offsets = [64, 0], sizes = [32, 32], strides = [1, 1]} : vector<288x32xf32> to vector<32x32xf32>
    %49 = arith.truncf %48 : vector<32x32xf32> to vector<32x32xbf16>
    %50 = vector.extract_strided_slice %33 {offsets = [64, 0], sizes = [32, 32], strides = [1, 1]} : vector<288x32xbf16> to vector<32x32xbf16>
    %cst_23 = arith.constant dense<0.000000e+00> : vector<32x32xf32>
    %51 = tpu.matmul %49, %50, %cst_23 {dimension_numbers = #tpu.dot_dimension_numbers<[1], [0], [0], [1], [0, 0, 1, 1], [], []>} : vector<32x32xbf16>, vector<32x32xbf16>, vector<32x32xf32> -> vector<32x32xf32>
    %52 = arith.addf %47, %51 : vector<32x32xf32>
    %53 = vector.extract_strided_slice %36 {offsets = [96, 0], sizes = [32, 32], strides = [1, 1]} : vector<288x32xf32> to vector<32x32xf32>
    %54 = arith.truncf %53 : vector<32x32xf32> to vector<32x32xbf16>
    %55 = vector.extract_strided_slice %33 {offsets = [96, 0], sizes = [32, 32], strides = [1, 1]} : vector<288x32xbf16> to vector<32x32xbf16>
    %cst_24 = arith.constant dense<0.000000e+00> : vector<32x32xf32>
    %56 = tpu.matmul %54, %55, %cst_24 {dimension_numbers = #tpu.dot_dimension_numbers<[1], [0], [0], [1], [0, 0, 1, 1], [], []>} : vector<32x32xbf16>, vector<32x32xbf16>, vector<32x32xf32> -> vector<32x32xf32>
    %57 = arith.addf %52, %56 : vector<32x32xf32>
    %58 = vector.extract_strided_slice %36 {offsets = [128, 0], sizes = [32, 32], strides = [1, 1]} : vector<288x32xf32> to vector<32x32xf32>
    %59 = arith.truncf %58 : vector<32x32xf32> to vector<32x32xbf16>
    %60 = vector.extract_strided_slice %33 {offsets = [128, 0], sizes = [32, 32], strides = [1, 1]} : vector<288x32xbf16> to vector<32x32xbf16>
    %cst_25 = arith.constant dense<0.000000e+00> : vector<32x32xf32>
    %61 = tpu.matmul %59, %60, %cst_25 {dimension_numbers = #tpu.dot_dimension_numbers<[1], [0], [0], [1], [0, 0, 1, 1], [], []>} : vector<32x32xbf16>, vector<32x32xbf16>, vector<32x32xf32> -> vector<32x32xf32>
    %62 = arith.addf %57, %61 : vector<32x32xf32>
    %63 = vector.extract_strided_slice %36 {offsets = [160, 0], sizes = [32, 32], strides = [1, 1]} : vector<288x32xf32> to vector<32x32xf32>
    %64 = arith.truncf %63 : vector<32x32xf32> to vector<32x32xbf16>
    %65 = vector.extract_strided_slice %33 {offsets = [160, 0], sizes = [32, 32], strides = [1, 1]} : vector<288x32xbf16> to vector<32x32xbf16>
    %cst_26 = arith.constant dense<0.000000e+00> : vector<32x32xf32>
    %66 = tpu.matmul %64, %65, %cst_26 {dimension_numbers = #tpu.dot_dimension_numbers<[1], [0], [0], [1], [0, 0, 1, 1], [], []>} : vector<32x32xbf16>, vector<32x32xbf16>, vector<32x32xf32> -> vector<32x32xf32>
    %67 = arith.addf %62, %66 : vector<32x32xf32>
    %68 = vector.extract_strided_slice %36 {offsets = [192, 0], sizes = [32, 32], strides = [1, 1]} : vector<288x32xf32> to vector<32x32xf32>
    %69 = arith.truncf %68 : vector<32x32xf32> to vector<32x32xbf16>
    %70 = vector.extract_strided_slice %33 {offsets = [192, 0], sizes = [32, 32], strides = [1, 1]} : vector<288x32xbf16> to vector<32x32xbf16>
    %cst_27 = arith.constant dense<0.000000e+00> : vector<32x32xf32>
    %71 = tpu.matmul %69, %70, %cst_27 {dimension_numbers = #tpu.dot_dimension_numbers<[1], [0], [0], [1], [0, 0, 1, 1], [], []>} : vector<32x32xbf16>, vector<32x32xbf16>, vector<32x32xf32> -> vector<32x32xf32>
    %72 = arith.addf %67, %71 : vector<32x32xf32>
    %73 = vector.extract_strided_slice %36 {offsets = [224, 0], sizes = [32, 32], strides = [1, 1]} : vector<288x32xf32> to vector<32x32xf32>
    %74 = arith.truncf %73 : vector<32x32xf32> to vector<32x32xbf16>
    %75 = vector.extract_strided_slice %33 {offsets = [224, 0], sizes = [32, 32], strides = [1, 1]} : vector<288x32xbf16> to vector<32x32xbf16>
    %cst_28 = arith.constant dense<0.000000e+00> : vector<32x32xf32>
    %76 = tpu.matmul %74, %75, %cst_28 {dimension_numbers = #tpu.dot_dimension_numbers<[1], [0], [0], [1], [0, 0, 1, 1], [], []>} : vector<32x32xbf16>, vector<32x32xbf16>, vector<32x32xf32> -> vector<32x32xf32>
    %77 = arith.addf %72, %76 : vector<32x32xf32>
    %78 = vector.extract_strided_slice %36 {offsets = [256, 0], sizes = [32, 32], strides = [1, 1]} : vector<288x32xf32> to vector<32x32xf32>
    %79 = arith.truncf %78 : vector<32x32xf32> to vector<32x32xbf16>
    %80 = vector.extract_strided_slice %33 {offsets = [256, 0], sizes = [32, 32], strides = [1, 1]} : vector<288x32xbf16> to vector<32x32xbf16>
    %cst_29 = arith.constant dense<0.000000e+00> : vector<32x32xf32>
    %81 = tpu.matmul %79, %80, %cst_29 {dimension_numbers = #tpu.dot_dimension_numbers<[1], [0], [0], [1], [0, 0, 1, 1], [], []>} : vector<32x32xbf16>, vector<32x32xbf16>, vector<32x32xf32> -> vector<32x32xf32>
    %82 = arith.addf %77, %81 : vector<32x32xf32>
    %cst_30 = arith.constant 0.000000e+00 : f32
    %83 = vector.broadcast %cst_30 : f32 to vector<32x32xf32>
    %84 = arith.maximumf %82, %83 : vector<32x32xf32>
    %85 = arith.truncf %84 : vector<32x32xf32> to vector<32x32xbf16>
    %c0_31 = arith.constant 0 : index
    %c0_32 = arith.constant 0 : index
    %86 = vector.load %arg6[%c0_31, %c0_32] : memref<32x32xbf16, #tpu.memory_space<vmem>>, vector<32x32xbf16>
    %cst_33 = arith.constant dense<0.000000e+00> : vector<32x32xf32>
    %87 = tpu.matmul %85, %86, %cst_33 {dimension_numbers = #tpu.dot_dimension_numbers<[1], [0], [0], [1], [0, 0, 1, 1], [], []>} : vector<32x32xbf16>, vector<32x32xbf16>, vector<32x32xf32> -> vector<32x32xf32>
    %88 = arith.addf %31, %87 : vector<32x32xf32>
    %c0_34 = arith.constant 0 : index
    %c0_35 = arith.constant 0 : index
    %89 = vector.load %arg7[%c0_34, %c0_35] : memref<288x32xbf16, #tpu.memory_space<vmem>>, vector<288x32xbf16>
    %cst_36 = arith.constant 0.000000e+00 : f32
    %90 = vector.broadcast %cst_36 : f32 to vector<32x32xf32>
    %91 = arith.maximumf %88, %90 : vector<32x32xf32>
    %cst_37 = arith.constant dense<0.000000e+00> : vector<288x32xf32>
    %92 = tpu.matmul %32, %91, %cst_37 {dimension_numbers = #tpu.dot_dimension_numbers<[1], [0], [0], [1], [0, 0, 1, 1], [], []>} : vector<288x32xf32>, vector<32x32xf32>, vector<288x32xf32> -> vector<288x32xf32>
    %cst_38 = arith.constant 0.000000e+00 : f32
    %93 = vector.broadcast %cst_38 : f32 to vector<32x32xf32>
    %94 = vector.extract_strided_slice %92 {offsets = [0, 0], sizes = [32, 32], strides = [1, 1]} : vector<288x32xf32> to vector<32x32xf32>
    %95 = arith.truncf %94 : vector<32x32xf32> to vector<32x32xbf16>
    %96 = vector.extract_strided_slice %89 {offsets = [0, 0], sizes = [32, 32], strides = [1, 1]} : vector<288x32xbf16> to vector<32x32xbf16>
    %cst_39 = arith.constant dense<0.000000e+00> : vector<32x32xf32>
    %97 = tpu.matmul %95, %96, %cst_39 {dimension_numbers = #tpu.dot_dimension_numbers<[1], [0], [0], [1], [0, 0, 1, 1], [], []>} : vector<32x32xbf16>, vector<32x32xbf16>, vector<32x32xf32> -> vector<32x32xf32>
    %98 = arith.addf %93, %97 : vector<32x32xf32>
    %99 = vector.extract_strided_slice %92 {offsets = [32, 0], sizes = [32, 32], strides = [1, 1]} : vector<288x32xf32> to vector<32x32xf32>
    %100 = arith.truncf %99 : vector<32x32xf32> to vector<32x32xbf16>
    %101 = vector.extract_strided_slice %89 {offsets = [32, 0], sizes = [32, 32], strides = [1, 1]} : vector<288x32xbf16> to vector<32x32xbf16>
    %cst_40 = arith.constant dense<0.000000e+00> : vector<32x32xf32>
    %102 = tpu.matmul %100, %101, %cst_40 {dimension_numbers = #tpu.dot_dimension_numbers<[1], [0], [0], [1], [0, 0, 1, 1], [], []>} : vector<32x32xbf16>, vector<32x32xbf16>, vector<32x32xf32> -> vector<32x32xf32>
    %103 = arith.addf %98, %102 : vector<32x32xf32>
    %104 = vector.extract_strided_slice %92 {offsets = [64, 0], sizes = [32, 32], strides = [1, 1]} : vector<288x32xf32> to vector<32x32xf32>
    %105 = arith.truncf %104 : vector<32x32xf32> to vector<32x32xbf16>
    %106 = vector.extract_strided_slice %89 {offsets = [64, 0], sizes = [32, 32], strides = [1, 1]} : vector<288x32xbf16> to vector<32x32xbf16>
    %cst_41 = arith.constant dense<0.000000e+00> : vector<32x32xf32>
    %107 = tpu.matmul %105, %106, %cst_41 {dimension_numbers = #tpu.dot_dimension_numbers<[1], [0], [0], [1], [0, 0, 1, 1], [], []>} : vector<32x32xbf16>, vector<32x32xbf16>, vector<32x32xf32> -> vector<32x32xf32>
    %108 = arith.addf %103, %107 : vector<32x32xf32>
    %109 = vector.extract_strided_slice %92 {offsets = [96, 0], sizes = [32, 32], strides = [1, 1]} : vector<288x32xf32> to vector<32x32xf32>
    %110 = arith.truncf %109 : vector<32x32xf32> to vector<32x32xbf16>
    %111 = vector.extract_strided_slice %89 {offsets = [96, 0], sizes = [32, 32], strides = [1, 1]} : vector<288x32xbf16> to vector<32x32xbf16>
    %cst_42 = arith.constant dense<0.000000e+00> : vector<32x32xf32>
    %112 = tpu.matmul %110, %111, %cst_42 {dimension_numbers = #tpu.dot_dimension_numbers<[1], [0], [0], [1], [0, 0, 1, 1], [], []>} : vector<32x32xbf16>, vector<32x32xbf16>, vector<32x32xf32> -> vector<32x32xf32>
    %113 = arith.addf %108, %112 : vector<32x32xf32>
    %114 = vector.extract_strided_slice %92 {offsets = [128, 0], sizes = [32, 32], strides = [1, 1]} : vector<288x32xf32> to vector<32x32xf32>
    %115 = arith.truncf %114 : vector<32x32xf32> to vector<32x32xbf16>
    %116 = vector.extract_strided_slice %89 {offsets = [128, 0], sizes = [32, 32], strides = [1, 1]} : vector<288x32xbf16> to vector<32x32xbf16>
    %cst_43 = arith.constant dense<0.000000e+00> : vector<32x32xf32>
    %117 = tpu.matmul %115, %116, %cst_43 {dimension_numbers = #tpu.dot_dimension_numbers<[1], [0], [0], [1], [0, 0, 1, 1], [], []>} : vector<32x32xbf16>, vector<32x32xbf16>, vector<32x32xf32> -> vector<32x32xf32>
    %118 = arith.addf %113, %117 : vector<32x32xf32>
    %119 = vector.extract_strided_slice %92 {offsets = [160, 0], sizes = [32, 32], strides = [1, 1]} : vector<288x32xf32> to vector<32x32xf32>
    %120 = arith.truncf %119 : vector<32x32xf32> to vector<32x32xbf16>
    %121 = vector.extract_strided_slice %89 {offsets = [160, 0], sizes = [32, 32], strides = [1, 1]} : vector<288x32xbf16> to vector<32x32xbf16>
    %cst_44 = arith.constant dense<0.000000e+00> : vector<32x32xf32>
    %122 = tpu.matmul %120, %121, %cst_44 {dimension_numbers = #tpu.dot_dimension_numbers<[1], [0], [0], [1], [0, 0, 1, 1], [], []>} : vector<32x32xbf16>, vector<32x32xbf16>, vector<32x32xf32> -> vector<32x32xf32>
    %123 = arith.addf %118, %122 : vector<32x32xf32>
    %124 = vector.extract_strided_slice %92 {offsets = [192, 0], sizes = [32, 32], strides = [1, 1]} : vector<288x32xf32> to vector<32x32xf32>
    %125 = arith.truncf %124 : vector<32x32xf32> to vector<32x32xbf16>
    %126 = vector.extract_strided_slice %89 {offsets = [192, 0], sizes = [32, 32], strides = [1, 1]} : vector<288x32xbf16> to vector<32x32xbf16>
    %cst_45 = arith.constant dense<0.000000e+00> : vector<32x32xf32>
    %127 = tpu.matmul %125, %126, %cst_45 {dimension_numbers = #tpu.dot_dimension_numbers<[1], [0], [0], [1], [0, 0, 1, 1], [], []>} : vector<32x32xbf16>, vector<32x32xbf16>, vector<32x32xf32> -> vector<32x32xf32>
    %128 = arith.addf %123, %127 : vector<32x32xf32>
    %129 = vector.extract_strided_slice %92 {offsets = [224, 0], sizes = [32, 32], strides = [1, 1]} : vector<288x32xf32> to vector<32x32xf32>
    %130 = arith.truncf %129 : vector<32x32xf32> to vector<32x32xbf16>
    %131 = vector.extract_strided_slice %89 {offsets = [224, 0], sizes = [32, 32], strides = [1, 1]} : vector<288x32xbf16> to vector<32x32xbf16>
    %cst_46 = arith.constant dense<0.000000e+00> : vector<32x32xf32>
    %132 = tpu.matmul %130, %131, %cst_46 {dimension_numbers = #tpu.dot_dimension_numbers<[1], [0], [0], [1], [0, 0, 1, 1], [], []>} : vector<32x32xbf16>, vector<32x32xbf16>, vector<32x32xf32> -> vector<32x32xf32>
    %133 = arith.addf %128, %132 : vector<32x32xf32>
    %134 = vector.extract_strided_slice %92 {offsets = [256, 0], sizes = [32, 32], strides = [1, 1]} : vector<288x32xf32> to vector<32x32xf32>
    %135 = arith.truncf %134 : vector<32x32xf32> to vector<32x32xbf16>
    %136 = vector.extract_strided_slice %89 {offsets = [256, 0], sizes = [32, 32], strides = [1, 1]} : vector<288x32xbf16> to vector<32x32xbf16>
    %cst_47 = arith.constant dense<0.000000e+00> : vector<32x32xf32>
    %137 = tpu.matmul %135, %136, %cst_47 {dimension_numbers = #tpu.dot_dimension_numbers<[1], [0], [0], [1], [0, 0, 1, 1], [], []>} : vector<32x32xbf16>, vector<32x32xbf16>, vector<32x32xf32> -> vector<32x32xf32>
    %138 = arith.addf %133, %137 : vector<32x32xf32>
    %cst_48 = arith.constant 0.000000e+00 : f32
    %139 = vector.broadcast %cst_48 : f32 to vector<32x32xf32>
    %140 = arith.maximumf %138, %139 : vector<32x32xf32>
    %141 = arith.truncf %140 : vector<32x32xf32> to vector<32x32xbf16>
    %c0_49 = arith.constant 0 : index
    %c0_50 = arith.constant 0 : index
    %142 = vector.load %arg8[%c0_49, %c0_50] : memref<32x32xbf16, #tpu.memory_space<vmem>>, vector<32x32xbf16>
    %cst_51 = arith.constant dense<0.000000e+00> : vector<32x32xf32>
    %143 = tpu.matmul %141, %142, %cst_51 {dimension_numbers = #tpu.dot_dimension_numbers<[1], [0], [0], [1], [0, 0, 1, 1], [], []>} : vector<32x32xbf16>, vector<32x32xbf16>, vector<32x32xf32> -> vector<32x32xf32>
    %144 = arith.addf %88, %143 : vector<32x32xf32>
    %c0_52 = arith.constant 0 : index
    %c0_53 = arith.constant 0 : index
    %145 = vector.load %arg10[%c0_52, %c0_53] : memref<32x128xf32, #tpu.memory_space<vmem>>, vector<32x128xf32>
    %cst_54 = arith.constant dense<0.000000e+00> : vector<32x128xf32>
    %146 = tpu.matmul %144, %145, %cst_54 {dimension_numbers = #tpu.dot_dimension_numbers<[1], [0], [0], [1], [0, 0, 1, 1], [], []>} : vector<32x32xf32>, vector<32x128xf32>, vector<32x128xf32> -> vector<32x128xf32>
    %c0_55 = arith.constant 0 : index
    %c0_56 = arith.constant 0 : index
    %147 = vector.load %arg11[%c0_55, %c0_56] : memref<1x128xf32, #tpu.memory_space<vmem>>, vector<1x128xf32>
    %cst_57 = arith.constant 2.000000e+00 : f32
    %148 = vector.broadcast %cst_57 : f32 to vector<32x128xf32>
    %149 = arith.mulf %148, %146 : vector<32x128xf32>
    %150 = vector.broadcast %147 : vector<1x128xf32> to vector<32x128xf32>
    %151 = arith.subf %150, %149 : vector<32x128xf32>
    %152 = tpu.reduce_index %151 {axis = 1 : i32, kind = #tpu.reduction_kind<arg_min>} : vector<32x128xf32> -> vector<32xi32>
    %153 = vector.shape_cast %152 : vector<32xi32> to vector<32x1xi32>
    %154 = tpu.iota {dimensions = array<i32: 1>} : vector<32x128xi32>
    %155 = vector.broadcast %153 : vector<32x1xi32> to vector<32x128xi32>
    %156 = arith.cmpi eq, %155, %154 : vector<32x128xi32>
    %157 = arith.extui %156 : vector<32x128xi1> to vector<32x128xi32>
    %158 = arith.sitofp %157 : vector<32x128xi32> to vector<32x128xf32>
    %c0_58 = arith.constant 0 : index
    %c0_59 = arith.constant 0 : index
    %159 = vector.load %arg9[%c0_58, %c0_59] : memref<128x32xf32, #tpu.memory_space<vmem>>, vector<128x32xf32>
    %cst_60 = arith.constant dense<0.000000e+00> : vector<32x32xf32>
    %160 = tpu.matmul %158, %159, %cst_60 {dimension_numbers = #tpu.dot_dimension_numbers<[1], [0], [0], [1], [0, 0, 1, 1], [], []>} : vector<32x128xf32>, vector<128x32xf32>, vector<32x32xf32> -> vector<32x32xf32>
    %c0_61 = arith.constant 0 : index
    %c0_62 = arith.constant 0 : index
    %161 = vector.load %arg12[%c0_61, %c0_62] : memref<288x32xbf16, #tpu.memory_space<vmem>>, vector<288x32xbf16>
    %cst_63 = arith.constant 0.000000e+00 : f32
    %162 = vector.broadcast %cst_63 : f32 to vector<32x32xf32>
    %163 = arith.maximumf %160, %162 : vector<32x32xf32>
    %cst_64 = arith.constant dense<0.000000e+00> : vector<288x32xf32>
    %164 = tpu.matmul %32, %163, %cst_64 {dimension_numbers = #tpu.dot_dimension_numbers<[1], [0], [0], [1], [0, 0, 1, 1], [], []>} : vector<288x32xf32>, vector<32x32xf32>, vector<288x32xf32> -> vector<288x32xf32>
    %cst_65 = arith.constant 0.000000e+00 : f32
    %165 = vector.broadcast %cst_65 : f32 to vector<32x32xf32>
    %166 = vector.extract_strided_slice %164 {offsets = [0, 0], sizes = [32, 32], strides = [1, 1]} : vector<288x32xf32> to vector<32x32xf32>
    %167 = arith.truncf %166 : vector<32x32xf32> to vector<32x32xbf16>
    %168 = vector.extract_strided_slice %161 {offsets = [0, 0], sizes = [32, 32], strides = [1, 1]} : vector<288x32xbf16> to vector<32x32xbf16>
    %cst_66 = arith.constant dense<0.000000e+00> : vector<32x32xf32>
    %169 = tpu.matmul %167, %168, %cst_66 {dimension_numbers = #tpu.dot_dimension_numbers<[1], [0], [0], [1], [0, 0, 1, 1], [], []>} : vector<32x32xbf16>, vector<32x32xbf16>, vector<32x32xf32> -> vector<32x32xf32>
    %170 = arith.addf %165, %169 : vector<32x32xf32>
    %171 = vector.extract_strided_slice %164 {offsets = [32, 0], sizes = [32, 32], strides = [1, 1]} : vector<288x32xf32> to vector<32x32xf32>
    %172 = arith.truncf %171 : vector<32x32xf32> to vector<32x32xbf16>
    %173 = vector.extract_strided_slice %161 {offsets = [32, 0], sizes = [32, 32], strides = [1, 1]} : vector<288x32xbf16> to vector<32x32xbf16>
    %cst_67 = arith.constant dense<0.000000e+00> : vector<32x32xf32>
    %174 = tpu.matmul %172, %173, %cst_67 {dimension_numbers = #tpu.dot_dimension_numbers<[1], [0], [0], [1], [0, 0, 1, 1], [], []>} : vector<32x32xbf16>, vector<32x32xbf16>, vector<32x32xf32> -> vector<32x32xf32>
    %175 = arith.addf %170, %174 : vector<32x32xf32>
    %176 = vector.extract_strided_slice %164 {offsets = [64, 0], sizes = [32, 32], strides = [1, 1]} : vector<288x32xf32> to vector<32x32xf32>
    %177 = arith.truncf %176 : vector<32x32xf32> to vector<32x32xbf16>
    %178 = vector.extract_strided_slice %161 {offsets = [64, 0], sizes = [32, 32], strides = [1, 1]} : vector<288x32xbf16> to vector<32x32xbf16>
    %cst_68 = arith.constant dense<0.000000e+00> : vector<32x32xf32>
    %179 = tpu.matmul %177, %178, %cst_68 {dimension_numbers = #tpu.dot_dimension_numbers<[1], [0], [0], [1], [0, 0, 1, 1], [], []>} : vector<32x32xbf16>, vector<32x32xbf16>, vector<32x32xf32> -> vector<32x32xf32>
    %180 = arith.addf %175, %179 : vector<32x32xf32>
    %181 = vector.extract_strided_slice %164 {offsets = [96, 0], sizes = [32, 32], strides = [1, 1]} : vector<288x32xf32> to vector<32x32xf32>
    %182 = arith.truncf %181 : vector<32x32xf32> to vector<32x32xbf16>
    %183 = vector.extract_strided_slice %161 {offsets = [96, 0], sizes = [32, 32], strides = [1, 1]} : vector<288x32xbf16> to vector<32x32xbf16>
    %cst_69 = arith.constant dense<0.000000e+00> : vector<32x32xf32>
    %184 = tpu.matmul %182, %183, %cst_69 {dimension_numbers = #tpu.dot_dimension_numbers<[1], [0], [0], [1], [0, 0, 1, 1], [], []>} : vector<32x32xbf16>, vector<32x32xbf16>, vector<32x32xf32> -> vector<32x32xf32>
    %185 = arith.addf %180, %184 : vector<32x32xf32>
    %186 = vector.extract_strided_slice %164 {offsets = [128, 0], sizes = [32, 32], strides = [1, 1]} : vector<288x32xf32> to vector<32x32xf32>
    %187 = arith.truncf %186 : vector<32x32xf32> to vector<32x32xbf16>
    %188 = vector.extract_strided_slice %161 {offsets = [128, 0], sizes = [32, 32], strides = [1, 1]} : vector<288x32xbf16> to vector<32x32xbf16>
    %cst_70 = arith.constant dense<0.000000e+00> : vector<32x32xf32>
    %189 = tpu.matmul %187, %188, %cst_70 {dimension_numbers = #tpu.dot_dimension_numbers<[1], [0], [0], [1], [0, 0, 1, 1], [], []>} : vector<32x32xbf16>, vector<32x32xbf16>, vector<32x32xf32> -> vector<32x32xf32>
    %190 = arith.addf %185, %189 : vector<32x32xf32>
    %191 = vector.extract_strided_slice %164 {offsets = [160, 0], sizes = [32, 32], strides = [1, 1]} : vector<288x32xf32> to vector<32x32xf32>
    %192 = arith.truncf %191 : vector<32x32xf32> to vector<32x32xbf16>
    %193 = vector.extract_strided_slice %161 {offsets = [160, 0], sizes = [32, 32], strides = [1, 1]} : vector<288x32xbf16> to vector<32x32xbf16>
    %cst_71 = arith.constant dense<0.000000e+00> : vector<32x32xf32>
    %194 = tpu.matmul %192, %193, %cst_71 {dimension_numbers = #tpu.dot_dimension_numbers<[1], [0], [0], [1], [0, 0, 1, 1], [], []>} : vector<32x32xbf16>, vector<32x32xbf16>, vector<32x32xf32> -> vector<32x32xf32>
    %195 = arith.addf %190, %194 : vector<32x32xf32>
    %196 = vector.extract_strided_slice %164 {offsets = [192, 0], sizes = [32, 32], strides = [1, 1]} : vector<288x32xf32> to vector<32x32xf32>
    %197 = arith.truncf %196 : vector<32x32xf32> to vector<32x32xbf16>
    %198 = vector.extract_strided_slice %161 {offsets = [192, 0], sizes = [32, 32], strides = [1, 1]} : vector<288x32xbf16> to vector<32x32xbf16>
    %cst_72 = arith.constant dense<0.000000e+00> : vector<32x32xf32>
    %199 = tpu.matmul %197, %198, %cst_72 {dimension_numbers = #tpu.dot_dimension_numbers<[1], [0], [0], [1], [0, 0, 1, 1], [], []>} : vector<32x32xbf16>, vector<32x32xbf16>, vector<32x32xf32> -> vector<32x32xf32>
    %200 = arith.addf %195, %199 : vector<32x32xf32>
    %201 = vector.extract_strided_slice %164 {offsets = [224, 0], sizes = [32, 32], strides = [1, 1]} : vector<288x32xf32> to vector<32x32xf32>
    %202 = arith.truncf %201 : vector<32x32xf32> to vector<32x32xbf16>
    %203 = vector.extract_strided_slice %161 {offsets = [224, 0], sizes = [32, 32], strides = [1, 1]} : vector<288x32xbf16> to vector<32x32xbf16>
    %cst_73 = arith.constant dense<0.000000e+00> : vector<32x32xf32>
    %204 = tpu.matmul %202, %203, %cst_73 {dimension_numbers = #tpu.dot_dimension_numbers<[1], [0], [0], [1], [0, 0, 1, 1], [], []>} : vector<32x32xbf16>, vector<32x32xbf16>, vector<32x32xf32> -> vector<32x32xf32>
    %205 = arith.addf %200, %204 : vector<32x32xf32>
    %206 = vector.extract_strided_slice %164 {offsets = [256, 0], sizes = [32, 32], strides = [1, 1]} : vector<288x32xf32> to vector<32x32xf32>
    %207 = arith.truncf %206 : vector<32x32xf32> to vector<32x32xbf16>
    %208 = vector.extract_strided_slice %161 {offsets = [256, 0], sizes = [32, 32], strides = [1, 1]} : vector<288x32xbf16> to vector<32x32xbf16>
    %cst_74 = arith.constant dense<0.000000e+00> : vector<32x32xf32>
    %209 = tpu.matmul %207, %208, %cst_74 {dimension_numbers = #tpu.dot_dimension_numbers<[1], [0], [0], [1], [0, 0, 1, 1], [], []>} : vector<32x32xbf16>, vector<32x32xbf16>, vector<32x32xf32> -> vector<32x32xf32>
    %210 = arith.addf %205, %209 : vector<32x32xf32>
    %cst_75 = arith.constant 0.000000e+00 : f32
    %211 = vector.broadcast %cst_75 : f32 to vector<32x32xf32>
    %212 = arith.maximumf %210, %211 : vector<32x32xf32>
    %213 = arith.truncf %212 : vector<32x32xf32> to vector<32x32xbf16>
    %c0_76 = arith.constant 0 : index
    %c0_77 = arith.constant 0 : index
    %214 = vector.load %arg13[%c0_76, %c0_77] : memref<32x32xbf16, #tpu.memory_space<vmem>>, vector<32x32xbf16>
    %cst_78 = arith.constant dense<0.000000e+00> : vector<32x32xf32>
    %215 = tpu.matmul %213, %214, %cst_78 {dimension_numbers = #tpu.dot_dimension_numbers<[1], [0], [0], [1], [0, 0, 1, 1], [], []>} : vector<32x32xbf16>, vector<32x32xbf16>, vector<32x32xf32> -> vector<32x32xf32>
    %216 = arith.addf %160, %215 : vector<32x32xf32>
    %c0_79 = arith.constant 0 : index
    %c0_80 = arith.constant 0 : index
    %217 = vector.load %arg14[%c0_79, %c0_80] : memref<288x32xbf16, #tpu.memory_space<vmem>>, vector<288x32xbf16>
    %cst_81 = arith.constant 0.000000e+00 : f32
    %218 = vector.broadcast %cst_81 : f32 to vector<32x32xf32>
    %219 = arith.maximumf %216, %218 : vector<32x32xf32>
    %cst_82 = arith.constant dense<0.000000e+00> : vector<288x32xf32>
    %220 = tpu.matmul %32, %219, %cst_82 {dimension_numbers = #tpu.dot_dimension_numbers<[1], [0], [0], [1], [0, 0, 1, 1], [], []>} : vector<288x32xf32>, vector<32x32xf32>, vector<288x32xf32> -> vector<288x32xf32>
    %cst_83 = arith.constant 0.000000e+00 : f32
    %221 = vector.broadcast %cst_83 : f32 to vector<32x32xf32>
    %222 = vector.extract_strided_slice %220 {offsets = [0, 0], sizes = [32, 32], strides = [1, 1]} : vector<288x32xf32> to vector<32x32xf32>
    %223 = arith.truncf %222 : vector<32x32xf32> to vector<32x32xbf16>
    %224 = vector.extract_strided_slice %217 {offsets = [0, 0], sizes = [32, 32], strides = [1, 1]} : vector<288x32xbf16> to vector<32x32xbf16>
    %cst_84 = arith.constant dense<0.000000e+00> : vector<32x32xf32>
    %225 = tpu.matmul %223, %224, %cst_84 {dimension_numbers = #tpu.dot_dimension_numbers<[1], [0], [0], [1], [0, 0, 1, 1], [], []>} : vector<32x32xbf16>, vector<32x32xbf16>, vector<32x32xf32> -> vector<32x32xf32>
    %226 = arith.addf %221, %225 : vector<32x32xf32>
    %227 = vector.extract_strided_slice %220 {offsets = [32, 0], sizes = [32, 32], strides = [1, 1]} : vector<288x32xf32> to vector<32x32xf32>
    %228 = arith.truncf %227 : vector<32x32xf32> to vector<32x32xbf16>
    %229 = vector.extract_strided_slice %217 {offsets = [32, 0], sizes = [32, 32], strides = [1, 1]} : vector<288x32xbf16> to vector<32x32xbf16>
    %cst_85 = arith.constant dense<0.000000e+00> : vector<32x32xf32>
    %230 = tpu.matmul %228, %229, %cst_85 {dimension_numbers = #tpu.dot_dimension_numbers<[1], [0], [0], [1], [0, 0, 1, 1], [], []>} : vector<32x32xbf16>, vector<32x32xbf16>, vector<32x32xf32> -> vector<32x32xf32>
    %231 = arith.addf %226, %230 : vector<32x32xf32>
    %232 = vector.extract_strided_slice %220 {offsets = [64, 0], sizes = [32, 32], strides = [1, 1]} : vector<288x32xf32> to vector<32x32xf32>
    %233 = arith.truncf %232 : vector<32x32xf32> to vector<32x32xbf16>
    %234 = vector.extract_strided_slice %217 {offsets = [64, 0], sizes = [32, 32], strides = [1, 1]} : vector<288x32xbf16> to vector<32x32xbf16>
    %cst_86 = arith.constant dense<0.000000e+00> : vector<32x32xf32>
    %235 = tpu.matmul %233, %234, %cst_86 {dimension_numbers = #tpu.dot_dimension_numbers<[1], [0], [0], [1], [0, 0, 1, 1], [], []>} : vector<32x32xbf16>, vector<32x32xbf16>, vector<32x32xf32> -> vector<32x32xf32>
    %236 = arith.addf %231, %235 : vector<32x32xf32>
    %237 = vector.extract_strided_slice %220 {offsets = [96, 0], sizes = [32, 32], strides = [1, 1]} : vector<288x32xf32> to vector<32x32xf32>
    %238 = arith.truncf %237 : vector<32x32xf32> to vector<32x32xbf16>
    %239 = vector.extract_strided_slice %217 {offsets = [96, 0], sizes = [32, 32], strides = [1, 1]} : vector<288x32xbf16> to vector<32x32xbf16>
    %cst_87 = arith.constant dense<0.000000e+00> : vector<32x32xf32>
    %240 = tpu.matmul %238, %239, %cst_87 {dimension_numbers = #tpu.dot_dimension_numbers<[1], [0], [0], [1], [0, 0, 1, 1], [], []>} : vector<32x32xbf16>, vector<32x32xbf16>, vector<32x32xf32> -> vector<32x32xf32>
    %241 = arith.addf %236, %240 : vector<32x32xf32>
    %242 = vector.extract_strided_slice %220 {offsets = [128, 0], sizes = [32, 32], strides = [1, 1]} : vector<288x32xf32> to vector<32x32xf32>
    %243 = arith.truncf %242 : vector<32x32xf32> to vector<32x32xbf16>
    %244 = vector.extract_strided_slice %217 {offsets = [128, 0], sizes = [32, 32], strides = [1, 1]} : vector<288x32xbf16> to vector<32x32xbf16>
    %cst_88 = arith.constant dense<0.000000e+00> : vector<32x32xf32>
    %245 = tpu.matmul %243, %244, %cst_88 {dimension_numbers = #tpu.dot_dimension_numbers<[1], [0], [0], [1], [0, 0, 1, 1], [], []>} : vector<32x32xbf16>, vector<32x32xbf16>, vector<32x32xf32> -> vector<32x32xf32>
    %246 = arith.addf %241, %245 : vector<32x32xf32>
    %247 = vector.extract_strided_slice %220 {offsets = [160, 0], sizes = [32, 32], strides = [1, 1]} : vector<288x32xf32> to vector<32x32xf32>
    %248 = arith.truncf %247 : vector<32x32xf32> to vector<32x32xbf16>
    %249 = vector.extract_strided_slice %217 {offsets = [160, 0], sizes = [32, 32], strides = [1, 1]} : vector<288x32xbf16> to vector<32x32xbf16>
    %cst_89 = arith.constant dense<0.000000e+00> : vector<32x32xf32>
    %250 = tpu.matmul %248, %249, %cst_89 {dimension_numbers = #tpu.dot_dimension_numbers<[1], [0], [0], [1], [0, 0, 1, 1], [], []>} : vector<32x32xbf16>, vector<32x32xbf16>, vector<32x32xf32> -> vector<32x32xf32>
    %251 = arith.addf %246, %250 : vector<32x32xf32>
    %252 = vector.extract_strided_slice %220 {offsets = [192, 0], sizes = [32, 32], strides = [1, 1]} : vector<288x32xf32> to vector<32x32xf32>
    %253 = arith.truncf %252 : vector<32x32xf32> to vector<32x32xbf16>
    %254 = vector.extract_strided_slice %217 {offsets = [192, 0], sizes = [32, 32], strides = [1, 1]} : vector<288x32xbf16> to vector<32x32xbf16>
    %cst_90 = arith.constant dense<0.000000e+00> : vector<32x32xf32>
    %255 = tpu.matmul %253, %254, %cst_90 {dimension_numbers = #tpu.dot_dimension_numbers<[1], [0], [0], [1], [0, 0, 1, 1], [], []>} : vector<32x32xbf16>, vector<32x32xbf16>, vector<32x32xf32> -> vector<32x32xf32>
    %256 = arith.addf %251, %255 : vector<32x32xf32>
    %257 = vector.extract_strided_slice %220 {offsets = [224, 0], sizes = [32, 32], strides = [1, 1]} : vector<288x32xf32> to vector<32x32xf32>
    %258 = arith.truncf %257 : vector<32x32xf32> to vector<32x32xbf16>
    %259 = vector.extract_strided_slice %217 {offsets = [224, 0], sizes = [32, 32], strides = [1, 1]} : vector<288x32xbf16> to vector<32x32xbf16>
    %cst_91 = arith.constant dense<0.000000e+00> : vector<32x32xf32>
    %260 = tpu.matmul %258, %259, %cst_91 {dimension_numbers = #tpu.dot_dimension_numbers<[1], [0], [0], [1], [0, 0, 1, 1], [], []>} : vector<32x32xbf16>, vector<32x32xbf16>, vector<32x32xf32> -> vector<32x32xf32>
    %261 = arith.addf %256, %260 : vector<32x32xf32>
    %262 = vector.extract_strided_slice %220 {offsets = [256, 0], sizes = [32, 32], strides = [1, 1]} : vector<288x32xf32> to vector<32x32xf32>
    %263 = arith.truncf %262 : vector<32x32xf32> to vector<32x32xbf16>
    %264 = vector.extract_strided_slice %217 {offsets = [256, 0], sizes = [32, 32], strides = [1, 1]} : vector<288x32xbf16> to vector<32x32xbf16>
    %cst_92 = arith.constant dense<0.000000e+00> : vector<32x32xf32>
    %265 = tpu.matmul %263, %264, %cst_92 {dimension_numbers = #tpu.dot_dimension_numbers<[1], [0], [0], [1], [0, 0, 1, 1], [], []>} : vector<32x32xbf16>, vector<32x32xbf16>, vector<32x32xf32> -> vector<32x32xf32>
    %266 = arith.addf %261, %265 : vector<32x32xf32>
    %cst_93 = arith.constant 0.000000e+00 : f32
    %267 = vector.broadcast %cst_93 : f32 to vector<32x32xf32>
    %268 = arith.maximumf %266, %267 : vector<32x32xf32>
    %269 = arith.truncf %268 : vector<32x32xf32> to vector<32x32xbf16>
    %c0_94 = arith.constant 0 : index
    %c0_95 = arith.constant 0 : index
    %270 = vector.load %arg15[%c0_94, %c0_95] : memref<32x32xbf16, #tpu.memory_space<vmem>>, vector<32x32xbf16>
    %cst_96 = arith.constant dense<0.000000e+00> : vector<32x32xf32>
    %271 = tpu.matmul %269, %270, %cst_96 {dimension_numbers = #tpu.dot_dimension_numbers<[1], [0], [0], [1], [0, 0, 1, 1], [], []>} : vector<32x32xbf16>, vector<32x32xbf16>, vector<32x32xf32> -> vector<32x32xf32>
    %272 = arith.addf %216, %271 : vector<32x32xf32>
    %c0_97 = arith.constant 0 : index
    %c0_98 = arith.constant 0 : index
    %273 = vector.load %arg16[%c0_97, %c0_98] : memref<32x32xf32, #tpu.memory_space<vmem>>, vector<32x32xf32>
    tpu.vector_store %arg16[%c0_97, %c0_98], %272 {strides = array<i32>} : memref<32x32xf32, #tpu.memory_space<vmem>>, vector<32x32xf32>,
    return
  }
}

module attributes {stable_mosaic.version = 11 : i64} {
  func.func @_deconv_bn_kernel(%arg0: memref<32x128xf32, #tpu.memory_space<vmem>>, %arg1: memref<32x128xf32, #tpu.memory_space<vmem>>, %arg2: memref<32x128xf32, #tpu.memory_space<vmem>>, %arg3: memref<32x128xf32, #tpu.memory_space<vmem>>, %arg4: memref<128x128xbf16, #tpu.memory_space<vmem>>, %arg5: memref<128x128xbf16, #tpu.memory_space<vmem>>, %arg6: memref<128x128xbf16, #tpu.memory_space<vmem>>, %arg7: memref<128x128xbf16, #tpu.memory_space<vmem>>, %arg8: memref<1x128xf32, #tpu.memory_space<vmem>>, %arg9: memref<1x128xf32, #tpu.memory_space<vmem>>, %arg10: memref<128x128xf32, #tpu.memory_space<vmem>>) attributes {dimension_semantics = [], scalar_prefetch = 0 : i64, scratch_operands = 0 : i64, tpu.core_type = #tpu.core_type<tc>} {
    %c0 = arith.constant 0 : index
    %c0_0 = arith.constant 0 : index
    %0 = vector.load %arg0[%c0, %c0_0] : memref<32x128xf32, #tpu.memory_space<vmem>>, vector<32x128xf32>
    %cst = arith.constant 0.000000e+00 : f32
    %1 = vector.broadcast %cst : f32 to vector<32x128xf32>
    %2 = arith.maximumf %0, %1 : vector<32x128xf32>
    %3 = arith.truncf %2 : vector<32x128xf32> to vector<32x128xbf16>
    %c0_1 = arith.constant 0 : index
    %c0_2 = arith.constant 0 : index
    %4 = vector.load %arg4[%c0_1, %c0_2] : memref<128x128xbf16, #tpu.memory_space<vmem>>, vector<128x128xbf16>
    %cst_3 = arith.constant dense<0.000000e+00> : vector<32x128xf32>
    %5 = tpu.matmul %3, %4, %cst_3 {dimension_numbers = #tpu.dot_dimension_numbers<[1], [0], [0], [1], [0, 0, 1, 1], [], []>} : vector<32x128xbf16>, vector<128x128xbf16>, vector<32x128xf32> -> vector<32x128xf32>
    %c0_4 = arith.constant 0 : index
    %c0_5 = arith.constant 0 : index
    %6 = vector.load %arg1[%c0_4, %c0_5] : memref<32x128xf32, #tpu.memory_space<vmem>>, vector<32x128xf32>
    %cst_6 = arith.constant 0.000000e+00 : f32
    %7 = vector.broadcast %cst_6 : f32 to vector<32x128xf32>
    %8 = arith.maximumf %6, %7 : vector<32x128xf32>
    %9 = arith.truncf %8 : vector<32x128xf32> to vector<32x128xbf16>
    %c0_7 = arith.constant 0 : index
    %c0_8 = arith.constant 0 : index
    %10 = vector.load %arg5[%c0_7, %c0_8] : memref<128x128xbf16, #tpu.memory_space<vmem>>, vector<128x128xbf16>
    %cst_9 = arith.constant dense<0.000000e+00> : vector<32x128xf32>
    %11 = tpu.matmul %9, %10, %cst_9 {dimension_numbers = #tpu.dot_dimension_numbers<[1], [0], [0], [1], [0, 0, 1, 1], [], []>} : vector<32x128xbf16>, vector<128x128xbf16>, vector<32x128xf32> -> vector<32x128xf32>
    %c0_10 = arith.constant 0 : index
    %c0_11 = arith.constant 0 : index
    %12 = vector.load %arg2[%c0_10, %c0_11] : memref<32x128xf32, #tpu.memory_space<vmem>>, vector<32x128xf32>
    %cst_12 = arith.constant 0.000000e+00 : f32
    %13 = vector.broadcast %cst_12 : f32 to vector<32x128xf32>
    %14 = arith.maximumf %12, %13 : vector<32x128xf32>
    %15 = arith.truncf %14 : vector<32x128xf32> to vector<32x128xbf16>
    %c0_13 = arith.constant 0 : index
    %c0_14 = arith.constant 0 : index
    %16 = vector.load %arg6[%c0_13, %c0_14] : memref<128x128xbf16, #tpu.memory_space<vmem>>, vector<128x128xbf16>
    %cst_15 = arith.constant dense<0.000000e+00> : vector<32x128xf32>
    %17 = tpu.matmul %15, %16, %cst_15 {dimension_numbers = #tpu.dot_dimension_numbers<[1], [0], [0], [1], [0, 0, 1, 1], [], []>} : vector<32x128xbf16>, vector<128x128xbf16>, vector<32x128xf32> -> vector<32x128xf32>
    %c0_16 = arith.constant 0 : index
    %c0_17 = arith.constant 0 : index
    %18 = vector.load %arg3[%c0_16, %c0_17] : memref<32x128xf32, #tpu.memory_space<vmem>>, vector<32x128xf32>
    %cst_18 = arith.constant 0.000000e+00 : f32
    %19 = vector.broadcast %cst_18 : f32 to vector<32x128xf32>
    %20 = arith.maximumf %18, %19 : vector<32x128xf32>
    %21 = arith.truncf %20 : vector<32x128xf32> to vector<32x128xbf16>
    %c0_19 = arith.constant 0 : index
    %c0_20 = arith.constant 0 : index
    %22 = vector.load %arg7[%c0_19, %c0_20] : memref<128x128xbf16, #tpu.memory_space<vmem>>, vector<128x128xbf16>
    %cst_21 = arith.constant dense<0.000000e+00> : vector<32x128xf32>
    %23 = tpu.matmul %21, %22, %cst_21 {dimension_numbers = #tpu.dot_dimension_numbers<[1], [0], [0], [1], [0, 0, 1, 1], [], []>} : vector<32x128xbf16>, vector<128x128xbf16>, vector<32x128xf32> -> vector<32x128xf32>
    %cst_22 = arith.constant dense<0.000000e+00> : vector<128xf32>
    %24 = vector.multi_reduction <add>, %5, %cst_22 [0] : vector<32x128xf32> to vector<128xf32>
    %25 = vector.shape_cast %24 : vector<128xf32> to vector<1x128xf32>
    %cst_23 = arith.constant 0.000000e+00 : f32
    %26 = vector.broadcast %cst_23 : f32 to vector<1x128xf32>
    %27 = arith.addf %26, %25 : vector<1x128xf32>
    %cst_24 = arith.constant dense<0.000000e+00> : vector<128xf32>
    %28 = vector.multi_reduction <add>, %11, %cst_24 [0] : vector<32x128xf32> to vector<128xf32>
    %29 = vector.shape_cast %28 : vector<128xf32> to vector<1x128xf32>
    %30 = arith.addf %27, %29 : vector<1x128xf32>
    %cst_25 = arith.constant dense<0.000000e+00> : vector<128xf32>
    %31 = vector.multi_reduction <add>, %17, %cst_25 [0] : vector<32x128xf32> to vector<128xf32>
    %32 = vector.shape_cast %31 : vector<128xf32> to vector<1x128xf32>
    %33 = arith.addf %30, %32 : vector<1x128xf32>
    %cst_26 = arith.constant dense<0.000000e+00> : vector<128xf32>
    %34 = vector.multi_reduction <add>, %23, %cst_26 [0] : vector<32x128xf32> to vector<128xf32>
    %35 = vector.shape_cast %34 : vector<128xf32> to vector<1x128xf32>
    %36 = arith.addf %33, %35 : vector<1x128xf32>
    %37 = arith.mulf %5, %5 : vector<32x128xf32>
    %cst_27 = arith.constant dense<0.000000e+00> : vector<128xf32>
    %38 = vector.multi_reduction <add>, %37, %cst_27 [0] : vector<32x128xf32> to vector<128xf32>
    %39 = vector.shape_cast %38 : vector<128xf32> to vector<1x128xf32>
    %cst_28 = arith.constant 0.000000e+00 : f32
    %40 = vector.broadcast %cst_28 : f32 to vector<1x128xf32>
    %41 = arith.addf %40, %39 : vector<1x128xf32>
    %42 = arith.mulf %11, %11 : vector<32x128xf32>
    %cst_29 = arith.constant dense<0.000000e+00> : vector<128xf32>
    %43 = vector.multi_reduction <add>, %42, %cst_29 [0] : vector<32x128xf32> to vector<128xf32>
    %44 = vector.shape_cast %43 : vector<128xf32> to vector<1x128xf32>
    %45 = arith.addf %41, %44 : vector<1x128xf32>
    %46 = arith.mulf %17, %17 : vector<32x128xf32>
    %cst_30 = arith.constant dense<0.000000e+00> : vector<128xf32>
    %47 = vector.multi_reduction <add>, %46, %cst_30 [0] : vector<32x128xf32> to vector<128xf32>
    %48 = vector.shape_cast %47 : vector<128xf32> to vector<1x128xf32>
    %49 = arith.addf %45, %48 : vector<1x128xf32>
    %50 = arith.mulf %23, %23 : vector<32x128xf32>
    %cst_31 = arith.constant dense<0.000000e+00> : vector<128xf32>
    %51 = vector.multi_reduction <add>, %50, %cst_31 [0] : vector<32x128xf32> to vector<128xf32>
    %52 = vector.shape_cast %51 : vector<128xf32> to vector<1x128xf32>
    %53 = arith.addf %49, %52 : vector<1x128xf32>
    %cst_32 = arith.constant 1.280000e+02 : f32
    %54 = vector.broadcast %cst_32 : f32 to vector<1x128xf32>
    %55 = arith.divf %36, %54 : vector<1x128xf32>
    %cst_33 = arith.constant 1.280000e+02 : f32
    %56 = vector.broadcast %cst_33 : f32 to vector<1x128xf32>
    %57 = arith.divf %53, %56 : vector<1x128xf32>
    %58 = arith.mulf %55, %55 : vector<1x128xf32>
    %59 = arith.subf %57, %58 : vector<1x128xf32>
    %cst_34 = arith.constant 0.000000e+00 : f32
    %60 = vector.broadcast %cst_34 : f32 to vector<1x128xf32>
    %61 = arith.maximumf %59, %60 : vector<1x128xf32>
    %cst_35 = arith.constant 9.99999974E-6 : f32
    %62 = vector.broadcast %cst_35 : f32 to vector<1x128xf32>
    %63 = arith.addf %61, %62 : vector<1x128xf32>
    %64 = math.rsqrt %63 : vector<1x128xf32>
    %c0_36 = arith.constant 0 : index
    %c0_37 = arith.constant 0 : index
    %65 = vector.load %arg8[%c0_36, %c0_37] : memref<1x128xf32, #tpu.memory_space<vmem>>, vector<1x128xf32>
    %66 = arith.mulf %64, %65 : vector<1x128xf32>
    %c0_38 = arith.constant 0 : index
    %c0_39 = arith.constant 0 : index
    %67 = vector.load %arg9[%c0_38, %c0_39] : memref<1x128xf32, #tpu.memory_space<vmem>>, vector<1x128xf32>
    %68 = arith.mulf %55, %66 : vector<1x128xf32>
    %69 = arith.subf %67, %68 : vector<1x128xf32>
    %70 = vector.broadcast %66 : vector<1x128xf32> to vector<32x128xf32>
    %71 = arith.mulf %5, %70 : vector<32x128xf32>
    %72 = vector.broadcast %69 : vector<1x128xf32> to vector<32x128xf32>
    %73 = arith.addf %71, %72 : vector<32x128xf32>
    %c0_40 = arith.constant 0 : index
    %c0_41 = arith.constant 0 : index
    %74 = vector.load %arg10[%c0_40, %c0_41] : memref<128x128xf32, #tpu.memory_space<vmem>>, vector<32x128xf32>
    tpu.vector_store %arg10[%c0_40, %c0_41], %73 {strides = array<i32>} : memref<128x128xf32, #tpu.memory_space<vmem>>, vector<32x128xf32>,
    %75 = vector.broadcast %66 : vector<1x128xf32> to vector<32x128xf32>
    %76 = arith.mulf %11, %75 : vector<32x128xf32>
    %77 = vector.broadcast %69 : vector<1x128xf32> to vector<32x128xf32>
    %78 = arith.addf %76, %77 : vector<32x128xf32>
    %c32 = arith.constant 32 : index
    %c0_42 = arith.constant 0 : index
    %79 = vector.load %arg10[%c32, %c0_42] : memref<128x128xf32, #tpu.memory_space<vmem>>, vector<32x128xf32>
    tpu.vector_store %arg10[%c32, %c0_42], %78 {strides = array<i32>} : memref<128x128xf32, #tpu.memory_space<vmem>>, vector<32x128xf32>,
    %80 = vector.broadcast %66 : vector<1x128xf32> to vector<32x128xf32>
    %81 = arith.mulf %17, %80 : vector<32x128xf32>
    %82 = vector.broadcast %69 : vector<1x128xf32> to vector<32x128xf32>
    %83 = arith.addf %81, %82 : vector<32x128xf32>
    %c64 = arith.constant 64 : index
    %c0_43 = arith.constant 0 : index
    %84 = vector.load %arg10[%c64, %c0_43] : memref<128x128xf32, #tpu.memory_space<vmem>>, vector<32x128xf32>
    tpu.vector_store %arg10[%c64, %c0_43], %83 {strides = array<i32>} : memref<128x128xf32, #tpu.memory_space<vmem>>, vector<32x128xf32>,
    %85 = vector.broadcast %66 : vector<1x128xf32> to vector<32x128xf32>
    %86 = arith.mulf %23, %85 : vector<32x128xf32>
    %87 = vector.broadcast %69 : vector<1x128xf32> to vector<32x128xf32>
    %88 = arith.addf %86, %87 : vector<32x128xf32>
    %c96 = arith.constant 96 : index
    %c0_44 = arith.constant 0 : index
    %89 = vector.load %arg10[%c96, %c0_44] : memref<128x128xf32, #tpu.memory_space<vmem>>, vector<32x128xf32>
    tpu.vector_store %arg10[%c96, %c0_44], %88 {strides = array<i32>} : memref<128x128xf32, #tpu.memory_space<vmem>>, vector<32x128xf32>,
    return
  }
}

module attributes {stable_mosaic.version = 11 : i64} {
  func.func @_deconv_bn_kernel(%arg0: memref<128x64xf32, #tpu.memory_space<vmem>>, %arg1: memref<128x64xf32, #tpu.memory_space<vmem>>, %arg2: memref<128x64xf32, #tpu.memory_space<vmem>>, %arg3: memref<128x64xf32, #tpu.memory_space<vmem>>, %arg4: memref<64x128xbf16, #tpu.memory_space<vmem>>, %arg5: memref<64x128xbf16, #tpu.memory_space<vmem>>, %arg6: memref<64x128xbf16, #tpu.memory_space<vmem>>, %arg7: memref<64x128xbf16, #tpu.memory_space<vmem>>, %arg8: memref<1x128xf32, #tpu.memory_space<vmem>>, %arg9: memref<1x128xf32, #tpu.memory_space<vmem>>, %arg10: memref<512x128xf32, #tpu.memory_space<vmem>>) attributes {dimension_semantics = [], scalar_prefetch = 0 : i64, scratch_operands = 0 : i64, tpu.core_type = #tpu.core_type<tc>} {
    %c0 = arith.constant 0 : index
    %c0_0 = arith.constant 0 : index
    %0 = vector.load %arg0[%c0, %c0_0] : memref<128x64xf32, #tpu.memory_space<vmem>>, vector<128x64xf32>
    %cst = arith.constant 0.000000e+00 : f32
    %1 = vector.broadcast %cst : f32 to vector<128x64xf32>
    %2 = arith.maximumf %0, %1 : vector<128x64xf32>
    %3 = arith.truncf %2 : vector<128x64xf32> to vector<128x64xbf16>
    %c0_1 = arith.constant 0 : index
    %c0_2 = arith.constant 0 : index
    %4 = vector.load %arg4[%c0_1, %c0_2] : memref<64x128xbf16, #tpu.memory_space<vmem>>, vector<64x128xbf16>
    %cst_3 = arith.constant dense<0.000000e+00> : vector<128x128xf32>
    %5 = tpu.matmul %3, %4, %cst_3 {dimension_numbers = #tpu.dot_dimension_numbers<[1], [0], [0], [1], [0, 0, 1, 1], [], []>} : vector<128x64xbf16>, vector<64x128xbf16>, vector<128x128xf32> -> vector<128x128xf32>
    %c0_4 = arith.constant 0 : index
    %c0_5 = arith.constant 0 : index
    %6 = vector.load %arg1[%c0_4, %c0_5] : memref<128x64xf32, #tpu.memory_space<vmem>>, vector<128x64xf32>
    %cst_6 = arith.constant 0.000000e+00 : f32
    %7 = vector.broadcast %cst_6 : f32 to vector<128x64xf32>
    %8 = arith.maximumf %6, %7 : vector<128x64xf32>
    %9 = arith.truncf %8 : vector<128x64xf32> to vector<128x64xbf16>
    %c0_7 = arith.constant 0 : index
    %c0_8 = arith.constant 0 : index
    %10 = vector.load %arg5[%c0_7, %c0_8] : memref<64x128xbf16, #tpu.memory_space<vmem>>, vector<64x128xbf16>
    %cst_9 = arith.constant dense<0.000000e+00> : vector<128x128xf32>
    %11 = tpu.matmul %9, %10, %cst_9 {dimension_numbers = #tpu.dot_dimension_numbers<[1], [0], [0], [1], [0, 0, 1, 1], [], []>} : vector<128x64xbf16>, vector<64x128xbf16>, vector<128x128xf32> -> vector<128x128xf32>
    %c0_10 = arith.constant 0 : index
    %c0_11 = arith.constant 0 : index
    %12 = vector.load %arg2[%c0_10, %c0_11] : memref<128x64xf32, #tpu.memory_space<vmem>>, vector<128x64xf32>
    %cst_12 = arith.constant 0.000000e+00 : f32
    %13 = vector.broadcast %cst_12 : f32 to vector<128x64xf32>
    %14 = arith.maximumf %12, %13 : vector<128x64xf32>
    %15 = arith.truncf %14 : vector<128x64xf32> to vector<128x64xbf16>
    %c0_13 = arith.constant 0 : index
    %c0_14 = arith.constant 0 : index
    %16 = vector.load %arg6[%c0_13, %c0_14] : memref<64x128xbf16, #tpu.memory_space<vmem>>, vector<64x128xbf16>
    %cst_15 = arith.constant dense<0.000000e+00> : vector<128x128xf32>
    %17 = tpu.matmul %15, %16, %cst_15 {dimension_numbers = #tpu.dot_dimension_numbers<[1], [0], [0], [1], [0, 0, 1, 1], [], []>} : vector<128x64xbf16>, vector<64x128xbf16>, vector<128x128xf32> -> vector<128x128xf32>
    %c0_16 = arith.constant 0 : index
    %c0_17 = arith.constant 0 : index
    %18 = vector.load %arg3[%c0_16, %c0_17] : memref<128x64xf32, #tpu.memory_space<vmem>>, vector<128x64xf32>
    %cst_18 = arith.constant 0.000000e+00 : f32
    %19 = vector.broadcast %cst_18 : f32 to vector<128x64xf32>
    %20 = arith.maximumf %18, %19 : vector<128x64xf32>
    %21 = arith.truncf %20 : vector<128x64xf32> to vector<128x64xbf16>
    %c0_19 = arith.constant 0 : index
    %c0_20 = arith.constant 0 : index
    %22 = vector.load %arg7[%c0_19, %c0_20] : memref<64x128xbf16, #tpu.memory_space<vmem>>, vector<64x128xbf16>
    %cst_21 = arith.constant dense<0.000000e+00> : vector<128x128xf32>
    %23 = tpu.matmul %21, %22, %cst_21 {dimension_numbers = #tpu.dot_dimension_numbers<[1], [0], [0], [1], [0, 0, 1, 1], [], []>} : vector<128x64xbf16>, vector<64x128xbf16>, vector<128x128xf32> -> vector<128x128xf32>
    %cst_22 = arith.constant dense<0.000000e+00> : vector<128xf32>
    %24 = vector.multi_reduction <add>, %5, %cst_22 [0] : vector<128x128xf32> to vector<128xf32>
    %25 = vector.shape_cast %24 : vector<128xf32> to vector<1x128xf32>
    %cst_23 = arith.constant 0.000000e+00 : f32
    %26 = vector.broadcast %cst_23 : f32 to vector<1x128xf32>
    %27 = arith.addf %26, %25 : vector<1x128xf32>
    %cst_24 = arith.constant dense<0.000000e+00> : vector<128xf32>
    %28 = vector.multi_reduction <add>, %11, %cst_24 [0] : vector<128x128xf32> to vector<128xf32>
    %29 = vector.shape_cast %28 : vector<128xf32> to vector<1x128xf32>
    %30 = arith.addf %27, %29 : vector<1x128xf32>
    %cst_25 = arith.constant dense<0.000000e+00> : vector<128xf32>
    %31 = vector.multi_reduction <add>, %17, %cst_25 [0] : vector<128x128xf32> to vector<128xf32>
    %32 = vector.shape_cast %31 : vector<128xf32> to vector<1x128xf32>
    %33 = arith.addf %30, %32 : vector<1x128xf32>
    %cst_26 = arith.constant dense<0.000000e+00> : vector<128xf32>
    %34 = vector.multi_reduction <add>, %23, %cst_26 [0] : vector<128x128xf32> to vector<128xf32>
    %35 = vector.shape_cast %34 : vector<128xf32> to vector<1x128xf32>
    %36 = arith.addf %33, %35 : vector<1x128xf32>
    %37 = arith.mulf %5, %5 : vector<128x128xf32>
    %cst_27 = arith.constant dense<0.000000e+00> : vector<128xf32>
    %38 = vector.multi_reduction <add>, %37, %cst_27 [0] : vector<128x128xf32> to vector<128xf32>
    %39 = vector.shape_cast %38 : vector<128xf32> to vector<1x128xf32>
    %cst_28 = arith.constant 0.000000e+00 : f32
    %40 = vector.broadcast %cst_28 : f32 to vector<1x128xf32>
    %41 = arith.addf %40, %39 : vector<1x128xf32>
    %42 = arith.mulf %11, %11 : vector<128x128xf32>
    %cst_29 = arith.constant dense<0.000000e+00> : vector<128xf32>
    %43 = vector.multi_reduction <add>, %42, %cst_29 [0] : vector<128x128xf32> to vector<128xf32>
    %44 = vector.shape_cast %43 : vector<128xf32> to vector<1x128xf32>
    %45 = arith.addf %41, %44 : vector<1x128xf32>
    %46 = arith.mulf %17, %17 : vector<128x128xf32>
    %cst_30 = arith.constant dense<0.000000e+00> : vector<128xf32>
    %47 = vector.multi_reduction <add>, %46, %cst_30 [0] : vector<128x128xf32> to vector<128xf32>
    %48 = vector.shape_cast %47 : vector<128xf32> to vector<1x128xf32>
    %49 = arith.addf %45, %48 : vector<1x128xf32>
    %50 = arith.mulf %23, %23 : vector<128x128xf32>
    %cst_31 = arith.constant dense<0.000000e+00> : vector<128xf32>
    %51 = vector.multi_reduction <add>, %50, %cst_31 [0] : vector<128x128xf32> to vector<128xf32>
    %52 = vector.shape_cast %51 : vector<128xf32> to vector<1x128xf32>
    %53 = arith.addf %49, %52 : vector<1x128xf32>
    %cst_32 = arith.constant 5.120000e+02 : f32
    %54 = vector.broadcast %cst_32 : f32 to vector<1x128xf32>
    %55 = arith.divf %36, %54 : vector<1x128xf32>
    %cst_33 = arith.constant 5.120000e+02 : f32
    %56 = vector.broadcast %cst_33 : f32 to vector<1x128xf32>
    %57 = arith.divf %53, %56 : vector<1x128xf32>
    %58 = arith.mulf %55, %55 : vector<1x128xf32>
    %59 = arith.subf %57, %58 : vector<1x128xf32>
    %cst_34 = arith.constant 0.000000e+00 : f32
    %60 = vector.broadcast %cst_34 : f32 to vector<1x128xf32>
    %61 = arith.maximumf %59, %60 : vector<1x128xf32>
    %cst_35 = arith.constant 9.99999974E-6 : f32
    %62 = vector.broadcast %cst_35 : f32 to vector<1x128xf32>
    %63 = arith.addf %61, %62 : vector<1x128xf32>
    %64 = math.rsqrt %63 : vector<1x128xf32>
    %c0_36 = arith.constant 0 : index
    %c0_37 = arith.constant 0 : index
    %65 = vector.load %arg8[%c0_36, %c0_37] : memref<1x128xf32, #tpu.memory_space<vmem>>, vector<1x128xf32>
    %66 = arith.mulf %64, %65 : vector<1x128xf32>
    %c0_38 = arith.constant 0 : index
    %c0_39 = arith.constant 0 : index
    %67 = vector.load %arg9[%c0_38, %c0_39] : memref<1x128xf32, #tpu.memory_space<vmem>>, vector<1x128xf32>
    %68 = arith.mulf %55, %66 : vector<1x128xf32>
    %69 = arith.subf %67, %68 : vector<1x128xf32>
    %70 = vector.broadcast %66 : vector<1x128xf32> to vector<128x128xf32>
    %71 = arith.mulf %5, %70 : vector<128x128xf32>
    %72 = vector.broadcast %69 : vector<1x128xf32> to vector<128x128xf32>
    %73 = arith.addf %71, %72 : vector<128x128xf32>
    %c0_40 = arith.constant 0 : index
    %c0_41 = arith.constant 0 : index
    %74 = vector.load %arg10[%c0_40, %c0_41] : memref<512x128xf32, #tpu.memory_space<vmem>>, vector<128x128xf32>
    tpu.vector_store %arg10[%c0_40, %c0_41], %73 {strides = array<i32>} : memref<512x128xf32, #tpu.memory_space<vmem>>, vector<128x128xf32>,
    %75 = vector.broadcast %66 : vector<1x128xf32> to vector<128x128xf32>
    %76 = arith.mulf %11, %75 : vector<128x128xf32>
    %77 = vector.broadcast %69 : vector<1x128xf32> to vector<128x128xf32>
    %78 = arith.addf %76, %77 : vector<128x128xf32>
    %c128 = arith.constant 128 : index
    %c0_42 = arith.constant 0 : index
    %79 = vector.load %arg10[%c128, %c0_42] : memref<512x128xf32, #tpu.memory_space<vmem>>, vector<128x128xf32>
    tpu.vector_store %arg10[%c128, %c0_42], %78 {strides = array<i32>} : memref<512x128xf32, #tpu.memory_space<vmem>>, vector<128x128xf32>,
    %80 = vector.broadcast %66 : vector<1x128xf32> to vector<128x128xf32>
    %81 = arith.mulf %17, %80 : vector<128x128xf32>
    %82 = vector.broadcast %69 : vector<1x128xf32> to vector<128x128xf32>
    %83 = arith.addf %81, %82 : vector<128x128xf32>
    %c256 = arith.constant 256 : index
    %c0_43 = arith.constant 0 : index
    %84 = vector.load %arg10[%c256, %c0_43] : memref<512x128xf32, #tpu.memory_space<vmem>>, vector<128x128xf32>
    tpu.vector_store %arg10[%c256, %c0_43], %83 {strides = array<i32>} : memref<512x128xf32, #tpu.memory_space<vmem>>, vector<128x128xf32>,
    %85 = vector.broadcast %66 : vector<1x128xf32> to vector<128x128xf32>
    %86 = arith.mulf %23, %85 : vector<128x128xf32>
    %87 = vector.broadcast %69 : vector<1x128xf32> to vector<128x128xf32>
    %88 = arith.addf %86, %87 : vector<128x128xf32>
    %c384 = arith.constant 384 : index
    %c0_44 = arith.constant 0 : index
    %89 = vector.load %arg10[%c384, %c0_44] : memref<512x128xf32, #tpu.memory_space<vmem>>, vector<128x128xf32>
    tpu.vector_store %arg10[%c384, %c0_44], %88 {strides = array<i32>} : memref<512x128xf32, #tpu.memory_space<vmem>>, vector<128x128xf32>,
    return
  }
}

</mosaic_0001>

<bundles_post_ra>
// kernel: vqvae_forward.4
= control target key start
LH: loop header
LB: loop body
LE: loop exit
PB: predicated region body
PF: predicated region fallthrough
CT: control target
= control target key end

     0   :  { %vm82_vm0 = vcmask 392192   ;;  %s665_s1 = inlined_call_operand.vmem [shape: bf16[48,128], index: 1, kind: input, shape index: {}]   ;;  %s666_s0 = inlined_call_operand.vmem [shape: f32[128,48], index: 0, kind: input, shape index: {}]   ;;  %s667_s2 = inlined_call_operand.vmem [shape: f32[1,128], index: 2, kind: input, shape index: {}]   ;;  %s668_s3 = inlined_call_operand.vmem [shape: f32[1,128], index: 3, kind: input, shape index: {}]   ;;  %s669_s4 = inlined_call_operand.vmem [shape: f32[128,128], index: 4, kind: output, shape index: {}]  }
   0x1   :  { %v420_v0 = vld [vmem:[%s665_s1] sm:$0xff]   ;;  %v421_v1 = vld [vmem:[%s665_s1 + $0x8] sm:$0xff]   ;;  %v422_v2 = vld [vmem:[%s665_s1 + $0x10] sm:$0xff]  }
   0x2   :  { %392 = vmatprep.subr.bf16.mxu0 %v420_v0  ;;  %414 = vmatprep.subr.bf16.mxu1 %v420_v0  ;;  %v18_v3 = vld [vmem:[%s666_s0] sm:$0xff]  ;;  %v19_v4 = vld [vmem:[%s666_s0 + $0x8] sm:$0xff]  ;;  %v20_v5 = vld [vmem:[%s666_s0 + $0x10] sm:$0xff] }
   0x3   :  { %393 = vmatpush3.bf16.msra.mxu0 %v420_v0  ;;  %417 = vmatpush3.bf16.msra.mxu1 %v420_v0  ;;  %v34_v6 = vmax.f32 %v18_v3, 0.0  ;;  %v35_v7 = vmax.f32 %v19_v4, 0.0  ;;  %v21_v8 = vld [vmem:[%s666_s0 + $0x18] sm:$0xff]  ;;  %v22_v9 = vld [vmem:[%s666_s0 + $0x20] sm:$0xff]  ;;  %v23_v10 = vld [vmem:[%s666_s0 + $0x28] sm:$0xff]  ;;  %v36_v13 = vmax.f32 %v20_v5, 0.0 }
   0x4   :  { %394 = vmatprep.subr.bf16.mxu0 %v421_v1  ;;  %415 = vmatprep.subr.bf16.mxu1 %v421_v1  ;;  %v26_v11 = vld [vmem:[%s666_s0 + $0x40] sm:$0xff]  ;;  %v37_v14 = vmax.f32 %v21_v8, 0.0  ;;  %v27_v15 = vld [vmem:[%s666_s0 + $0x48] sm:$0xff]  ;;  %v28_v17 = vld [vmem:[%s666_s0 + $0x50] sm:$0xff]  ;;  %v38_v19 = vmax.f32 %v22_v9, 0.0  ;;  %v39_v20 = vmax.f32 %v23_v10, 0.0 }
   0x5   :  { %v50_v12 = vpack.c.bf16 %v35_v7, %v34_v6  ;;  %v42_v16 = vmax.f32 %v26_v11, 0.0  ;;  %v29_v18 = vld [vmem:[%s666_s0 + $0x58] sm:$0xff]  ;;  %v43_v21 = vmax.f32 %v27_v15, 0.0  ;;  %v44_v22 = vmax.f32 %v28_v17, 0.0  ;;  %v30_v23 = vld [vmem:[%s666_s0 + $0x60] sm:$0xff]  ;;  %v31_v24 = vld [vmem:[%s666_s0 + $0x68] sm:$0xff] }
   0x6   :  { %v45_v25 = vmax.f32 %v29_v18, 0.0  ;;  %v46_v26 = vmax.f32 %v30_v23, 0.0  ;;  %v47_v27 = vmax.f32 %v31_v24, 0.0  ;;  %v51_v29 = vpack.c.bf16 %v37_v14, %v36_v13  ;;  %v24_v30 = vld [vmem:[%s666_s0 + $0x30] sm:$0xff]  ;;  %v25_v33 = vld [vmem:[%s666_s0 + $0x38] sm:$0xff] }
   0x7   :  { %395 = vmatpush3.bf16.msra.mxu0 %v421_v1  ;;  %418 = vmatpush3.bf16.msra.mxu1 %v421_v1  ;;  %v54_v28 = vpack.c.bf16 %v43_v21, %v42_v16  ;;  %v52_v32 = vpack.c.bf16 %v39_v20, %v38_v19  ;;  %v32_v35 = vld [vmem:[%s666_s0 + $0x70] sm:$0xff]  ;;  %v33_v36 = vld [vmem:[%s666_s0 + $0x78] sm:$0xff]  ;;  %v40_v37 = vmax.f32 %v24_v30, 0.0  ;;  %v41_v38 = vmax.f32 %v25_v33, 0.0 }
   0x8   :  { %396 = vmatprep.subr.bf16.mxu0 %v422_v2  ;;  %398 = vmatprep.mubr.msk.bf16.mxu0 %vm82_vm0, %v50_v12  ;;  %v55_v31 = vpack.c.bf16 %v45_v25, %v44_v22  ;;  %v56_v34 = vpack.c.bf16 %v47_v27, %v46_v26  ;;  %v48_v39 = vmax.f32 %v32_v35, 0.0  ;;  %v49_v40 = vmax.f32 %v33_v36, 0.0 }
   0x9   :  { %416 = vmatprep.subr.bf16.mxu1 %v422_v2  ;;  %406 = vmatprep.mubr.msk.bf16.mxu1 %vm82_vm0, %v54_v28  ;;  %v53_v41 = vpack.c.bf16 %v41_v38, %v40_v37 }
   0xa   :  { %v57_v42 = vpack.c.bf16 %v49_v40, %v48_v39 }
   0xb   :  { %397 = vmatpush3.bf16.msra.mxu0 %v422_v2  ;;  %419 = vmatpush3.bf16.msra.mxu1 %v422_v2 }
   0xe   :  { %399 = vmatmul.mubr.msk.bf16.vlgmr.msra.gmra.mrb[0].mxu0 %vm82_vm0, %v51_v29  ;;  %407 = vmatmul.mubr.msk.bf16.vlgmr.msra.gmra.mrb[0].mxu1 %vm82_vm0, %v55_v31 }
   0xf   :  { %402 = vmatprep.mubr.msk.bf16.mxu0 %vm82_vm0, %v52_v32  ;;  %410 = vmatprep.mubr.msk.bf16.mxu1 %vm82_vm0, %v56_v34 }
  0x16   :  { %403 = vmatmul.mubr.msk.bf16.gmra.mrb[4].mxu0 %vm82_vm0, %v53_v41  ;;  %411 = vmatmul.mubr.msk.bf16.gmra.mrb[4].mxu1 %vm82_vm0, %v57_v42 }
  0xe1   :  { %v515_v43 = vpop.f32.mrb[0].mxu0  ;;  %v517_v44 = vpop.f32.mrb[0].mxu1 }
  0xe2   :  { %v519_v45 = vpop.f32.mrb[1].mxu0  ;;  %v521_v46 = vpop.f32.mrb[1].mxu1  ;;  %v231_v54 = vmul.f32 %v515_v43, %v515_v43  ;;  %v239_v22 = vmul.f32 %v517_v44, %v517_v44 }
  0xe3   :  { %v523_v47 = vpop.f32.mrb[2].mxu0  ;;  %v525_v48 = vpop.f32.mrb[2].mxu1  ;;  %v229_v51 = vmul.f32 %v519_v45, %v519_v45  ;;  %v237_v16 = vmul.f32 %v521_v46, %v521_v46 }
  0xe4   :  { %v527_v49 = vpop.f32.mrb[3].mxu0  ;;  %v529_v50 = vpop.f32.mrb[3].mxu1  ;;  %v232_v57 = vmul.f32 %v523_v47, %v523_v47  ;;  %v240_v25 = vmul.f32 %v525_v48, %v525_v48 }
  0xe5   :  { %v206_v52 = vadd.f32 %v527_v49, %v519_v45  ;;  %v230_v53 = vmul.f32 %v527_v49, %v527_v49  ;;  %v238_v21 = vmul.f32 %v529_v50, %v529_v50 }
  0xe7   :  { %v207_v55 = vadd.f32 %v515_v43, %v206_v52  ;;  %v245_v56 = vadd.f32 %v230_v53, %v229_v51 }
  0xe9   :  { %v246_v58 = vadd.f32 %v245_v56, %v231_v54  ;;  %v542_v59 = vpop.f32.mrb[4].mxu0  ;;  %v208_v60 = vadd.f32 %v523_v47, %v207_v55  ;;  %v545_v61 = vpop.f32.mrb[4].mxu1 }
  0xea   :  { %v547_v62 = vpop.f32.mrb[5].mxu0  ;;  %v549_v63 = vpop.f32.mrb[5].mxu1  ;;  %v235_v10 = vmul.f32 %v542_v59, %v542_v59  ;;  %v243_v34 = vmul.f32 %v545_v61, %v545_v61 }
  0xeb   :  { %v209_v0 = vadd.f32 %v208_v60, %v547_v62  ;;  %v233_v1 = vmul.f32 %v547_v62, %v547_v62  ;;  %v247_v2 = vadd.f32 %v246_v58, %v232_v57  ;;  %v554_v3 = vpop.f32.mrb[6].mxu0  ;;  %v556_v4 = vpop.f32.mrb[6].mxu1  ;;  %v241_v28 = vmul.f32 %v549_v63, %v549_v63 }
  0xec   :  { %v558_v5 = vpop.f32.mrb[7].mxu0  ;;  %v560_v6 = vpop.f32.mrb[7].mxu1  ;;  %v236_v13 = vmul.f32 %v554_v3, %v554_v3  ;;  %v244_v37 = vmul.f32 %v556_v4, %v556_v4 }
  0xed   :  { %v248_v7 = vadd.f32 %v247_v2, %v233_v1  ;;  %v210_v8 = vadd.f32 %v209_v0, %v558_v5  ;;  %v234_v9 = vmul.f32 %v558_v5, %v558_v5  ;;  %v242_v33 = vmul.f32 %v560_v6, %v560_v6 }
  0xef   :  { %v211_v11 = vadd.f32 %v542_v59, %v210_v8  ;;  %v249_v12 = vadd.f32 %v248_v7, %v234_v9 }
  0xf1   :  { %v250_v14 = vadd.f32 %v249_v12, %v235_v10  ;;  %v212_v15 = vadd.f32 %v554_v3, %v211_v11 }
  0xf3   :  { %v213_v17 = vadd.f32 %v212_v15, %v521_v46  ;;  %v251_v18 = vadd.f32 %v250_v14, %v236_v13 }
  0xf5   :  { %v252_v19 = vadd.f32 %v251_v18, %v237_v16  ;;  %v214_v20 = vadd.f32 %v213_v17, %v529_v50 }
  0xf7   :  { %v215_v23 = vadd.f32 %v517_v44, %v214_v20  ;;  %v253_v24 = vadd.f32 %v252_v19, %v238_v21 }
  0xf9   :  { %v254_v26 = vadd.f32 %v253_v24, %v239_v22  ;;  %v216_v27 = vadd.f32 %v525_v48, %v215_v23 }
  0xfb   :  { %v217_v29 = vadd.f32 %v216_v27, %v549_v63  ;;  %v255_v30 = vadd.f32 %v254_v26, %v240_v25 }
  0xfd   :  { %v256_v31 = vadd.f32 %v255_v30, %v241_v28  ;;  %v218_v32 = vadd.f32 %v217_v29, %v560_v6 }
  0xff   :  { %v219_v35 = vadd.f32 %v545_v61, %v218_v32  ;;  %v257_v36 = vadd.f32 %v256_v31, %v242_v33  ;;  %v380_v33 = vld [vmem:[%s668_s3] ss:$0 sm:$0xff] }
 0x101   :  { %v220_v38 = vadd.f32 %v556_v4, %v219_v35  ;;  %v258_v39 = vadd.f32 %v257_v36, %v243_v34 }
 0x103   :  { %v221_v40 = vrot.slane %v220_v38, 4  ;;  %v259_v41 = vadd.f32 %v258_v39, %v244_v37 }
 0x105   :  { %v222_v42 = vadd.f32 %v221_v40, %v220_v38  ;;  %v260_v51 = vrot.slane %v259_v41, 4 }
 0x107   :  { %v223_v52 = vrot.slane %v222_v42, 2  ;;  %v261_v53 = vadd.f32 %v260_v51, %v259_v41 }
 0x109   :  { %v224_v54 = vadd.f32 %v223_v52, %v222_v42  ;;  %v262_v55 = vrot.slane %v261_v53, 2 }
 0x10b   :  { %v225_v56 = vrot.slane %v224_v54, 1  ;;  %v263_v57 = vadd.f32 %v262_v55, %v261_v53 }
 0x10d   :  { %v226_v58 = vadd.f32 %v225_v56, %v224_v54  ;;  %v264_v60 = vrot.slane %v263_v57, 1 }
 0x10f   :  { %v228_v0 = vmul.f32 0.0078125, %v226_v58  ;;  %v265_v1 = vadd.f32 %v264_v60, %v263_v57 }
 0x111   :  { %v266_v2 = vmul.f32 0.0078125, %v265_v1  ;;  %v267_v7 = vmul.f32 %v228_v0, %v228_v0  ;;  %v270_v8 = vsub.f32 %v519_v45, %v228_v0  ;;  %v271_v9 = vsub.f32 %v527_v49, %v228_v0 }
 0x112   :  { %v272_v10 = vsub.f32 %v515_v43, %v228_v0  ;;  %v273_v11 = vsub.f32 %v523_v47, %v228_v0  ;;  %v274_v12 = vsub.f32 %v547_v62, %v228_v0  ;;  %v275_v13 = vsub.f32 %v558_v5, %v228_v0 }
 0x113   :  { %v268_v14 = vsub.f32 %v266_v2, %v267_v7  ;;  %v276_v15 = vsub.f32 %v542_v59, %v228_v0  ;;  %v277_v16 = vsub.f32 %v554_v3, %v228_v0  ;;  %v278_v17 = vsub.f32 %v521_v46, %v228_v0 }
 0x114   :  { %v279_v18 = vsub.f32 %v529_v50, %v228_v0  ;;  %v280_v45 = vsub.f32 %v517_v44, %v228_v0  ;;  %v281_v49 = vsub.f32 %v525_v48, %v228_v0  ;;  %v282_v43 = vsub.f32 %v549_v63, %v228_v0  ;;  %v379_v44 = vld [vmem:[%s667_s2] ss:$0 sm:$0xff] }
 0x115   :  { %v269_v47 = vmax.f32 %v268_v14, 0.0  ;;  %v283_v62 = vsub.f32 %v560_v6, %v228_v0  ;;  %v284_v5 = vsub.f32 %v545_v61, %v228_v0  ;;  %v285_v19 = vsub.f32 %v556_v4, %v228_v0 }
 0x117   :  { %v286_v59 = vadd.f32 1e-05, %v269_v47 }
 0x119   :  { %423 = vrsqrt.f32 %v286_v59 }
 0x123   :  { %v424_v3 = vpop.eup %423 }
 0x124   :  { %v288_v20 = vmul.f32 %v424_v3, %v270_v8  ;;  %v289_v46 = vmul.f32 %v424_v3, %v271_v9  ;;  %v290_v21 = vmul.f32 %v424_v3, %v272_v10  ;;  %v291_v50 = vmul.f32 %v424_v3, %v273_v11 }
 0x125   :  { %v292_v48 = vmul.f32 %v424_v3, %v274_v12  ;;  %v293_v63 = vmul.f32 %v424_v3, %v275_v13  ;;  %v294_v22 = vmul.f32 %v424_v3, %v276_v15  ;;  %v295_v23 = vmul.f32 %v424_v3, %v277_v16 }
 0x126   :  { %v296_v6 = vmul.f32 %v424_v3, %v278_v17  ;;  %v297_v24 = vmul.f32 %v424_v3, %v279_v18  ;;  %v298_v61 = vmul.f32 %v424_v3, %v280_v45  ;;  %v299_v25 = vmul.f32 %v424_v3, %v281_v49 }
 0x127   :  { %v300_v4 = vmul.f32 %v424_v3, %v282_v43  ;;  %v301_v26 = vmul.f32 %v424_v3, %v283_v62  ;;  %v302_v27 = vmul.f32 %v424_v3, %v284_v5  ;;  %v303_v28 = vmul.f32 %v424_v3, %v285_v19 }
 0x128   :  { %v310_v29 = vmul.f32 %v379_v44, %v288_v20  ;;  %v311_v30 = vmul.f32 %v379_v44, %v289_v46  ;;  %v312_v31 = vmul.f32 %v379_v44, %v290_v21  ;;  %v313_v32 = vmul.f32 %v379_v44, %v291_v50 }
 0x129   :  { %v314_v34 = vmul.f32 %v379_v44, %v292_v48  ;;  %v315_v35 = vmul.f32 %v379_v44, %v293_v63  ;;  %v316_v36 = vmul.f32 %v379_v44, %v294_v22  ;;  %v317_v37 = vmul.f32 %v379_v44, %v295_v23 }
 0x12a   :  { %v318_v38 = vmul.f32 %v379_v44, %v296_v6  ;;  %v319_v39 = vmul.f32 %v379_v44, %v297_v24  ;;  %v320_v40 = vmul.f32 %v379_v44, %v298_v61  ;;  %v321_v41 = vmul.f32 %v379_v44, %v299_v25 }
 0x12b   :  { %v322_v42 = vmul.f32 %v379_v44, %v300_v4  ;;  %v323_v51 = vmul.f32 %v379_v44, %v301_v26  ;;  %v324_v52 = vmul.f32 %v379_v44, %v302_v27  ;;  %v325_v53 = vmul.f32 %v379_v44, %v303_v28 }
 0x12c   :  { %v332_v54 = vadd.f32 %v380_v33, %v310_v29  ;;  %v333_v55 = vadd.f32 %v380_v33, %v311_v30  ;;  %v334_v56 = vadd.f32 %v380_v33, %v312_v31  ;;  %v335_v57 = vadd.f32 %v380_v33, %v313_v32 }
 0x12d   :  { %v336_v58 = vadd.f32 %v380_v33, %v314_v34  ;;  %v337_v60 = vadd.f32 %v380_v33, %v315_v35  ;;  %v338_v0 = vadd.f32 %v380_v33, %v316_v36  ;;  %v339_v1 = vadd.f32 %v380_v33, %v317_v37 }
 0x12e   :  { %v340_v2 = vadd.f32 %v380_v33, %v318_v38  ;;  %v341_v7 = vadd.f32 %v380_v33, %v319_v39  ;;  %v342_v8 = vadd.f32 %v380_v33, %v320_v40  ;;  %v343_v9 = vadd.f32 %v380_v33, %v321_v41  ;;  %348 = vst [vmem:[%s669_s4] sm:$0xff] %v332_v54 }
 0x12f   :  { %349 = vst [vmem:[%s669_s4 + $0x8] sm:$0xff] %v333_v55  ;;  %350 = vst [vmem:[%s669_s4 + $0x10] sm:$0xff] %v334_v56  ;;  %v344_v10 = vadd.f32 %v380_v33, %v322_v42  ;;  %v345_v11 = vadd.f32 %v380_v33, %v323_v51  ;;  %v346_v12 = vadd.f32 %v380_v33, %v324_v52 }
 0x130   :  { %351 = vst [vmem:[%s669_s4 + $0x18] sm:$0xff] %v335_v57  ;;  %v347_v13 = vadd.f32 %v380_v33, %v325_v53  ;;  %352 = vst [vmem:[%s669_s4 + $0x20] sm:$0xff] %v336_v58 }
 0x131   :  { %353 = vst [vmem:[%s669_s4 + $0x28] sm:$0xff] %v337_v60  ;;  %354 = vst [vmem:[%s669_s4 + $0x30] sm:$0xff] %v338_v0 }
 0x132   :  { %355 = vst [vmem:[%s669_s4 + $0x38] sm:$0xff] %v339_v1  ;;  %356 = vst [vmem:[%s669_s4 + $0x40] sm:$0xff] %v340_v2 }
 0x133   :  { %357 = vst [vmem:[%s669_s4 + $0x48] sm:$0xff] %v341_v7  ;;  %358 = vst [vmem:[%s669_s4 + $0x50] sm:$0xff] %v342_v8 }
 0x134   :  { %359 = vst [vmem:[%s669_s4 + $0x58] sm:$0xff] %v343_v9  ;;  %360 = vst [vmem:[%s669_s4 + $0x60] sm:$0xff] %v344_v10 }
 0x135   :  { %361 = vst [vmem:[%s669_s4 + $0x68] sm:$0xff] %v345_v11  ;;  %362 = vst [vmem:[%s669_s4 + $0x70] sm:$0xff] %v346_v12 }
 0x136   :  { %363 = vst [vmem:[%s669_s4 + $0x78] sm:$0xff] %v347_v13 }

// kernel: vqvae_forward.6
= control target key start
LH: loop header
LB: loop body
LE: loop exit
PB: predicated region body
PF: predicated region fallthrough
CT: control target
= control target key end

     0   :  { %s1234_s4 = inlined_call_operand.vmem [shape: bf16[128,128], index: 4, kind: input, shape index: {}]   ;;  %s1235_s5 = inlined_call_operand.vmem [shape: bf16[128,128], index: 5, kind: input, shape index: {}]   ;;  %s1236_s0 = inlined_call_operand.vmem [shape: f32[32,128], index: 0, kind: input, shape index: {}]   ;;  %s1237_s1 = inlined_call_operand.vmem [shape: f32[32,128], index: 1, kind: input, shape index: {}]   ;;  %s1238_s6 = inlined_call_operand.vmem [shape: bf16[128,128], index: 6, kind: input, shape index: {}]   ;;  %s1239_s7 = inlined_call_operand.vmem [shape: bf16[128,128], index: 7, kind: input, shape index: {}]   ;;  %s1240_s2 = inlined_call_operand.vmem [shape: f32[32,128], index: 2, kind: input, shape index: {}]   ;;  %s1241_s3 = inlined_call_operand.vmem [shape: f32[32,128], index: 3, kind: input, shape index: {}]   ;;  %s1242_s8 = inlined_call_operand.vmem [shape: f32[1,128], index: 8, kind: input, shape index: {}]   ;;  %s1243_s9 = inlined_call_operand.vmem [shape: f32[1,128], index: 9, kind: input, shape index: {}]   ;;  %s1244_s10 = inlined_call_operand.vmem [shape: f32[128,128], index: 10, kind: output, shape index: {}]  }
   0x1   :  { %v851_v0 = vld [vmem:[%s1234_s4] sm:$0xff]   ;;  %v853_v2 = vld [vmem:[%s1234_s4 + $0x8] sm:$0xff]   ;;  %v855_v4 = vld [vmem:[%s1234_s4 + $0x10] sm:$0xff]  }
   0x2   :  { %v852_v1 = vld [vmem:[%s1235_s5] sm:$0xff]   ;;  %771 = vmatprep.subr.bf16.mxu0 %v851_v0  ;;  %v854_v3 = vld [vmem:[%s1235_s5 + $0x8] sm:$0xff]   ;;  %v856_v5 = vld [vmem:[%s1235_s5 + $0x10] sm:$0xff]  }
   0x3   :  { %791 = vmatprep.subr.bf16.mxu1 %v852_v1  ;;  %772 = vmatpush3.bf16.msra.mxu0 %v851_v0  ;;  %v857_v6 = vld [vmem:[%s1234_s4 + $0x18] sm:$0xff]   ;;  %v859_v8 = vld [vmem:[%s1234_s4 + $0x20] sm:$0xff]   ;;  %v861_v10 = vld [vmem:[%s1234_s4 + $0x28] sm:$0xff]  }
   0x4   :  { %792 = vmatpush3.bf16.msra.mxu1 %v852_v1  ;;  %773 = vmatprep.subr.bf16.mxu0 %v853_v2  ;;  %v858_v7 = vld [vmem:[%s1235_s5 + $0x18] sm:$0xff]   ;;  %v860_v9 = vld [vmem:[%s1235_s5 + $0x20] sm:$0xff]   ;;  %v37_v12 = vld [vmem:[%s1236_s0 + $0x8] sm:$0xff] }
   0x5   :  { %793 = vmatprep.subr.bf16.mxu1 %v854_v3  ;;  %v36_v11 = vld [vmem:[%s1236_s0] sm:$0xff]  ;;  %v862_v14 = vld [vmem:[%s1235_s5 + $0x28] sm:$0xff]   ;;  %v41_v16 = vmax.f32 %v37_v12, 0.0  ;;  %v863_v20 = vld [vmem:[%s1234_s4 + $0x30] sm:$0xff]  }
   0x6   :  { %v159_v13 = vld [vmem:[%s1237_s1] sm:$0xff]  ;;  %v40_v15 = vmax.f32 %v36_v11, 0.0  ;;  %v160_v17 = vld [vmem:[%s1237_s1 + $0x8] sm:$0xff]  ;;  %v864_v22 = vld [vmem:[%s1235_s5 + $0x30] sm:$0xff]  }
   0x7   :  { %774 = vmatpush3.bf16.msra.mxu0 %v853_v2  ;;  %v163_v18 = vmax.f32 %v159_v13, 0.0  ;;  %v164_v19 = vmax.f32 %v160_v17, 0.0  ;;  %v38_v24 = vld [vmem:[%s1236_s0 + $0x10] sm:$0xff]  ;;  %v865_v25 = vld [vmem:[%s1234_s4 + $0x38] sm:$0xff]   ;;  %v867_v34 = vld [vmem:[%s1238_s6] sm:$0xff]  }
   0x8   :  { %794 = vmatpush3.bf16.msra.mxu1 %v854_v3  ;;  %775 = vmatprep.subr.bf16.mxu0 %v855_v4  ;;  %v44_v21 = vpack.c.bf16 %v41_v16, %v40_v15  ;;  %v39_v26 = vld [vmem:[%s1236_s0 + $0x18] sm:$0xff]  ;;  %v161_v27 = vld [vmem:[%s1237_s1 + $0x10] sm:$0xff]  ;;  %v42_v30 = vmax.f32 %v38_v24, 0.0  ;;  %v868_v35 = vld [vmem:[%s1239_s7] sm:$0xff]  }
   0x9   :  { %795 = vmatprep.subr.bf16.mxu1 %v856_v5  ;;  %v167_v23 = vpack.c.bf16 %v164_v19, %v163_v18  ;;  %v162_v28 = vld [vmem:[%s1237_s1 + $0x18] sm:$0xff]  ;;  %v43_v31 = vmax.f32 %v39_v26, 0.0  ;;  %v165_v32 = vmax.f32 %v161_v27, 0.0  ;;  %v869_v38 = vld [vmem:[%s1238_s6 + $0x8] sm:$0xff]   ;;  %v282_v40 = vld [vmem:[%s1240_s2] sm:$0xff] }
   0xa   :  { %787 = vmatprep.mubr.bf16.mxu0 %v44_v21  ;;  %v866_v29 = vld [vmem:[%s1235_s5 + $0x38] sm:$0xff]   ;;  %v166_v33 = vmax.f32 %v162_v28, 0.0  ;;  %v870_v39 = vld [vmem:[%s1239_s7 + $0x8] sm:$0xff]   ;;  %v405_v42 = vld [vmem:[%s1241_s3] sm:$0xff]  ;;  %v286_v44 = vmax.f32 %v282_v40, 0.0 }
   0xb   :  { %776 = vmatpush3.bf16.msra.mxu0 %v855_v4  ;;  %807 = vmatprep.mubr.bf16.mxu1 %v167_v23  ;;  %v45_v36 = vpack.c.bf16 %v43_v31, %v42_v30  ;;  %v283_v41 = vld [vmem:[%s1240_s2 + $0x8] sm:$0xff]  ;;  %v871_v43 = vld [vmem:[%s1238_s6 + $0x10] sm:$0xff]   ;;  %v409_v47 = vmax.f32 %v405_v42, 0.0  ;;  %v873_v52 = vld [vmem:[%s1238_s6 + $0x18] sm:$0xff]  }
   0xc   :  { %796 = vmatpush3.bf16.msra.mxu1 %v856_v5  ;;  %777 = vmatprep.subr.bf16.mxu0 %v857_v6  ;;  %v168_v37 = vpack.c.bf16 %v166_v33, %v165_v32  ;;  %v287_v45 = vmax.f32 %v283_v41, 0.0  ;;  %v406_v46 = vld [vmem:[%s1241_s3 + $0x8] sm:$0xff]  ;;  %v872_v48 = vld [vmem:[%s1239_s7 + $0x10] sm:$0xff]   ;;  %v874_v53 = vld [vmem:[%s1239_s7 + $0x18] sm:$0xff]  }
   0xd   :  { %797 = vmatprep.subr.bf16.mxu1 %v858_v7  ;;  %v410_v49 = vmax.f32 %v406_v46, 0.0  ;;  %v875_v54 = vld [vmem:[%s1238_s6 + $0x20] sm:$0xff]   ;;  %v877_v56 = vld [vmem:[%s1238_s6 + $0x28] sm:$0xff]   ;;  %v879_v58 = vld [vmem:[%s1238_s6 + $0x30] sm:$0xff]  }
   0xe   :  { %v290_v50 = vpack.c.bf16 %v287_v45, %v286_v44  ;;  %v876_v55 = vld [vmem:[%s1239_s7 + $0x20] sm:$0xff]   ;;  %v878_v57 = vld [vmem:[%s1239_s7 + $0x28] sm:$0xff]   ;;  %v880_v59 = vld [vmem:[%s1239_s7 + $0x30] sm:$0xff]  }
   0xf   :  { %778 = vmatpush3.bf16.msra.mxu0 %v857_v6  ;;  %v413_v51 = vpack.c.bf16 %v410_v49, %v409_v47  ;;  %v284_v60 = vld [vmem:[%s1240_s2 + $0x10] sm:$0xff]  ;;  %v285_v61 = vld [vmem:[%s1240_s2 + $0x18] sm:$0xff] }
  0x10   :  { %798 = vmatpush3.bf16.msra.mxu1 %v858_v7  ;;  %779 = vmatprep.subr.bf16.mxu0 %v859_v8  ;;  %v881_v62 = vld [vmem:[%s1238_s6 + $0x38] sm:$0xff]   ;;  %v407_v63 = vld [vmem:[%s1241_s3 + $0x10] sm:$0xff]  ;;  %v288_v2 = vmax.f32 %v284_v60, 0.0  ;;  %v289_v3 = vmax.f32 %v285_v61, 0.0 }
  0x11   :  { %799 = vmatprep.subr.bf16.mxu1 %v860_v9  ;;  %v408_v0 = vld [vmem:[%s1241_s3 + $0x18] sm:$0xff]  ;;  %v411_v4 = vmax.f32 %v407_v63, 0.0 }
  0x12   :  { %v882_v1 = vld [vmem:[%s1239_s7 + $0x38] sm:$0xff]   ;;  %v412_v5 = vmax.f32 %v408_v0, 0.0  ;;  %v291_v6 = vpack.c.bf16 %v289_v3, %v288_v2 }
  0x13   :  { %780 = vmatpush3.bf16.msra.mxu0 %v859_v8 }
  0x14   :  { %800 = vmatpush3.bf16.msra.mxu1 %v860_v9  ;;  %781 = vmatprep.subr.bf16.mxu0 %v861_v10  ;;  %v414_v7 = vpack.c.bf16 %v412_v5, %v411_v4 }
  0x15   :  { %801 = vmatprep.subr.bf16.mxu1 %v862_v14 }
  0x17   :  { %782 = vmatpush3.bf16.msra.mxu0 %v861_v10 }
  0x18   :  { %802 = vmatpush3.bf16.msra.mxu1 %v862_v14  ;;  %783 = vmatprep.subr.bf16.mxu0 %v863_v20 }
  0x19   :  { %803 = vmatprep.subr.bf16.mxu1 %v864_v22 }
  0x1b   :  { %784 = vmatpush3.bf16.msra.mxu0 %v863_v20 }
  0x1c   :  { %804 = vmatpush3.bf16.msra.mxu1 %v864_v22  ;;  %785 = vmatprep.subr.bf16.mxu0 %v865_v25 }
  0x1d   :  { %805 = vmatprep.subr.bf16.mxu1 %v866_v29 }
  0x1f   :  { %786 = vmatpush3.bf16.msra.mxu0 %v865_v25 }
  0x20   :  { %806 = vmatpush3.bf16.msra.mxu1 %v866_v29  ;;  %811 = vmatprep.subr.bf16.mxu0 %v867_v34 }
  0x21   :  { %831 = vmatprep.subr.bf16.mxu1 %v868_v35 }
  0x22   :  { %788 = vmatmul.mubr.bf16.vlgmr.msra.gmra.mrb[0].mxu0 %v45_v36 }
  0x23   :  { %808 = vmatmul.mubr.bf16.vlgmr.msra.gmra.mrb[0].mxu1 %v168_v37  ;;  %812 = vmatpush3.bf16.msra.mxu0 %v867_v34 }
  0x24   :  { %832 = vmatpush3.bf16.msra.mxu1 %v868_v35  ;;  %813 = vmatprep.subr.bf16.mxu0 %v869_v38 }
  0x25   :  { %833 = vmatprep.subr.bf16.mxu1 %v870_v39  ;;  %827 = vmatprep.mubr.bf16.mxu0 %v290_v50 }
  0x26   :  { %847 = vmatprep.mubr.bf16.mxu1 %v413_v51 }
  0x27   :  { %814 = vmatpush3.bf16.msra.mxu0 %v869_v38 }
  0x28   :  { %834 = vmatpush3.bf16.msra.mxu1 %v870_v39  ;;  %815 = vmatprep.subr.bf16.mxu0 %v871_v43 }
  0x29   :  { %835 = vmatprep.subr.bf16.mxu1 %v872_v48 }
  0x2b   :  { %816 = vmatpush3.bf16.msra.mxu0 %v871_v43 }
  0x2c   :  { %836 = vmatpush3.bf16.msra.mxu1 %v872_v48  ;;  %817 = vmatprep.subr.bf16.mxu0 %v873_v52 }
  0x2d   :  { %837 = vmatprep.subr.bf16.mxu1 %v874_v53 }
  0x2f   :  { %818 = vmatpush3.bf16.msra.mxu0 %v873_v52 }
  0x30   :  { %838 = vmatpush3.bf16.msra.mxu1 %v874_v53  ;;  %819 = vmatprep.subr.bf16.mxu0 %v875_v54 }
  0x31   :  { %839 = vmatprep.subr.bf16.mxu1 %v876_v55 }
  0x33   :  { %820 = vmatpush3.bf16.msra.mxu0 %v875_v54 }
  0x34   :  { %840 = vmatpush3.bf16.msra.mxu1 %v876_v55  ;;  %821 = vmatprep.subr.bf16.mxu0 %v877_v56 }
  0x35   :  { %841 = vmatprep.subr.bf16.mxu1 %v878_v57 }
  0x37   :  { %822 = vmatpush3.bf16.msra.mxu0 %v877_v56 }
  0x38   :  { %842 = vmatpush3.bf16.msra.mxu1 %v878_v57  ;;  %823 = vmatprep.subr.bf16.mxu0 %v879_v58 }
  0x39   :  { %843 = vmatprep.subr.bf16.mxu1 %v880_v59 }
  0x3b   :  { %824 = vmatpush3.bf16.msra.mxu0 %v879_v58 }
  0x3c   :  { %844 = vmatpush3.bf16.msra.mxu1 %v880_v59  ;;  %825 = vmatprep.subr.bf16.mxu0 %v881_v62 }
  0x3d   :  { %845 = vmatprep.subr.bf16.mxu1 %v882_v1 }
  0x3f   :  { %826 = vmatpush3.bf16.msra.mxu0 %v881_v62 }
  0x40   :  { %846 = vmatpush3.bf16.msra.mxu1 %v882_v1 }
  0x42   :  { %828 = vmatmul.mubr.bf16.vlgmr.msra.gmra.mrb[4].mxu0 %v291_v6 }
  0x43   :  { %848 = vmatmul.mubr.bf16.vlgmr.msra.gmra.mrb[4].mxu1 %v414_v7 }
  0xf5   :  { %v1084_v8 = vpop.f32.mrb[0].mxu0 }
  0xf6   :  { %v1086_v9 = vpop.f32.mrb[0].mxu1  ;;  %v1088_v10 = vpop.f32.mrb[1].mxu0  ;;  %v570_v22 = vmul.f32 %v1084_v8, %v1084_v8 }
  0xf7   :  { %v1090_v11 = vpop.f32.mrb[1].mxu1  ;;  %v1092_v12 = vpop.f32.mrb[2].mxu0  ;;  %v568_v16 = vmul.f32 %v1088_v10, %v1088_v10  ;;  %v584_v25 = vmul.f32 %v1086_v9, %v1086_v9 }
  0xf8   :  { %v582_v13 = vmul.f32 %v1090_v11, %v1090_v11  ;;  %v1096_v14 = vpop.f32.mrb[2].mxu1  ;;  %v1098_v15 = vpop.f32.mrb[3].mxu0  ;;  %v571_v28 = vmul.f32 %v1092_v12, %v1092_v12 }
  0xf9   :  { %v528_v17 = vadd.f32 %v1098_v15, %v1088_v10  ;;  %v569_v18 = vmul.f32 %v1098_v15, %v1098_v15  ;;  %v1106_v19 = vpop.f32.mrb[3].mxu1  ;;  %v585_v31 = vmul.f32 %v1096_v14, %v1096_v14 }
  0xfa   :  { %v538_v20 = vadd.f32 %v1106_v19, %v1090_v11  ;;  %v583_v21 = vmul.f32 %v1106_v19, %v1106_v19 }
  0xfb   :  { %v529_v23 = vadd.f32 %v1084_v8, %v528_v17  ;;  %v572_v24 = vadd.f32 %v569_v18, %v568_v16 }
  0xfc   :  { %v539_v26 = vadd.f32 %v1086_v9, %v538_v20  ;;  %v586_v27 = vadd.f32 %v583_v21, %v582_v13 }
  0xfd   :  { %v530_v29 = vadd.f32 %v1092_v12, %v529_v23  ;;  %v573_v30 = vadd.f32 %v572_v24, %v570_v22 }
  0xfe   :  { %v540_v32 = vadd.f32 %v1096_v14, %v539_v26  ;;  %v587_v33 = vadd.f32 %v586_v27, %v584_v25 }
  0xff   :  { %v531_v34 = vrot.slane %v530_v29, 4  ;;  %v574_v35 = vadd.f32 %v573_v30, %v571_v28 }
 0x100   :  { %v541_v36 = vrot.slane %v540_v32, 4  ;;  %v588_v37 = vadd.f32 %v587_v33, %v585_v31 }
 0x101   :  { %v532_v38 = vadd.f32 %v531_v34, %v530_v29  ;;  %v575_v39 = vrot.slane %v574_v35, 4 }
 0x102   :  { %v542_v40 = vadd.f32 %v541_v36, %v540_v32  ;;  %v589_v41 = vrot.slane %v588_v37, 4 }
 0x103   :  { %v533_v42 = vrot.slane %v532_v38, 2  ;;  %v576_v43 = vadd.f32 %v575_v39, %v574_v35 }
 0x104   :  { %v543_v44 = vrot.slane %v542_v40, 2  ;;  %v590_v45 = vadd.f32 %v589_v41, %v588_v37 }
 0x105   :  { %v534_v46 = vadd.f32 %v533_v42, %v532_v38  ;;  %v577_v47 = vrot.slane %v576_v43, 2 }
 0x106   :  { %v544_v48 = vadd.f32 %v543_v44, %v542_v40  ;;  %v591_v49 = vrot.slane %v590_v45, 2 }
 0x107   :  { %v535_v50 = vrot.slane %v534_v46, 1  ;;  %v578_v51 = vadd.f32 %v577_v47, %v576_v43 }
 0x108   :  { %v545_v52 = vrot.slane %v544_v48, 1  ;;  %v592_v53 = vadd.f32 %v591_v49, %v590_v45 }
 0x109   :  { %v536_v54 = vadd.f32 %v535_v50, %v534_v46  ;;  %v579_v55 = vrot.slane %v578_v51, 1 }
 0x10a   :  { %v546_v56 = vadd.f32 %v545_v52, %v544_v48  ;;  %v593_v57 = vrot.slane %v592_v53, 1 }
 0x10b   :  { %v580_v58 = vadd.f32 %v579_v55, %v578_v51 }
 0x10c   :  { %v547_v59 = vadd.f32 %v546_v56, %v536_v54  ;;  %v594_v60 = vadd.f32 %v593_v57, %v592_v53 }
 0x10e   :  { %v595_v61 = vadd.f32 %v594_v60, %v580_v58 }
 0x115   :  { %v1124_v62 = vpop.f32.mrb[4].mxu0 }
 0x116   :  { %v1126_v63 = vpop.f32.mrb[4].mxu1  ;;  %v1128_v0 = vpop.f32.mrb[5].mxu0  ;;  %v598_v20 = vmul.f32 %v1124_v62, %v1124_v62 }
 0x117   :  { %v1130_v1 = vpop.f32.mrb[5].mxu1  ;;  %v1132_v2 = vpop.f32.mrb[6].mxu0  ;;  %v596_v6 = vmul.f32 %v1128_v0, %v1128_v0  ;;  %v612_v23 = vmul.f32 %v1126_v63, %v1126_v63 }
 0x118   :  { %v610_v3 = vmul.f32 %v1130_v1, %v1130_v1  ;;  %v1136_v4 = vpop.f32.mrb[6].mxu1  ;;  %v1138_v5 = vpop.f32.mrb[7].mxu0  ;;  %v599_v26 = vmul.f32 %v1132_v2, %v1132_v2 }
 0x119   :  { %v548_v7 = vadd.f32 %v1138_v5, %v1128_v0  ;;  %v597_v13 = vmul.f32 %v1138_v5, %v1138_v5  ;;  %v1146_v16 = vpop.f32.mrb[7].mxu1  ;;  %v613_v29 = vmul.f32 %v1136_v4, %v1136_v4 }
 0x11a   :  { %v558_v17 = vadd.f32 %v1146_v16, %v1130_v1  ;;  %v611_v18 = vmul.f32 %v1146_v16, %v1146_v16 }
 0x11b   :  { %v549_v21 = vadd.f32 %v1124_v62, %v548_v7  ;;  %v600_v22 = vadd.f32 %v597_v13, %v596_v6 }
 0x11c   :  { %v559_v24 = vadd.f32 %v1126_v63, %v558_v17  ;;  %v614_v25 = vadd.f32 %v611_v18, %v610_v3 }
 0x11d   :  { %v550_v27 = vadd.f32 %v1132_v2, %v549_v21  ;;  %v601_v28 = vadd.f32 %v600_v22, %v598_v20  ;;  %v637_v22 = vlaneseq }
 0x11e   :  { %v560_v30 = vadd.f32 %v1136_v4, %v559_v24  ;;  %v615_v31 = vadd.f32 %v614_v25, %v612_v23  ;;  %v632_v24 = vld [vmem:[%s1242_s8] sm:$0x1] }
 0x11f   :  { %v551_v32 = vrot.slane %v550_v27, 4  ;;  %v602_v33 = vadd.f32 %v601_v28, %v599_v26  ;;  %v638_v23 = vshrl.u32 %v637_v22, 7 }
 0x120   :  { %v561_v34 = vrot.slane %v560_v30, 4  ;;  %v616_v35 = vadd.f32 %v615_v31, %v613_v29 }
 0x121   :  { %v552_v36 = vadd.f32 %v551_v32, %v550_v27  ;;  %v603_v37 = vrot.slane %v602_v33, 4 }
 0x122   :  { %v562_v38 = vadd.f32 %v561_v34, %v560_v30  ;;  %v617_v39 = vrot.slane %v616_v35, 4 }
 0x123   :  { %v553_v40 = vrot.slane %v552_v36, 2  ;;  %v604_v41 = vadd.f32 %v603_v37, %v602_v33 }
 0x124   :  { %v563_v42 = vrot.slane %v562_v38, 2  ;;  %v618_v43 = vadd.f32 %v617_v39, %v616_v35 }
 0x125   :  { %v554_v44 = vadd.f32 %v553_v40, %v552_v36  ;;  %v605_v45 = vrot.slane %v604_v41, 2 }
 0x126   :  { %v564_v46 = vadd.f32 %v563_v42, %v562_v38  ;;  %v619_v47 = vrot.slane %v618_v43, 2 }
 0x127   :  { %v555_v48 = vrot.slane %v554_v44, 1  ;;  %v606_v49 = vadd.f32 %v605_v45, %v604_v41 }
 0x128   :  { %v565_v50 = vrot.slane %v564_v46, 1  ;;  %v620_v51 = vadd.f32 %v619_v47, %v618_v43 }
 0x129   :  { %v556_v52 = vadd.f32 %v555_v48, %v554_v44  ;;  %v607_v53 = vrot.slane %v606_v49, 1 }
 0x12a   :  { %v621_v54 = vrot.slane %v620_v51, 1  ;;  %v566_v57 = vadd.f32 %v565_v50, %v564_v46 }
 0x12b   :  { %v557_v55 = vadd.f32 %v556_v52, %v547_v59  ;;  %v608_v56 = vadd.f32 %v607_v53, %v606_v49  ;;  %v639_v59 = vsub.s32 0, %v638_v23 }
 0x12c   :  { %v622_v3 = vadd.f32 %v621_v54, %v620_v51 }
 0x12d   :  { %v609_v58 = vadd.f32 %v608_v56, %v595_v61  ;;  %v567_v60 = vadd.f32 %v566_v57, %v557_v55  ;;  %v634_v61 = vld [vmem:[%s1243_s9] sm:$0x1] }
 0x12f   :  { %v623_v6 = vadd.f32 %v622_v3, %v609_v58  ;;  %v625_v7 = vmul.f32 0.0078125, %v567_v60 }
 0x131   :  { %v626_v13 = vmul.f32 0.0078125, %v623_v6  ;;  %v627_v17 = vmul.f32 %v625_v7, %v625_v7 }
 0x133   :  { %v628_v18 = vsub.f32 %v626_v13, %v627_v17 }
 0x135   :  { %v629_v20 = vmax.f32 %v628_v18, 0.0 }
 0x137   :  { %v630_v21 = vadd.f32 1e-05, %v629_v20 }
 0x139   :  { %883 = vrsqrt.f32 %v630_v21 }
 0x143   :  { %v884_v25 = vpop.eup %883 }
 0x144   :  { %v633_v26 = vmul.f32 %v884_v25, %v632_v24 }
 0x146   :  { %v635_v27 = vmul.f32 %v633_v26, %v625_v7  ;;  %v640_v28 = vrot.slane %v633_v26, %v639_v59 }
 0x148   :  { %v636_v29 = vsub.f32 %v634_v61, %v635_v27  ;;  %v641_v30 = vmul.f32 %v640_v28, %v1088_v10  ;;  %v642_v31 = vmul.f32 %v640_v28, %v1098_v15  ;;  %v643_v32 = vmul.f32 %v1084_v8, %v640_v28 }
 0x149   :  { %v644_v33 = vmul.f32 %v1092_v12, %v640_v28  ;;  %v659_v34 = vmul.f32 %v640_v28, %v1090_v11  ;;  %v660_v35 = vmul.f32 %v640_v28, %v1106_v19  ;;  %v661_v36 = vmul.f32 %v1086_v9, %v640_v28 }
 0x14a   :  { %v649_v37 = vrot.slane %v636_v29, %v639_v59  ;;  %v662_v38 = vmul.f32 %v1096_v14, %v640_v28  ;;  %v671_v39 = vmul.f32 %v640_v28, %v1128_v0  ;;  %v672_v40 = vmul.f32 %v640_v28, %v1138_v5 }
 0x14b   :  { %v673_v10 = vmul.f32 %v1124_v62, %v640_v28  ;;  %v674_v15 = vmul.f32 %v1132_v2, %v640_v28  ;;  %v683_v8 = vmul.f32 %v640_v28, %v1130_v1  ;;  %v684_v12 = vmul.f32 %v640_v28, %v1146_v16 }
 0x14c   :  { %v651_v11 = vadd.f32 %v649_v37, %v641_v30  ;;  %v652_v41 = vadd.f32 %v649_v37, %v642_v31  ;;  %v653_v19 = vadd.f32 %v649_v37, %v643_v32  ;;  %v654_v42 = vadd.f32 %v649_v37, %v644_v33 }
 0x14d   :  { %v663_v9 = vadd.f32 %v659_v34, %v649_v37  ;;  %v664_v43 = vadd.f32 %v660_v35, %v649_v37  ;;  %v665_v44 = vadd.f32 %v661_v36, %v649_v37  ;;  %v666_v14 = vadd.f32 %v662_v38, %v649_v37 }
 0x14e   :  { %655 = vst [vmem:[%s1244_s10] sm:$0xff] %v651_v11  ;;  %656 = vst [vmem:[%s1244_s10 + $0x8] sm:$0xff] %v652_v41  ;;  %v675_v62 = vadd.f32 %v671_v39, %v649_v37  ;;  %v676_v0 = vadd.f32 %v672_v40, %v649_v37  ;;  %v677_v1 = vadd.f32 %v673_v10, %v649_v37 }
 0x14f   :  { %657 = vst [vmem:[%s1244_s10 + $0x10] sm:$0xff] %v653_v19  ;;  %658 = vst [vmem:[%s1244_s10 + $0x18] sm:$0xff] %v654_v42  ;;  %v678_v2 = vadd.f32 %v674_v15, %v649_v37  ;;  %v685_v5 = vmul.f32 %v1126_v63, %v640_v28  ;;  %v686_v16 = vmul.f32 %v1136_v4, %v640_v28 }
 0x150   :  { %667 = vst [vmem:[%s1244_s10 + $0x20] sm:$0xff] %v663_v9  ;;  %668 = vst [vmem:[%s1244_s10 + $0x28] sm:$0xff] %v664_v43  ;;  %v687_v45 = vadd.f32 %v683_v8, %v649_v37  ;;  %v688_v46 = vadd.f32 %v684_v12, %v649_v37 }
 0x151   :  { %669 = vst [vmem:[%s1244_s10 + $0x30] sm:$0xff] %v665_v44  ;;  %670 = vst [vmem:[%s1244_s10 + $0x38] sm:$0xff] %v666_v14  ;;  %v689_v63 = vadd.f32 %v685_v5, %v649_v37  ;;  %v690_v4 = vadd.f32 %v686_v16, %v649_v37 }
 0x152   :  { %679 = vst [vmem:[%s1244_s10 + $0x40] sm:$0xff] %v675_v62  ;;  %680 = vst [vmem:[%s1244_s10 + $0x48] sm:$0xff] %v676_v0 }
 0x153   :  { %681 = vst [vmem:[%s1244_s10 + $0x50] sm:$0xff] %v677_v1  ;;  %682 = vst [vmem:[%s1244_s10 + $0x58] sm:$0xff] %v678_v2 }
 0x154   :  { %691 = vst [vmem:[%s1244_s10 + $0x60] sm:$0xff] %v687_v45  ;;  %692 = vst [vmem:[%s1244_s10 + $0x68] sm:$0xff] %v688_v46 }
 0x155   :  { %693 = vst [vmem:[%s1244_s10 + $0x70] sm:$0xff] %v689_v63  ;;  %694 = vst [vmem:[%s1244_s10 + $0x78] sm:$0xff] %v690_v4 }

// kernel: vqvae_forward.5
= control target key start
LH: loop header
LB: loop body
LE: loop exit
PB: predicated region body
PF: predicated region fallthrough
CT: control target
= control target key end

     0   :  { %vm253_vm0 = vcmask 261120   ;;  %s7724_s1 = inlined_call_operand.vmem [shape: bf16[256,32], index: 1, kind: input, shape index: {}]   ;;  %s7725_s0 = inlined_call_operand.vmem [shape: f32[32,256], index: 0, kind: input, shape index: {}]   ;;  %s7726_s4 = inlined_call_operand.vmem [shape: f32[288,32], index: 4, kind: input, shape index: {}]   ;;  %s7727_s2 = inlined_call_operand.vmem [shape: f32[1,32], index: 2, kind: input, shape index: {}]   ;;  %s7728_s3 = inlined_call_operand.vmem [shape: f32[1,32], index: 3, kind: input, shape index: {}]   ;;  %s7729_s5 = inlined_call_operand.vmem [shape: bf16[288,32], index: 5, kind: input, shape index: {}]   ;;  %s7730_s6 = inlined_call_operand.vmem [shape: bf16[32,32], index: 6, kind: input, shape index: {}]   ;;  %s7731_s7 = inlined_call_operand.vmem [shape: bf16[288,32], index: 7, kind: input, shape index: {}]   ;;  %s7732_s8 = inlined_call_operand.vmem [shape: bf16[32,32], index: 8, kind: input, shape index: {}]   ;;  %s7733_s10 = inlined_call_operand.vmem [shape: f32[32,128], index: 10, kind: input, shape index: {}]   ;;  %s7734_s9 = inlined_call_operand.vmem [shape: f32[128,32], index: 9, kind: input, shape index: {}]   ;;  %s7735_s11 = inlined_call_operand.vmem [shape: f32[1,128], index: 11, kind: input, shape index: {}]   ;;  %s7736_s12 = inlined_call_operand.vmem [shape: bf16[288,32], index: 12, kind: input, shape index: {}]   ;;  %s7737_s13 = inlined_call_operand.vmem [shape: bf16[32,32], index: 13, kind: input, shape index: {}]   ;;  %s7738_s14 = inlined_call_operand.vmem [shape: bf16[288,32], index: 14, kind: input, shape index: {}]   ;;  %s7739_s15 = inlined_call_operand.vmem [shape: bf16[32,32], index: 15, kind: input, shape index: {}]   ;;  %s7740_s16 = inlined_call_operand.vmem [shape: f32[32,32], index: 16, kind: output, shape index: {}]  }
   0x1   :  { %7742 = sst [smem:[#allocation2_spill]] %s7724_s1  ;;  %v55_v11 = vld [vmem:[%s7725_s0 + $0x8] sm:$0xff]  ;;  %v57_v12 = vld [vmem:[%s7725_s0 + $0x18] sm:$0xff]  ;;  %v54_v19 = vld [vmem:[%s7725_s0] sm:$0xff] }
   0x2   :  { %s7743_s23 = sld [smem:[#allocation2_spill]]  ;;  %v63_v13 = vmax.f32 %v55_v11, 0.0  ;;  %v65_v14 = vmax.f32 %v57_v12, 0.0  ;;  %v56_v20 = vld [vmem:[%s7725_s0 + $0x10] sm:$0xff]  ;;  %v59_v22 = vld [vmem:[%s7725_s0 + $0x28] sm:$0xff]  ;;  %v61_v23 = vld [vmem:[%s7725_s0 + $0x38] sm:$0xff] }
   0x3   :  { %v62_v24 = vmax.f32 %v54_v19, 0.0  ;;  %v64_v25 = vmax.f32 %v56_v20, 0.0  ;;  %v67_v27 = vmax.f32 %v59_v22, 0.0  ;;  %v69_v28 = vmax.f32 %v61_v23, 0.0  ;;  %v58_v31 = vld [vmem:[%s7725_s0 + $0x20] sm:$0xff]  ;;  %v60_v32 = vld [vmem:[%s7725_s0 + $0x30] sm:$0xff] }
   0x4   :  { %v71_v16 = vpack.c.bf16 %v65_v14, %v63_v13  ;;  %v66_v33 = vmax.f32 %v58_v31, 0.0  ;;  %v68_v34 = vmax.f32 %v60_v32, 0.0  ;;  %v6598_v36 = vld [vmem:[%s7726_s4] sm:$0xff] }
   0x5   :  { %v70_v29 = vpack.c.bf16 %v64_v25, %v62_v24  ;;  %v73_v30 = vpack.c.bf16 %v69_v28, %v67_v27  ;;  %5490 = vmatprep.mubr.msk.f32.mxu1 %vm253_vm0, %v6598_v36  ;;  %v4788_v31 = vld [vmem:[%s7728_s3] ss:$0 sm:$0xff] }
   0x6   :  { %234 = vmatprep.mubr.bf16.mxu0 %v71_v16  ;;  %v72_v35 = vpack.c.bf16 %v68_v34, %v66_v33 }
   0x8   :  { %v6303_v0 = vld [vmem:[%s7743_s23 + $0x40] sm:$0xff]   ;;  %v6305_v2 = vld [vmem:[%s7743_s23 + $0x48] sm:$0xff]   ;;  %v6307_v4 = vld [vmem:[%s7743_s23 + $0x50] sm:$0xff]  }
   0x9   :  { %v6304_v1 = vld [vmem:[%s7743_s23] sm:$0xff]   ;;  %5106 = vmatprep.subr.bf16.mxu0 %v6303_v0  ;;  %v6306_v3 = vld [vmem:[%s7743_s23 + $0x8] sm:$0xff]   ;;  %v6308_v5 = vld [vmem:[%s7743_s23 + $0x10] sm:$0xff]  }
   0xa   :  { %5107 = vmatpush3.bf16.msra.mxu0 %v6304_v1  ;;  %v6309_v6 = vld [vmem:[%s7743_s23 + $0x58] sm:$0xff]   ;;  %v6311_v8 = vld [vmem:[%s7743_s23 + $0x60] sm:$0xff]   ;;  %v6313_v10 = vld [vmem:[%s7743_s23 + $0x68] sm:$0xff]  }
   0xb   :  { %5108 = vmatprep.subr.bf16.mxu0 %v6305_v2  ;;  %v6310_v7 = vld [vmem:[%s7743_s23 + $0x18] sm:$0xff]   ;;  %v6312_v9 = vld [vmem:[%s7743_s23 + $0x20] sm:$0xff]   ;;  %v6314_v15 = vld [vmem:[%s7743_s23 + $0x28] sm:$0xff]  }
   0xc   :  { %v6315_v17 = vld [vmem:[%s7743_s23 + $0x70] sm:$0xff]   ;;  %v6317_v21 = vld [vmem:[%s7743_s23 + $0x78] sm:$0xff]  }
   0xd   :  { %v6316_v18 = vld [vmem:[%s7743_s23 + $0x30] sm:$0xff]   ;;  %v6318_v26 = vld [vmem:[%s7743_s23 + $0x38] sm:$0xff]  }
   0xe   :  { %5109 = vmatpush3.bf16.msra.mxu0 %v6306_v3 }
   0xf   :  { %5110 = vmatprep.subr.bf16.mxu0 %v6307_v4 }
  0x12   :  { %5111 = vmatpush3.bf16.msra.mxu0 %v6308_v5 }
  0x13   :  { %5112 = vmatprep.subr.bf16.mxu0 %v6309_v6 }
  0x16   :  { %5113 = vmatpush3.bf16.msra.mxu0 %v6310_v7 }
  0x17   :  { %5114 = vmatprep.subr.bf16.mxu0 %v6311_v8 }
  0x1a   :  { %5115 = vmatpush3.bf16.msra.mxu0 %v6312_v9 }
  0x1b   :  { %5116 = vmatprep.subr.bf16.mxu0 %v6313_v10 }
  0x1e   :  { %5117 = vmatpush3.bf16.msra.mxu0 %v6314_v15 }
  0x1f   :  { %5118 = vmatprep.subr.bf16.mxu0 %v6315_v17 }
  0x22   :  { %5119 = vmatpush3.bf16.msra.mxu0 %v6316_v18 }
  0x23   :  { %5120 = vmatprep.subr.bf16.mxu0 %v6317_v21 }
  0x26   :  { %5121 = vmatpush3.bf16.msra.mxu0 %v6318_v26  ;;  %v4787_v26 = vld [vmem:[%s7727_s2] ss:$0 sm:$0xff] }
  0x29   :  { %235 = vmatmul.mubr.bf16.vlgmr.msra.gmra.mrb[0].mxu0 %v70_v29 }
  0x2a   :  { %242 = vmatprep.mubr.bf16.mxu0 %v73_v30 }
  0x31   :  { %243 = vmatmul.mubr.bf16.gmra.mrb[4].mxu0 %v72_v35 }
  0xfc   :  { %v5122_v37 = vpop.f32.mrb[0].mxu0 }
  0xfd   :  { %v5123_v38 = vpop.f32.mrb[1].mxu0 }
  0xfe   :  { %v5124_v39 = vadd.f32 %v5123_v38, %v5122_v37  ;;  %v5125_v40 = vpop.f32.mrb[2].mxu0 }
  0xff   :  { %v5126_v41 = vpop.f32.mrb[3].mxu0 }
 0x100   :  { %v269_v42 = vmul.f32 %v5124_v39, %v5124_v39  ;;  %v5127_v43 = vadd.f32 %v5126_v41, %v5125_v40  ;;  %v254_v44 = vsel %vm253_vm0, %v5124_v39, 0.0 }
 0x102   :  { %v255_v45 = vsel %vm253_vm0, %v5127_v43, 0.0  ;;  %v270_v46 = vmul.f32 %v5127_v43, %v5127_v43  ;;  %v273_v48 = vsel %vm253_vm0, %v269_v42, 0.0 }
 0x103   :  { %v256_v47 = vadd.f32 %v255_v45, %v254_v44 }
 0x104   :  { %v274_v49 = vsel %vm253_vm0, %v270_v46, 0.0  ;;  %v5128_v50 = vpop.f32.mrb[4].mxu0 }
 0x105   :  { %v275_v51 = vadd.f32 %v274_v49, %v273_v48  ;;  %v5129_v52 = vpop.f32.mrb[5].mxu0  ;;  %v6636_v48 = vld [vmem:[%s7726_s4 + $0x10] sm:$0xff]  ;;  %v6645_v49 = vld [vmem:[%s7726_s4 + $0x18] sm:$0xff] }
 0x106   :  { %v5130_v53 = vadd.f32 %v5129_v52, %v5128_v50  ;;  %v5131_v54 = vpop.f32.mrb[6].mxu0  ;;  %v6650_v50 = vld [vmem:[%s7726_s4 + $0x20] sm:$0xff]  ;;  %v6664_v52 = vld [vmem:[%s7726_s4 + $0x30] sm:$0xff] }
 0x107   :  { %v5132_v55 = vpop.f32.mrb[7].mxu0 }
 0x108   :  { %v257_v56 = vsel %vm253_vm0, %v5130_v53, 0.0  ;;  %v271_v57 = vmul.f32 %v5130_v53, %v5130_v53  ;;  %v5133_v58 = vadd.f32 %v5132_v55, %v5131_v54  ;;  %v6678_v54 = vld [vmem:[%s7726_s4 + $0x40] sm:$0xff]  ;;  %v6687_v55 = vld [vmem:[%s7726_s4 + $0x48] sm:$0xff] }
 0x109   :  { %v258_v59 = vadd.f32 %v257_v56, %v256_v47  ;;  %v6631_v47 = vld [vmem:[%s7726_s4 + $0x8] sm:$0xff]  ;;  %v6692_v56 = vld [vmem:[%s7726_s4 + $0x50] sm:$0xff] }
 0x10a   :  { %v276_v60 = vsel %vm253_vm0, %v271_v57, 0.0  ;;  %v259_v61 = vsel %vm253_vm0, %v5133_v58, 0.0  ;;  %v272_v62 = vmul.f32 %v5133_v58, %v5133_v58  ;;  %v6701_v57 = vld [vmem:[%s7726_s4 + $0x58] sm:$0xff] }
 0x10b   :  { %v277_v63 = vadd.f32 %v276_v60, %v275_v51  ;;  %v260_v0 = vadd.f32 %v259_v61, %v258_v59  ;;  %v6659_v51 = vld [vmem:[%s7726_s4 + $0x28] sm:$0xff]  ;;  %v6720_v60 = vld [vmem:[%s7726_s4 + $0x70] sm:$0xff]  ;;  %v6729_v61 = vld [vmem:[%s7726_s4 + $0x78] sm:$0xff] }
 0x10c   :  { %v278_v1 = vsel %vm253_vm0, %v272_v62, 0.0  ;;  %v6715_v59 = vld [vmem:[%s7726_s4 + $0x68] sm:$0xff]  ;;  %v6734_v62 = vld [vmem:[%s7726_s4 + $0x80] sm:$0xff] }
 0x10d   :  { %v261_v2 = vrot.slane %v260_v0, 4  ;;  %v279_v3 = vadd.f32 %v278_v1, %v277_v63  ;;  %v6743_v63 = vld [vmem:[%s7726_s4 + $0x88] sm:$0xff]  ;;  %v6757_v1 = vld [vmem:[%s7726_s4 + $0x98] sm:$0xff] }
 0x10f   :  { %v262_v4 = vadd.f32 %v261_v2, %v260_v0  ;;  %v280_v5 = vrot.slane %v279_v3, 4  ;;  %v6748_v0 = vld [vmem:[%s7726_s4 + $0x90] sm:$0xff]  ;;  %v6762_v2 = vld [vmem:[%s7726_s4 + $0xa0] sm:$0xff] }
 0x111   :  { %v263_v6 = vrot.slane %v262_v4, 2  ;;  %v281_v7 = vadd.f32 %v280_v5, %v279_v3  ;;  %v6771_v3 = vld [vmem:[%s7726_s4 + $0xa8] sm:$0xff]  ;;  %v6785_v5 = vld [vmem:[%s7726_s4 + $0xb8] sm:$0xff] }
 0x113   :  { %v264_v8 = vadd.f32 %v263_v6, %v262_v4  ;;  %v282_v9 = vrot.slane %v281_v7, 2  ;;  %v6776_v4 = vld [vmem:[%s7726_s4 + $0xb0] sm:$0xff]  ;;  %v6790_v6 = vld [vmem:[%s7726_s4 + $0xc0] sm:$0xff] }
 0x115   :  { %v265_v10 = vrot.slane %v264_v8, 1  ;;  %v283_v11 = vadd.f32 %v282_v9, %v281_v7  ;;  %v6799_v7 = vld [vmem:[%s7726_s4 + $0xc8] sm:$0xff]  ;;  %v6813_v9 = vld [vmem:[%s7726_s4 + $0xd8] sm:$0xff] }
 0x117   :  { %v266_v12 = vadd.f32 %v265_v10, %v264_v8  ;;  %v284_v13 = vrot.slane %v283_v11, 1  ;;  %v6804_v8 = vld [vmem:[%s7726_s4 + $0xd0] sm:$0xff]  ;;  %v6818_v10 = vld [vmem:[%s7726_s4 + $0xe0] sm:$0xff] }
 0x119   :  { %v268_v14 = vmul.f32 0.03125, %v266_v12  ;;  %v285_v15 = vadd.f32 %v284_v13, %v283_v11  ;;  %v6827_v11 = vld [vmem:[%s7726_s4 + $0xe8] sm:$0xff]  ;;  %v6832_v12 = vld [vmem:[%s7726_s4 + $0xf0] sm:$0xff]  ;;  %v6841_v13 = vld [vmem:[%s7726_s4 + $0xf8] sm:$0xff] }
 0x11b   :  { %v286_v16 = vmul.f32 0.03125, %v285_v15  ;;  %v287_v17 = vmul.f32 %v268_v14, %v268_v14  ;;  %v293_v18 = vsub.f32 %v5133_v58, %v268_v14  ;;  %v290_v19 = vsub.f32 %v5124_v39, %v268_v14  ;;  %v6706_v58 = vld [vmem:[%s7726_s4 + $0x60] sm:$0xff]  ;;  %v6855_v15 = vld [vmem:[%s7726_s4 + $0x108] sm:$0xff] }
 0x11c   :  { %v291_v20 = vsub.f32 %v5127_v43, %v268_v14  ;;  %v292_v21 = vsub.f32 %v5130_v53, %v268_v14  ;;  %v6673_v53 = vld [vmem:[%s7726_s4 + $0x38] sm:$0xff]  ;;  %v6846_v14 = vld [vmem:[%s7726_s4 + $0x100] sm:$0xff] }
 0x11d   :  { %v288_v22 = vsub.f32 %v286_v16, %v287_v17  ;;  %v6860_v16 = vld [vmem:[%s7726_s4 + $0x110] sm:$0xff]  ;;  %v6869_v17 = vld [vmem:[%s7726_s4 + $0x118] sm:$0xff] }
 0x11f   :  { %v289_v23 = vmax.f32 %v288_v22, 0.0  ;;  %v6338_v22 = vld [vmem:[%s7730_s6 + $0x8] sm:$0xff]  }
 0x121   :  { %v294_v24 = vadd.f32 1e-05, %v289_v23 }
 0x123   :  { %6399 = vrsqrt.f32 %v294_v24 }
 0x12d   :  { %v6400_v25 = vpop.eup %6399 }
 0x12e   :  { %v299_v27 = vmul.f32 %v6400_v25, %v293_v18  ;;  %v296_v28 = vmul.f32 %v6400_v25, %v290_v19  ;;  %v297_v29 = vmul.f32 %v6400_v25, %v291_v20  ;;  %v298_v30 = vmul.f32 %v6400_v25, %v292_v21  ;;  %v6319_v18 = vld [vmem:[%s7729_s5 + $0x10] sm:$0xff]   ;;  %v6320_v19 = vld [vmem:[%s7729_s5 + $0x18] sm:$0xff]   ;;  %v6321_v20 = vld [vmem:[%s7729_s5] sm:$0xff]  }
 0x12f   :  { %5544 = vmatprep.subr.bf16.mxu0 %v6319_v18  ;;  %v6337_v21 = vld [vmem:[%s7730_s6] sm:$0xff]  }
 0x130   :  { %v309_v32 = vmul.f32 %v4787_v26, %v299_v27  ;;  %v306_v33 = vmul.f32 %v4787_v26, %v296_v28  ;;  %v307_v34 = vmul.f32 %v4787_v26, %v297_v29  ;;  %v308_v35 = vmul.f32 %v4787_v26, %v298_v30  ;;  %5545 = vmatpush3.bf16.msra.mxu0 %v6319_v18 }
 0x131   :  { %5546 = vmatprep.subr.bf16.mxu0 %v6320_v19 }
 0x132   :  { %v6616_v37 = vadd.f32 %v4788_v31, %v306_v33  ;;  %v6618_v38 = vadd.f32 %v4788_v31, %v307_v34  ;;  %v6620_v39 = vadd.f32 %v4788_v31, %v308_v35  ;;  %v6622_v40 = vadd.f32 %v4788_v31, %v309_v32  ;;  %v6322_v35 = vld [vmem:[%s7729_s5 + $0x8] sm:$0xff]  }
 0x134   :  { %v392_v41 = vmax.f32 %v6616_v37, 0.0  ;;  %v393_v42 = vmax.f32 %v6618_v38, 0.0  ;;  %v394_v43 = vmax.f32 %v6620_v39, 0.0  ;;  %v395_v44 = vmax.f32 %v6622_v40, 0.0  ;;  %5547 = vmatpush3.bf16.msra.mxu0 %v6320_v19 }
 0x135   :  { %5552 = vmatprep.subr.bf16.mxu0 %v6321_v20 }
 0x136   :  { %v6102_v45 = vpack.c.bf16 %v393_v42, %v392_v41  ;;  %v6106_v46 = vpack.c.bf16 %v395_v44, %v394_v43  ;;  %v6323_v43 = vld [vmem:[%s7729_s5 + $0x20] sm:$0xff]  }
 0x138   :  { %6103 = vmatprep.subr.bf16.mxu1 %v6102_v45 }
 0x139   :  { %6105 = vmatpush3.bf16.msra.mxu1 %v6102_v45 }
 0x13a   :  { %6107 = vmatprep.subr.bf16.mxu1 %v6106_v46 }
 0x13d   :  { %6109 = vmatpush3.bf16.msra.mxu1 %v6106_v46 }
 0x13e   :  { %5616 = vmatprep.subr.bf16.mxu1 %v6337_v21 }
 0x140   :  { %5491 = vmatmul.mubr.msk.f32.vlgmr.msra.gmra.mrb[0].mxu1 %vm253_vm0, %v6631_v47 }
 0x141   :  { %5493 = vmatprep.mubr.msk.f32.mxu1 %vm253_vm0, %v6636_v48  ;;  %5617 = vmatpush3.bf16.msra.mxu1 %v6337_v21 }
 0x142   :  { %5618 = vmatprep.subr.bf16.mxu1 %v6338_v22 }
 0x144   :  { %5494 = vmatmul.mubr.msk.f32.gmra.mrb[2].mxu1 %vm253_vm0, %v6645_v49 }
 0x145   :  { %5496 = vmatprep.mubr.msk.f32.mxu1 %vm253_vm0, %v6650_v50  ;;  %5619 = vmatpush3.bf16.msra.mxu1 %v6338_v22 }
 0x148   :  { %5497 = vmatmul.mubr.msk.f32.gmra.mrb[4].mxu1 %vm253_vm0, %v6659_v51 }
 0x149   :  { %5499 = vmatprep.mubr.msk.f32.mxu1 %vm253_vm0, %v6664_v52 }
 0x14c   :  { %5500 = vmatmul.mubr.msk.f32.gmra.mrb[6].mxu1 %vm253_vm0, %v6673_v53 }
 0x14d   :  { %5502 = vmatprep.mubr.msk.f32.mxu1 %vm253_vm0, %v6678_v54 }
 0x150   :  { %5503 = vmatmul.mubr.msk.f32.gmra.mrb[8].mxu1 %vm253_vm0, %v6687_v55 }
 0x151   :  { %5505 = vmatprep.mubr.msk.f32.mxu1 %vm253_vm0, %v6692_v56 }
 0x154   :  { %5506 = vmatmul.mubr.msk.f32.gmra.mrb[10].mxu1 %vm253_vm0, %v6701_v57 }
 0x155   :  { %5508 = vmatprep.mubr.msk.f32.mxu1 %vm253_vm0, %v6706_v58 }
 0x158   :  { %5509 = vmatmul.mubr.msk.f32.gmra.mrb[12].mxu1 %vm253_vm0, %v6715_v59 }
 0x159   :  { %5511 = vmatprep.mubr.msk.f32.mxu1 %vm253_vm0, %v6720_v60 }
 0x15c   :  { %5512 = vmatmul.mubr.msk.f32.gmra.mrb[14].mxu1 %vm253_vm0, %v6729_v61 }
 0x15d   :  { %5514 = vmatprep.mubr.msk.f32.mxu1 %vm253_vm0, %v6734_v62 }
 0x160   :  { %5515 = vmatmul.mubr.msk.f32.gmra.mrb[16].mxu1 %vm253_vm0, %v6743_v63 }
 0x161   :  { %5517 = vmatprep.mubr.msk.f32.mxu1 %vm253_vm0, %v6748_v0 }
 0x164   :  { %5518 = vmatmul.mubr.msk.f32.gmra.mrb[18].mxu1 %vm253_vm0, %v6757_v1 }
 0x165   :  { %5520 = vmatprep.mubr.msk.f32.mxu1 %vm253_vm0, %v6762_v2 }
 0x168   :  { %5521 = vmatmul.mubr.msk.f32.gmra.mrb[20].mxu1 %vm253_vm0, %v6771_v3 }
 0x169   :  { %5523 = vmatprep.mubr.msk.f32.mxu1 %vm253_vm0, %v6776_v4 }
 0x16c   :  { %5524 = vmatmul.mubr.msk.f32.gmra.mrb[22].mxu1 %vm253_vm0, %v6785_v5 }
 0x16d   :  { %5526 = vmatprep.mubr.msk.f32.mxu1 %vm253_vm0, %v6790_v6 }
 0x170   :  { %5527 = vmatmul.mubr.msk.f32.gmra.mrb[24].mxu1 %vm253_vm0, %v6799_v7 }
 0x171   :  { %5529 = vmatprep.mubr.msk.f32.mxu1 %vm253_vm0, %v6804_v8 }
 0x174   :  { %5530 = vmatmul.mubr.msk.f32.gmra.mrb[26].mxu1 %vm253_vm0, %v6813_v9 }
 0x175   :  { %5532 = vmatprep.mubr.msk.f32.mxu1 %vm253_vm0, %v6818_v10 }
 0x178   :  { %5533 = vmatmul.mubr.msk.f32.gmra.mrb[28].mxu1 %vm253_vm0, %v6827_v11 }
 0x179   :  { %5535 = vmatprep.mubr.msk.f32.mxu1 %vm253_vm0, %v6832_v12 }
 0x17c   :  { %5536 = vmatmul.mubr.msk.f32.gmra.mrb[30].mxu1 %vm253_vm0, %v6841_v13 }
 0x17d   :  { %5538 = vmatprep.mubr.msk.f32.mxu1 %vm253_vm0, %v6846_v14 }
 0x180   :  { %5539 = vmatmul.mubr.msk.f32.gmra.mrb[32].mxu1 %vm253_vm0, %v6855_v15 }
 0x181   :  { %5541 = vmatprep.mubr.msk.f32.mxu1 %vm253_vm0, %v6860_v16 }
 0x184   :  { %5542 = vmatmul.mubr.msk.f32.gmra.mrb[34].mxu1 %vm253_vm0, %v6869_v17 }
 0x213   :  { %v5492_v23 = vpop.f32.mrb[0].mxu1 }
 0x214   :  { %v570_v24 = vpop.f32.mrb[1].mxu1 }
 0x215   :  { %v749_v25 = vpack.c.bf16 %v5492_v23, %v570_v24 }
 0x217   :  { %v5495_v26 = vpop.f32.mrb[2].mxu1 }
 0x218   :  { %v580_v27 = vpop.f32.mrb[3].mxu1 }
 0x219   :  { %v750_v28 = vpack.c.bf16 %v5495_v26, %v580_v27 }
 0x21b   :  { %v5498_v29 = vpop.f32.mrb[4].mxu1 }
 0x21c   :  { %v590_v30 = vpop.f32.mrb[5].mxu1 }
 0x21d   :  { %v751_v31 = vpack.c.bf16 %v5498_v29, %v590_v30 }
 0x21f   :  { %v5501_v32 = vpop.f32.mrb[6].mxu1  ;;  %5548 = vmatprep.mubr.msk.bf16.mxu0 %vm253_vm0, %v751_v31 }
 0x220   :  { %v600_v33 = vpop.f32.mrb[7].mxu1 }
 0x221   :  { %v752_v34 = vpack.c.bf16 %v5501_v32, %v600_v33 }
 0x223   :  { %5549 = vmatmul.mubr.msk.bf16.vlgmr.msra.gmra.mrb[8].mxu0 %vm253_vm0, %v752_v34  ;;  %v5504_v41 = vpop.f32.mrb[8].mxu1 }
 0x224   :  { %5553 = vmatpush3.bf16.msra.mxu0 %v6321_v20  ;;  %5556 = vmatprep.mubr.msk.bf16.mxu0 %vm253_vm0, %v749_v25  ;;  %v610_v42 = vpop.f32.mrb[9].mxu1  ;;  %v6324_v20 = vld [vmem:[%s7729_s5 + $0x28] sm:$0xff]   ;;  %v6325_v25 = vld [vmem:[%s7729_s5 + $0x30] sm:$0xff]  }
 0x225   :  { %5554 = vmatprep.subr.bf16.mxu0 %v6322_v35  ;;  %v887_v44 = vpack.c.bf16 %v5504_v41, %v610_v42  ;;  %v6327_v41 = vld [vmem:[%s7729_s5 + $0x40] sm:$0xff]  }
 0x227   :  { %v5507_v45 = vpop.f32.mrb[10].mxu1 }
 0x228   :  { %5555 = vmatpush3.bf16.msra.mxu0 %v6322_v35  ;;  %v620_v46 = vpop.f32.mrb[11].mxu1 }
 0x229   :  { %5560 = vmatprep.subr.bf16.mxu0 %v6323_v43  ;;  %v888_v18 = vpack.c.bf16 %v5507_v45, %v620_v46 }
 0x22b   :  { %v5510_v19 = vpop.f32.mrb[12].mxu1 }
 0x22c   :  { %v630_v21 = vpop.f32.mrb[13].mxu1 }
 0x22d   :  { %v960_v22 = vpack.c.bf16 %v5510_v19, %v630_v21 }
 0x22f   :  { %5557 = vmatmul.mubr.msk.bf16.vlgmr.msra.gmra.mrb[8].mxu0 %vm253_vm0, %v750_v28  ;;  %v5513_v23 = vpop.f32.mrb[14].mxu1  ;;  %v6326_v28 = vld [vmem:[%s7729_s5 + $0x38] sm:$0xff]  }
 0x230   :  { %5561 = vmatpush3.bf16.msra.mxu0 %v6323_v43  ;;  %5564 = vmatprep.mubr.msk.bf16.mxu0 %vm253_vm0, %v887_v44  ;;  %v640_v24 = vpop.f32.mrb[15].mxu1 }
 0x231   :  { %5562 = vmatprep.subr.bf16.mxu0 %v6324_v20  ;;  %v961_v26 = vpack.c.bf16 %v5513_v23, %v640_v24  ;;  %v6329_v23 = vld [vmem:[%s7729_s5 + $0x50] sm:$0xff]  }
 0x233   :  { %v5516_v27 = vpop.f32.mrb[16].mxu1 }
 0x234   :  { %5563 = vmatpush3.bf16.msra.mxu0 %v6324_v20  ;;  %v650_v29 = vpop.f32.mrb[17].mxu1 }
 0x235   :  { %5568 = vmatprep.subr.bf16.mxu0 %v6325_v25  ;;  %v1033_v30 = vpack.c.bf16 %v5516_v27, %v650_v29 }
 0x237   :  { %v5519_v31 = vpop.f32.mrb[18].mxu1 }
 0x238   :  { %v660_v32 = vpop.f32.mrb[19].mxu1 }
 0x239   :  { %v1034_v33 = vpack.c.bf16 %v5519_v31, %v660_v32 }
 0x23b   :  { %5565 = vmatmul.mubr.msk.bf16.vlgmr.msra.gmra.mrb[8].mxu0 %vm253_vm0, %v888_v18  ;;  %v5522_v34 = vpop.f32.mrb[20].mxu1  ;;  %v6328_v18 = vld [vmem:[%s7729_s5 + $0x48] sm:$0xff]  }
 0x23c   :  { %5569 = vmatpush3.bf16.msra.mxu0 %v6325_v25  ;;  %5572 = vmatprep.mubr.msk.bf16.mxu0 %vm253_vm0, %v960_v22  ;;  %v670_v35 = vpop.f32.mrb[21].mxu1 }
 0x23d   :  { %5570 = vmatprep.subr.bf16.mxu0 %v6326_v28  ;;  %v1106_v42 = vpack.c.bf16 %v5522_v34, %v670_v35  ;;  %v6331_v35 = vld [vmem:[%s7729_s5 + $0x60] sm:$0xff]  }
 0x23f   :  { %v5525_v43 = vpop.f32.mrb[22].mxu1 }
 0x240   :  { %5571 = vmatpush3.bf16.msra.mxu0 %v6326_v28  ;;  %v680_v44 = vpop.f32.mrb[23].mxu1 }
 0x241   :  { %5576 = vmatprep.subr.bf16.mxu0 %v6327_v41  ;;  %v1107_v45 = vpack.c.bf16 %v5525_v43, %v680_v44 }
 0x243   :  { %v5528_v46 = vpop.f32.mrb[24].mxu1 }
 0x244   :  { %v690_v19 = vpop.f32.mrb[25].mxu1 }
 0x245   :  { %v1179_v21 = vpack.c.bf16 %v5528_v46, %v690_v19  ;;  %v6334_v19 = vld [vmem:[%s7729_s5 + $0x78] sm:$0xff]  }
 0x247   :  { %5573 = vmatmul.mubr.msk.bf16.vlgmr.msra.gmra.mrb[8].mxu0 %vm253_vm0, %v961_v26  ;;  %v5531_v20 = vpop.f32.mrb[26].mxu1  ;;  %v6330_v26 = vld [vmem:[%s7729_s5 + $0x58] sm:$0xff]  }
 0x248   :  { %5577 = vmatpush3.bf16.msra.mxu0 %v6327_v41  ;;  %5580 = vmatprep.mubr.msk.bf16.mxu0 %vm253_vm0, %v1033_v30  ;;  %v700_v22 = vpop.f32.mrb[27].mxu1 }
 0x249   :  { %5578 = vmatprep.subr.bf16.mxu0 %v6328_v18  ;;  %v1180_v24 = vpack.c.bf16 %v5531_v20, %v700_v22 }
 0x24b   :  { %v5534_v25 = vpop.f32.mrb[28].mxu1 }
 0x24c   :  { %5579 = vmatpush3.bf16.msra.mxu0 %v6328_v18  ;;  %v710_v27 = vpop.f32.mrb[29].mxu1  ;;  %v6336_v18 = vld [vmem:[%s7729_s5 + $0x88] sm:$0xff]  }
 0x24d   :  { %5584 = vmatprep.subr.bf16.mxu0 %v6329_v23  ;;  %v1252_v29 = vpack.c.bf16 %v5534_v25, %v710_v27 }
 0x24f   :  { %v5537_v31 = vpop.f32.mrb[30].mxu1 }
 0x250   :  { %v720_v32 = vpop.f32.mrb[31].mxu1 }
 0x251   :  { %v1253_v28 = vpack.c.bf16 %v5537_v31, %v720_v32 }
 0x253   :  { %5581 = vmatmul.mubr.msk.bf16.vlgmr.msra.gmra.mrb[8].mxu0 %vm253_vm0, %v1034_v33  ;;  %v5540_v30 = vpop.f32.mrb[32].mxu1  ;;  %v6332_v33 = vld [vmem:[%s7729_s5 + $0x68] sm:$0xff]  }
 0x254   :  { %5585 = vmatpush3.bf16.msra.mxu0 %v6329_v23  ;;  %5588 = vmatprep.mubr.msk.bf16.mxu0 %vm253_vm0, %v1106_v42  ;;  %v730_v34 = vpop.f32.mrb[33].mxu1  ;;  %v6333_v42 = vld [vmem:[%s7729_s5 + $0x70] sm:$0xff]  }
 0x255   :  { %5586 = vmatprep.subr.bf16.mxu0 %v6330_v26  ;;  %v1325_v41 = vpack.c.bf16 %v5540_v30, %v730_v34 }
 0x257   :  { %v5543_v43 = vpop.f32.mrb[34].mxu1 }
 0x258   :  { %5587 = vmatpush3.bf16.msra.mxu0 %v6330_v26  ;;  %v740_v44 = vpop.f32.mrb[35].mxu1 }
 0x259   :  { %5592 = vmatprep.subr.bf16.mxu0 %v6331_v35  ;;  %v1326_v46 = vpack.c.bf16 %v5543_v43, %v740_v44 }
 0x25f   :  { %5589 = vmatmul.mubr.msk.bf16.vlgmr.msra.gmra.mrb[8].mxu0 %vm253_vm0, %v1107_v45  ;;  %v6335_v45 = vld [vmem:[%s7729_s5 + $0x80] sm:$0xff]  }
 0x260   :  { %5593 = vmatpush3.bf16.msra.mxu0 %v6331_v35  ;;  %5596 = vmatprep.mubr.msk.bf16.mxu0 %vm253_vm0, %v1179_v21 }
 0x261   :  { %5594 = vmatprep.subr.bf16.mxu0 %v6332_v33 }
 0x264   :  { %5595 = vmatpush3.bf16.msra.mxu0 %v6332_v33 }
 0x265   :  { %5600 = vmatprep.subr.bf16.mxu0 %v6333_v42 }
 0x26b   :  { %5597 = vmatmul.mubr.msk.bf16.vlgmr.msra.gmra.mrb[8].mxu0 %vm253_vm0, %v1180_v24 }
 0x26c   :  { %5601 = vmatpush3.bf16.msra.mxu0 %v6333_v42  ;;  %5604 = vmatprep.mubr.msk.bf16.mxu0 %vm253_vm0, %v1252_v29 }
 0x26d   :  { %5602 = vmatprep.subr.bf16.mxu0 %v6334_v19 }
 0x270   :  { %5603 = vmatpush3.bf16.msra.mxu0 %v6334_v19 }
 0x271   :  { %5608 = vmatprep.subr.bf16.mxu0 %v6335_v45 }
 0x277   :  { %5605 = vmatmul.mubr.msk.bf16.vlgmr.msra.gmra.mrb[8].mxu0 %vm253_vm0, %v1253_v28 }
 0x278   :  { %5609 = vmatpush3.bf16.msra.mxu0 %v6335_v45  ;;  %5612 = vmatprep.mubr.msk.bf16.mxu0 %vm253_vm0, %v1325_v41  ;;  %v6346_v45 = vld [vmem:[%s7731_s7 + $0x38] sm:$0xff]  }
 0x279   :  { %5610 = vmatprep.subr.bf16.mxu0 %v6336_v18 }
 0x27c   :  { %5611 = vmatpush3.bf16.msra.mxu0 %v6336_v18 }
 0x283   :  { %5613 = vmatmul.mubr.msk.bf16.vlgmr.msra.gmra.mrb[8].mxu0 %vm253_vm0, %v1326_v46 }
 0x356   :  { %v5614_v21 = vpop.f32.mrb[8].mxu0 }
 0x357   :  { %v1379_v20 = vpop.f32.mrb[9].mxu0  ;;  %v1400_v23 = vmax.f32 %v5614_v21, 0.0 }
 0x358   :  { %v5615_v22 = vpop.f32.mrb[10].mxu0  ;;  %v1398_v27 = vmax.f32 %v1379_v20, 0.0 }
 0x359   :  { %v1401_v24 = vmax.f32 %v5615_v22, 0.0  ;;  %v1382_v25 = vpop.f32.mrb[11].mxu0  ;;  %v6347_v22 = vld [vmem:[%s7731_s7 + $0x40] sm:$0xff]  }
 0x35a   :  { %v1399_v29 = vmax.f32 %v1382_v25, 0.0 }
 0x35b   :  { %v1403_v31 = vpack.c.bf16 %v1401_v24, %v1400_v23 }
 0x35c   :  { %v1402_v32 = vpack.c.bf16 %v1399_v29, %v1398_v27 }
 0x35e   :  { %5620 = vmatprep.mubr.msk.bf16.mxu1 %vm253_vm0, %v1402_v32  ;;  %v6348_v32 = vld [vmem:[%s7731_s7 + $0x48] sm:$0xff]  }
 0x35f   :  { %5621 = vmatmul.mubr.msk.bf16.vlgmr.msra.gmra.mrb[36].mxu1 %vm253_vm0, %v1403_v31 }
 0x360   :  { %5632 = vmatprep.mubr.msk.f32.mxu1 %vm253_vm0, %v6598_v36 }
 0x432   :  { %v5622_v26 = vpop.f32.mrb[36].mxu1 }
 0x433   :  { %v1460_v28 = vpop.f32.mrb[37].mxu1  ;;  %v6962_v43 = vadd.f32 %v5622_v26, %v6620_v39  ;;  %v6340_v39 = vld [vmem:[%s7731_s7 + $0x18] sm:$0xff]  }
 0x434   :  { %v6956_v30 = vadd.f32 %v1460_v28, %v6616_v37  ;;  %v5623_v34 = vpop.f32.mrb[38].mxu1 }
 0x435   :  { %v6959_v35 = vadd.f32 %v5623_v34, %v6622_v40  ;;  %v1463_v41 = vpop.f32.mrb[39].mxu1  ;;  %v1517_v37 = vmax.f32 %v6962_v43, 0.0  ;;  %v6341_v40 = vld [vmem:[%s7731_s7] sm:$0xff]  }
 0x436   :  { %v6965_v44 = vadd.f32 %v1463_v41, %v6618_v38  ;;  %v1515_v46 = vmax.f32 %v6956_v30, 0.0  ;;  %v6339_v38 = vld [vmem:[%s7731_s7 + $0x10] sm:$0xff]  }
 0x437   :  { %v1518_v36 = vmax.f32 %v6959_v35, 0.0  ;;  %5686 = vmatprep.subr.bf16.mxu0 %v6339_v38  ;;  %v6349_v41 = vld [vmem:[%s7731_s7 + $0x50] sm:$0xff]  }
 0x438   :  { %v1516_v33 = vmax.f32 %v6965_v44, 0.0  ;;  %5687 = vmatpush3.bf16.msra.mxu0 %v6339_v38  ;;  %v6350_v38 = vld [vmem:[%s7731_s7 + $0x58] sm:$0xff]  }
 0x439   :  { %v6114_v19 = vpack.c.bf16 %v1518_v36, %v1517_v37  ;;  %5688 = vmatprep.subr.bf16.mxu0 %v6340_v39 }
 0x43a   :  { %v6110_v42 = vpack.c.bf16 %v1516_v33, %v1515_v46 }
 0x43c   :  { %6111 = vmatprep.subr.bf16.mxu1 %v6110_v42  ;;  %5689 = vmatpush3.bf16.msra.mxu0 %v6340_v39 }
 0x43d   :  { %6113 = vmatpush3.bf16.msra.mxu1 %v6110_v42  ;;  %5694 = vmatprep.subr.bf16.mxu0 %v6341_v40 }
 0x43e   :  { %6115 = vmatprep.subr.bf16.mxu1 %v6114_v19 }
 0x441   :  { %6117 = vmatpush3.bf16.msra.mxu1 %v6114_v19 }
 0x444   :  { %5633 = vmatmul.mubr.msk.f32.vlgmr.msra.gmra.mrb[40].mxu1 %vm253_vm0, %v6631_v47  ;;  %v6357_v47 = vld [vmem:[%s7732_s8] sm:$0xff]  }
 0x445   :  { %5635 = vmatprep.mubr.msk.f32.mxu1 %vm253_vm0, %v6636_v48  ;;  %v6358_v48 = vld [vmem:[%s7732_s8 + $0x8] sm:$0xff]   ;;  %5758 = vmatprep.subr.bf16.mxu1 %v6357_v47 }
 0x446   :  { %5759 = vmatpush3.bf16.msra.mxu1 %v6357_v47 }
 0x447   :  { %5760 = vmatprep.subr.bf16.mxu1 %v6358_v48 }
 0x448   :  { %5636 = vmatmul.mubr.msk.f32.gmra.mrb[42].mxu1 %vm253_vm0, %v6645_v49 }
 0x449   :  { %5638 = vmatprep.mubr.msk.f32.mxu1 %vm253_vm0, %v6650_v50 }
 0x44a   :  { %5761 = vmatpush3.bf16.msra.mxu1 %v6358_v48  ;;  %v6351_v48 = vld [vmem:[%s7731_s7 + $0x60] sm:$0xff]  }
 0x44c   :  { %5639 = vmatmul.mubr.msk.f32.gmra.mrb[44].mxu1 %vm253_vm0, %v6659_v51 }
 0x44d   :  { %5641 = vmatprep.mubr.msk.f32.mxu1 %vm253_vm0, %v6664_v52 }
 0x450   :  { %5642 = vmatmul.mubr.msk.f32.gmra.mrb[46].mxu1 %vm253_vm0, %v6673_v53 }
 0x451   :  { %5644 = vmatprep.mubr.msk.f32.mxu1 %vm253_vm0, %v6678_v54 }
 0x454   :  { %5645 = vmatmul.mubr.msk.f32.gmra.mrb[48].mxu1 %vm253_vm0, %v6687_v55 }
 0x455   :  { %5647 = vmatprep.mubr.msk.f32.mxu1 %vm253_vm0, %v6692_v56 }
 0x458   :  { %5648 = vmatmul.mubr.msk.f32.gmra.mrb[50].mxu1 %vm253_vm0, %v6701_v57 }
 0x459   :  { %5650 = vmatprep.mubr.msk.f32.mxu1 %vm253_vm0, %v6706_v58 }
 0x45c   :  { %5651 = vmatmul.mubr.msk.f32.gmra.mrb[52].mxu1 %vm253_vm0, %v6715_v59 }
 0x45d   :  { %5653 = vmatprep.mubr.msk.f32.mxu1 %vm253_vm0, %v6720_v60 }
 0x460   :  { %5654 = vmatmul.mubr.msk.f32.gmra.mrb[54].mxu1 %vm253_vm0, %v6729_v61  ;;  %v6342_v61 = vld [vmem:[%s7731_s7 + $0x8] sm:$0xff]  }
 0x461   :  { %5656 = vmatprep.mubr.msk.f32.mxu1 %vm253_vm0, %v6734_v62 }
 0x464   :  { %5657 = vmatmul.mubr.msk.f32.gmra.mrb[56].mxu1 %vm253_vm0, %v6743_v63 }
 0x465   :  { %5659 = vmatprep.mubr.msk.f32.mxu1 %vm253_vm0, %v6748_v0  ;;  %v6343_v0 = vld [vmem:[%s7731_s7 + $0x20] sm:$0xff]  }
 0x468   :  { %5660 = vmatmul.mubr.msk.f32.gmra.mrb[58].mxu1 %vm253_vm0, %v6757_v1 }
 0x469   :  { %5662 = vmatprep.mubr.msk.f32.mxu1 %vm253_vm0, %v6762_v2 }
 0x46c   :  { %5663 = vmatmul.mubr.msk.f32.gmra.mrb[60].mxu1 %vm253_vm0, %v6771_v3 }
 0x46d   :  { %5665 = vmatprep.mubr.msk.f32.mxu1 %vm253_vm0, %v6776_v4 }
 0x470   :  { %5666 = vmatmul.mubr.msk.f32.gmra.mrb[62].mxu1 %vm253_vm0, %v6785_v5 }
 0x471   :  { %5668 = vmatprep.mubr.msk.f32.mxu1 %vm253_vm0, %v6790_v6 }
 0x474   :  { %5669 = vmatmul.mubr.msk.f32.gmra.mrb[64].mxu1 %vm253_vm0, %v6799_v7  ;;  %v6344_v7 = vld [vmem:[%s7731_s7 + $0x28] sm:$0xff]  }
 0x475   :  { %5671 = vmatprep.mubr.msk.f32.mxu1 %vm253_vm0, %v6804_v8 }
 0x478   :  { %5672 = vmatmul.mubr.msk.f32.gmra.mrb[66].mxu1 %vm253_vm0, %v6813_v9 }
 0x479   :  { %5674 = vmatprep.mubr.msk.f32.mxu1 %vm253_vm0, %v6818_v10 }
 0x47c   :  { %5675 = vmatmul.mubr.msk.f32.gmra.mrb[68].mxu1 %vm253_vm0, %v6827_v11  ;;  %v6345_v11 = vld [vmem:[%s7731_s7 + $0x30] sm:$0xff]  }
 0x47d   :  { %5677 = vmatprep.mubr.msk.f32.mxu1 %vm253_vm0, %v6832_v12 }
 0x480   :  { %5678 = vmatmul.mubr.msk.f32.gmra.mrb[70].mxu1 %vm253_vm0, %v6841_v13 }
 0x481   :  { %5680 = vmatprep.mubr.msk.f32.mxu1 %vm253_vm0, %v6846_v14 }
 0x484   :  { %5681 = vmatmul.mubr.msk.f32.gmra.mrb[72].mxu1 %vm253_vm0, %v6855_v15 }
 0x485   :  { %5683 = vmatprep.mubr.msk.f32.mxu1 %vm253_vm0, %v6860_v16 }
 0x488   :  { %5684 = vmatmul.mubr.msk.f32.gmra.mrb[74].mxu1 %vm253_vm0, %v6869_v17 }
 0x517   :  { %v5634_v49 = vpop.f32.mrb[40].mxu1 }
 0x518   :  { %v1585_v50 = vpop.f32.mrb[41].mxu1 }
 0x519   :  { %v1764_v51 = vpack.c.bf16 %v5634_v49, %v1585_v50 }
 0x51b   :  { %v5637_v52 = vpop.f32.mrb[42].mxu1 }
 0x51c   :  { %v1595_v53 = vpop.f32.mrb[43].mxu1 }
 0x51d   :  { %v1765_v54 = vpack.c.bf16 %v5637_v52, %v1595_v53  ;;  %v6352_v53 = vld [vmem:[%s7731_s7 + $0x68] sm:$0xff]  }
 0x51f   :  { %v5640_v55 = vpop.f32.mrb[44].mxu1 }
 0x520   :  { %v1605_v56 = vpop.f32.mrb[45].mxu1 }
 0x521   :  { %v1766_v57 = vpack.c.bf16 %v5640_v55, %v1605_v56  ;;  %v6354_v55 = vld [vmem:[%s7731_s7 + $0x78] sm:$0xff]   ;;  %v6355_v56 = vld [vmem:[%s7731_s7 + $0x80] sm:$0xff]  }
 0x523   :  { %v5643_v58 = vpop.f32.mrb[46].mxu1  ;;  %5690 = vmatprep.mubr.msk.bf16.mxu0 %vm253_vm0, %v1766_v57  ;;  %v6356_v57 = vld [vmem:[%s7731_s7 + $0x88] sm:$0xff]  }
 0x524   :  { %v1615_v59 = vpop.f32.mrb[47].mxu1 }
 0x525   :  { %v1767_v60 = vpack.c.bf16 %v5643_v58, %v1615_v59  ;;  %v7122_v58 = vld [vmem:[%s7726_s4] sm:$0xff] }
 0x526   :  { %v2494_v59 = vld [vmem:[%s7733_s10] sm:$0xff] }
 0x527   :  { %5691 = vmatmul.mubr.msk.bf16.vlgmr.msra.gmra.mrb[12].mxu0 %vm253_vm0, %v1767_v60  ;;  %v5646_v62 = vpop.f32.mrb[48].mxu1  ;;  %v2495_v60 = vld [vmem:[%s7733_s10 + $0x8] sm:$0xff] }
 0x528   :  { %5695 = vmatpush3.bf16.msra.mxu0 %v6341_v40  ;;  %5698 = vmatprep.mubr.msk.bf16.mxu0 %vm253_vm0, %v1764_v51  ;;  %v1625_v63 = vpop.f32.mrb[49].mxu1 }
 0x529   :  { %5696 = vmatprep.subr.bf16.mxu0 %v6342_v61  ;;  %v1902_v1 = vpack.c.bf16 %v5646_v62, %v1625_v63 }
 0x52b   :  { %v5649_v2 = vpop.f32.mrb[50].mxu1 }
 0x52c   :  { %5697 = vmatpush3.bf16.msra.mxu0 %v6342_v61  ;;  %v1635_v3 = vpop.f32.mrb[51].mxu1  ;;  %v6118_v61 = vpack.c.bf16 %v2495_v60, %v2494_v59  ;;  %v6437_v60 = vmov 1.0  }
 0x52d   :  { %5702 = vmatprep.subr.bf16.mxu0 %v6343_v0  ;;  %v1903_v4 = vpack.c.bf16 %v5649_v2, %v1635_v3 }
 0x52e   :  { %6119 = vmatprep.subr.bf16.mxu1 %v6118_v61 }
 0x52f   :  { %v5652_v5 = vpop.f32.mrb[52].mxu1 }
 0x530   :  { %v1645_v6 = vpop.f32.mrb[53].mxu1 }
 0x531   :  { %v1975_v8 = vpack.c.bf16 %v5652_v5, %v1645_v6 }
 0x533   :  { %5699 = vmatmul.mubr.msk.bf16.vlgmr.msra.gmra.mrb[12].mxu0 %vm253_vm0, %v1765_v54  ;;  %v5655_v9 = vpop.f32.mrb[54].mxu1  ;;  %v6353_v54 = vld [vmem:[%s7731_s7 + $0x70] sm:$0xff]  }
 0x534   :  { %5703 = vmatpush3.bf16.msra.mxu0 %v6343_v0  ;;  %5706 = vmatprep.mubr.msk.bf16.mxu0 %vm253_vm0, %v1902_v1  ;;  %v1655_v10 = vpop.f32.mrb[55].mxu1 }
 0x535   :  { %5704 = vmatprep.subr.bf16.mxu0 %v6344_v7  ;;  %v1976_v12 = vpack.c.bf16 %v5655_v9, %v1655_v10  ;;  %v2497_v9 = vld [vmem:[%s7733_s10 + $0x18] sm:$0xff] }
 0x537   :  { %v5658_v13 = vpop.f32.mrb[56].mxu1 }
 0x538   :  { %5705 = vmatpush3.bf16.msra.mxu0 %v6344_v7  ;;  %v1665_v14 = vpop.f32.mrb[57].mxu1 }
 0x539   :  { %5710 = vmatprep.subr.bf16.mxu0 %v6345_v11  ;;  %v2048_v15 = vpack.c.bf16 %v5658_v13, %v1665_v14 }
 0x53b   :  { %v5661_v16 = vpop.f32.mrb[58].mxu1 }
 0x53c   :  { %v1675_v17 = vpop.f32.mrb[59].mxu1 }
 0x53d   :  { %v2049_v18 = vpack.c.bf16 %v5661_v16, %v1675_v17 }
 0x53f   :  { %5707 = vmatmul.mubr.msk.bf16.vlgmr.msra.gmra.mrb[12].mxu0 %vm253_vm0, %v1903_v4  ;;  %v5664_v21 = vpop.f32.mrb[60].mxu1 }
 0x540   :  { %5711 = vmatpush3.bf16.msra.mxu0 %v6345_v11  ;;  %5714 = vmatprep.mubr.msk.bf16.mxu0 %vm253_vm0, %v1975_v8  ;;  %v1685_v20 = vpop.f32.mrb[61].mxu1  ;;  %v2496_v8 = vld [vmem:[%s7733_s10 + $0x10] sm:$0xff] }
 0x541   :  { %5712 = vmatprep.subr.bf16.mxu0 %v6346_v45  ;;  %v2121_v23 = vpack.c.bf16 %v5664_v21, %v1685_v20  ;;  %v6122_v10 = vpack.c.bf16 %v2497_v9, %v2496_v8  ;;  %v2635_v21 = vld [vmem:[%s7734_s9 + $0x18] sm:$0xff]  ;;  %v2636_v20 = vld [vmem:[%s7734_s9 + $0x20] sm:$0xff] }
 0x543   :  { %v5667_v24 = vpop.f32.mrb[62].mxu1 }
 0x544   :  { %5713 = vmatpush3.bf16.msra.mxu0 %v6346_v45  ;;  %v1695_v25 = vpop.f32.mrb[63].mxu1 }
 0x545   :  { %5718 = vmatprep.subr.bf16.mxu0 %v6347_v22  ;;  %v2122_v27 = vpack.c.bf16 %v5667_v24, %v1695_v25  ;;  %v2638_v24 = vld [vmem:[%s7734_s9 + $0x30] sm:$0xff]  ;;  %v2639_v25 = vld [vmem:[%s7734_s9 + $0x38] sm:$0xff] }
 0x547   :  { %v5670_v29 = vpop.f32.mrb[64].mxu1 }
 0x548   :  { %v1705_v31 = vpop.f32.mrb[65].mxu1 }
 0x549   :  { %v2194_v26 = vpack.c.bf16 %v5670_v29, %v1705_v31  ;;  %v2640_v29 = vld [vmem:[%s7734_s9 + $0x40] sm:$0xff]  ;;  %v2641_v31 = vld [vmem:[%s7734_s9 + $0x48] sm:$0xff] }
 0x54b   :  { %5715 = vmatmul.mubr.msk.bf16.vlgmr.msra.gmra.mrb[12].mxu0 %vm253_vm0, %v1976_v12  ;;  %v5673_v28 = vpop.f32.mrb[66].mxu1 }
 0x54c   :  { %5719 = vmatpush3.bf16.msra.mxu0 %v6347_v22  ;;  %5722 = vmatprep.mubr.msk.bf16.mxu0 %vm253_vm0, %v2048_v15  ;;  %v1715_v34 = vpop.f32.mrb[67].mxu1  ;;  %v2637_v22 = vld [vmem:[%s7734_s9 + $0x28] sm:$0xff] }
 0x54d   :  { %5720 = vmatprep.subr.bf16.mxu0 %v6348_v32  ;;  %v2195_v46 = vpack.c.bf16 %v5673_v28, %v1715_v34  ;;  %v2643_v28 = vld [vmem:[%s7734_s9 + $0x58] sm:$0xff] }
 0x54f   :  { %v5676_v36 = vpop.f32.mrb[68].mxu1 }
 0x550   :  { %5721 = vmatpush3.bf16.msra.mxu0 %v6348_v32  ;;  %v1725_v33 = vpop.f32.mrb[69].mxu1  ;;  %v6142_v32 = vpack.c.bf16 %v2641_v31, %v2640_v29  ;;  %v7361_v29 = vld [vmem:[%s7726_s4 + $0xb0] sm:$0xff]  ;;  %v7368_v31 = vld [vmem:[%s7726_s4 + $0xb8] sm:$0xff] }
 0x551   :  { %5726 = vmatprep.subr.bf16.mxu0 %v6349_v41  ;;  %v2267_v37 = vpack.c.bf16 %v5676_v36, %v1725_v33 }
 0x553   :  { %v5679_v42 = vpop.f32.mrb[70].mxu1 }
 0x554   :  { %v1735_v19 = vpop.f32.mrb[71].mxu1 }
 0x555   :  { %v2268_v39 = vpack.c.bf16 %v5679_v42, %v1735_v19  ;;  %v4945_v42 = vld [vmem:[%s7735_s11] ss:$0 sm:$0xff] }
 0x557   :  { %5723 = vmatmul.mubr.msk.bf16.vlgmr.msra.gmra.mrb[12].mxu0 %vm253_vm0, %v2049_v18  ;;  %v5682_v40 = vpop.f32.mrb[72].mxu1 }
 0x558   :  { %5727 = vmatpush3.bf16.msra.mxu0 %v6349_v41  ;;  %5730 = vmatprep.mubr.msk.bf16.mxu0 %vm253_vm0, %v2121_v23  ;;  %v1745_v47 = vpop.f32.mrb[73].mxu1  ;;  %v6134_v23 = vpack.c.bf16 %v2637_v22, %v2636_v20  ;;  %v2644_v41 = vld [vmem:[%s7734_s9 + $0x60] sm:$0xff]  ;;  %v7326_v22 = vld [vmem:[%s7726_s4 + $0x88] sm:$0xff] }
 0x559   :  { %5728 = vmatprep.subr.bf16.mxu0 %v6350_v38  ;;  %v2340_v49 = vpack.c.bf16 %v5682_v40, %v1745_v47  ;;  %v7319_v20 = vld [vmem:[%s7726_s4 + $0x80] sm:$0xff] }
 0x55b   :  { %v5685_v50 = vpop.f32.mrb[74].mxu1 }
 0x55c   :  { %5729 = vmatpush3.bf16.msra.mxu0 %v6350_v38  ;;  %v1755_v51 = vpop.f32.mrb[75].mxu1 }
 0x55d   :  { %5734 = vmatprep.subr.bf16.mxu0 %v6351_v48  ;;  %v2341_v52 = vpack.c.bf16 %v5685_v50, %v1755_v51 }
 0x563   :  { %5731 = vmatmul.mubr.msk.bf16.vlgmr.msra.gmra.mrb[12].mxu0 %vm253_vm0, %v2122_v27  ;;  %v6138_v27 = vpack.c.bf16 %v2639_v25, %v2638_v24  ;;  %v7340_v24 = vld [vmem:[%s7726_s4 + $0x98] sm:$0xff]  ;;  %v7347_v25 = vld [vmem:[%s7726_s4 + $0xa0] sm:$0xff] }
 0x564   :  { %5735 = vmatpush3.bf16.msra.mxu0 %v6351_v48  ;;  %5738 = vmatprep.mubr.msk.bf16.mxu0 %vm253_vm0, %v2194_v26  ;;  %v2642_v26 = vld [vmem:[%s7734_s9 + $0x50] sm:$0xff] }
 0x565   :  { %5736 = vmatprep.subr.bf16.mxu0 %v6352_v53  ;;  %v6146_v34 = vpack.c.bf16 %v2643_v28, %v2642_v26  ;;  %v7382_v26 = vld [vmem:[%s7726_s4 + $0xc8] sm:$0xff]  ;;  %v7389_v28 = vld [vmem:[%s7726_s4 + $0xd0] sm:$0xff] }
 0x568   :  { %5737 = vmatpush3.bf16.msra.mxu0 %v6352_v53  ;;  %v2646_v53 = vld [vmem:[%s7734_s9 + $0x70] sm:$0xff] }
 0x569   :  { %5742 = vmatprep.subr.bf16.mxu0 %v6353_v54 }
 0x56f   :  { %5739 = vmatmul.mubr.msk.bf16.vlgmr.msra.gmra.mrb[12].mxu0 %vm253_vm0, %v2195_v46  ;;  %v2645_v46 = vld [vmem:[%s7734_s9 + $0x68] sm:$0xff] }
 0x570   :  { %5743 = vmatpush3.bf16.msra.mxu0 %v6353_v54  ;;  %5746 = vmatprep.mubr.msk.bf16.mxu0 %vm253_vm0, %v2267_v37  ;;  %v6150_v36 = vpack.c.bf16 %v2645_v46, %v2644_v41  ;;  %v2647_v54 = vld [vmem:[%s7734_s9 + $0x78] sm:$0xff]  ;;  %v7403_v41 = vld [vmem:[%s7726_s4 + $0xe0] sm:$0xff]  ;;  %v7410_v46 = vld [vmem:[%s7726_s4 + $0xe8] sm:$0xff] }
 0x571   :  { %5744 = vmatprep.subr.bf16.mxu0 %v6354_v55 }
 0x574   :  { %5745 = vmatpush3.bf16.msra.mxu0 %v6354_v55  ;;  %v6154_v55 = vpack.c.bf16 %v2647_v54, %v2646_v53 }
 0x575   :  { %5750 = vmatprep.subr.bf16.mxu0 %v6355_v56 }
 0x57b   :  { %5747 = vmatmul.mubr.msk.bf16.vlgmr.msra.gmra.mrb[12].mxu0 %vm253_vm0, %v2268_v39 }
 0x57c   :  { %5751 = vmatpush3.bf16.msra.mxu0 %v6355_v56  ;;  %5754 = vmatprep.mubr.msk.bf16.mxu0 %vm253_vm0, %v2340_v49  ;;  %v2618_v56 = vlaneseq }
 0x57d   :  { %5752 = vmatprep.subr.bf16.mxu0 %v6356_v57 }
 0x580   :  { %5753 = vmatpush3.bf16.msra.mxu0 %v6356_v57  ;;  %v2619_v57 = vand.u32 127, %v2618_v56 }
 0x587   :  { %5755 = vmatmul.mubr.msk.bf16.vlgmr.msra.gmra.mrb[12].mxu0 %vm253_vm0, %v2341_v52 }
 0x588   :  { %5826 = vmatprep.mubr.msk.f32.mxu0 %vm253_vm0, %v7122_v58 }
 0x65a   :  { %v5756_v62 = vpop.f32.mrb[12].mxu0 }
 0x65b   :  { %v2394_v63 = vpop.f32.mrb[13].mxu0  ;;  %v2415_v1 = vmax.f32 %v5756_v62, 0.0 }
 0x65c   :  { %v5757_v0 = vpop.f32.mrb[14].mxu0  ;;  %v2413_v4 = vmax.f32 %v2394_v63, 0.0 }
 0x65d   :  { %v2416_v2 = vmax.f32 %v5757_v0, 0.0  ;;  %v2397_v3 = vpop.f32.mrb[15].mxu0 }
 0x65e   :  { %v2414_v5 = vmax.f32 %v2397_v3, 0.0 }
 0x65f   :  { %v2418_v6 = vpack.c.bf16 %v2416_v2, %v2415_v1 }
 0x660   :  { %v2417_v7 = vpack.c.bf16 %v2414_v5, %v2413_v4 }
 0x662   :  { %5762 = vmatprep.mubr.msk.bf16.mxu1 %vm253_vm0, %v2417_v7 }
 0x663   :  { %5763 = vmatmul.mubr.msk.bf16.vlgmr.msra.gmra.mrb[76].mxu1 %vm253_vm0, %v2418_v6 }
 0x664   :  { %6121 = vmatpush3.bf16.msra.mxu1 %v6118_v61 }
 0x665   :  { %6123 = vmatprep.subr.bf16.mxu1 %v6122_v10 }
 0x668   :  { %6125 = vmatpush3.bf16.msra.mxu1 %v6122_v10  ;;  %v7214_v10 = vld [vmem:[%s7726_s4 + $0x8] sm:$0xff] }
 0x736   :  { %v5764_v11 = vpop.f32.mrb[76].mxu1 }
 0x737   :  { %v2475_v12 = vpop.f32.mrb[77].mxu1  ;;  %v2492_v17 = vadd.f32 %v5764_v11, %v6962_v43  ;;  %v2634_v43 = vld [vmem:[%s7734_s9 + $0x10] sm:$0xff] }
 0x738   :  { %v2490_v13 = vadd.f32 %v2475_v12, %v6956_v30  ;;  %v5765_v14 = vpop.f32.mrb[78].mxu1  ;;  %v2632_v30 = vld [vmem:[%s7734_s9] sm:$0xff]  ;;  %v7221_v11 = vld [vmem:[%s7726_s4 + $0x10] sm:$0xff]  ;;  %v7228_v12 = vld [vmem:[%s7726_s4 + $0x18] sm:$0xff] }
 0x739   :  { %v2478_v15 = vpop.f32.mrb[79].mxu1  ;;  %v2493_v45 = vadd.f32 %v5765_v14, %v6959_v35  ;;  %v6130_v35 = vpack.c.bf16 %v2635_v21, %v2634_v43  ;;  %v7242_v14 = vld [vmem:[%s7726_s4 + $0x28] sm:$0xff]  ;;  %v7291_v43 = vld [vmem:[%s7726_s4 + $0x60] sm:$0xff]  ;;  %v7305_v21 = vld [vmem:[%s7726_s4 + $0x70] sm:$0xff] }
 0x73a   :  { %v2491_v16 = vadd.f32 %v2478_v15, %v6965_v44  ;;  %5774 = vmatprep.mubr.msk.f32.mxu1 %vm253_vm0, %v2490_v13  ;;  %v2633_v44 = vld [vmem:[%s7734_s9 + $0x8] sm:$0xff]  ;;  %v7235_v13 = vld [vmem:[%s7726_s4 + $0x20] sm:$0xff]  ;;  %v7249_v15 = vld [vmem:[%s7726_s4 + $0x30] sm:$0xff] }
 0x73b   :  { %v6126_v18 = vpack.c.bf16 %v2633_v44, %v2632_v30  ;;  %v7277_v30 = vld [vmem:[%s7726_s4 + $0x50] sm:$0xff]  ;;  %v7284_v44 = vld [vmem:[%s7726_s4 + $0x58] sm:$0xff] }
 0x73c   :  { %5775 = vmatmul.mubr.msk.f32.vlgmr.msra.gmra.mrb[80].mxu1 %vm253_vm0, %v2491_v16  ;;  %v7256_v16 = vld [vmem:[%s7726_s4 + $0x38] sm:$0xff] }
 0x73d   :  { %5777 = vmatprep.mubr.msk.f32.mxu1 %vm253_vm0, %v2492_v17  ;;  %6127 = vmatprep.subr.bf16.mxu1 %v6126_v18  ;;  %v7263_v17 = vld [vmem:[%s7726_s4 + $0x40] sm:$0xff] }
 0x73e   :  { %6129 = vmatpush3.bf16.msra.mxu1 %v6126_v18  ;;  %v7298_v18 = vld [vmem:[%s7726_s4 + $0x68] sm:$0xff] }
 0x73f   :  { %6131 = vmatprep.subr.bf16.mxu1 %v6130_v35 }
 0x740   :  { %5778 = vmatmul.mubr.msk.f32.gmra.mrb[82].mxu1 %vm253_vm0, %v2493_v45  ;;  %v7270_v45 = vld [vmem:[%s7726_s4 + $0x48] sm:$0xff] }
 0x742   :  { %6133 = vmatpush3.bf16.msra.mxu1 %v6130_v35  ;;  %v7312_v35 = vld [vmem:[%s7726_s4 + $0x78] sm:$0xff] }
 0x743   :  { %6135 = vmatprep.subr.bf16.mxu1 %v6134_v23 }
 0x746   :  { %6137 = vmatpush3.bf16.msra.mxu1 %v6134_v23  ;;  %v7333_v23 = vld [vmem:[%s7726_s4 + $0x90] sm:$0xff] }
 0x747   :  { %6139 = vmatprep.subr.bf16.mxu1 %v6138_v27 }
 0x74a   :  { %6141 = vmatpush3.bf16.msra.mxu1 %v6138_v27  ;;  %v7354_v27 = vld [vmem:[%s7726_s4 + $0xa8] sm:$0xff] }
 0x74b   :  { %6143 = vmatprep.subr.bf16.mxu1 %v6142_v32 }
 0x74e   :  { %6145 = vmatpush3.bf16.msra.mxu1 %v6142_v32  ;;  %v7375_v32 = vld [vmem:[%s7726_s4 + $0xc0] sm:$0xff] }
 0x74f   :  { %6147 = vmatprep.subr.bf16.mxu1 %v6146_v34 }
 0x752   :  { %6149 = vmatpush3.bf16.msra.mxu1 %v6146_v34  ;;  %v7396_v34 = vld [vmem:[%s7726_s4 + $0xd8] sm:$0xff] }
 0x753   :  { %6151 = vmatprep.subr.bf16.mxu1 %v6150_v36 }
 0x756   :  { %6153 = vmatpush3.bf16.msra.mxu1 %v6150_v36  ;;  %v7417_v36 = vld [vmem:[%s7726_s4 + $0xf0] sm:$0xff] }
 0x757   :  { %6155 = vmatprep.subr.bf16.mxu1 %v6154_v55 }
 0x75a   :  { %6157 = vmatpush3.bf16.msra.mxu1 %v6154_v55 }
 0x80f   :  { %v5776_v33 = vpop.f32.mrb[80].mxu1 }
 0x810   :  { %v2576_v37 = vpop.f32.mrb[81].mxu1  ;;  %v2597_v38 = vmul.f32 2.0, %v5776_v33  ;;  %v7424_v33 = vld [vmem:[%s7726_s4 + $0xf8] sm:$0xff] }
 0x811   :  { %v2596_v19 = vmul.f32 2.0, %v2576_v37  ;;  %v7431_v37 = vld [vmem:[%s7726_s4 + $0x100] sm:$0xff] }
 0x812   :  { %v2607_v50 = vsub.f32 %v4945_v42, %v2597_v38  ;;  %v7452_v38 = vld [vmem:[%s7726_s4 + $0x118] sm:$0xff] }
 0x813   :  { %v5779_v39 = vpop.f32.mrb[82].mxu1  ;;  %v2606_v40 = vsub.f32 %v4945_v42, %v2596_v19  ;;  %v7445_v19 = vld [vmem:[%s7726_s4 + $0x110] sm:$0xff] }
 0x814   :  { %v2586_v47 = vpop.f32.mrb[83].mxu1  ;;  %v2599_v49 = vmul.f32 2.0, %v5779_v39  ;;  %v6359_v39 = vld [vmem:[%s7736_s12 + $0x10] sm:$0xff]  }
 0x815   :  { %v2598_v48 = vmul.f32 2.0, %v2586_v47  ;;  %2610 = vmin.index.xlane.f32.xlu0 %v2606_v40  ;;  %5880 = vmatprep.subr.bf16.mxu1 %v6359_v39  ;;  %v6360_v40 = vld [vmem:[%s7736_s12 + $0x18] sm:$0xff]   ;;  %v6361_v47 = vld [vmem:[%s7736_s12] sm:$0xff]  }
 0x816   :  { %v2609_v52 = vsub.f32 %v4945_v42, %v2599_v49  ;;  %v6378_v49 = vld [vmem:[%s7737_s13 + $0x8] sm:$0xff]  }
 0x817   :  { %v2608_v51 = vsub.f32 %v4945_v42, %v2598_v48  ;;  %v7438_v42 = vld [vmem:[%s7726_s4 + $0x108] sm:$0xff]  ;;  %v6377_v48 = vld [vmem:[%s7737_s13] sm:$0xff]  }
 0x819   :  { %2612 = vmin.index.xlane.f32.xlu0 %v2607_v50  ;;  %2614 = vmin.index.xlane.f32.xlu1 %v2608_v51 }
 0x81d   :  { %2616 = vmin.index.xlane.f32.xlu1 %v2609_v52 }
 0x8a2   :  { %v2611_v59 = vpop.xlane.xlu0 %2610 }
 0x8a3   :  { %vm2620_vm1 = vcmp.eq.s32.totalorder %v2611_v59, %v2619_v57 }
 0x8a4   :  { %5812 = vmatprep.mubr.msk.f32.mxu1 %vm2620_vm1, %v6437_v60 }
 0x8a6   :  { %v2613_v61 = vpop.xlane.xlu0 %2612  ;;  %v2615_v62 = vpop.xlane.xlu1 %2614 }
 0x8a7   :  { %vm2621_vm2 = vcmp.eq.s32.totalorder %v2613_v61, %v2619_v57  ;;  %vm2622_vm3 = vcmp.eq.s32.totalorder %v2615_v62, %v2619_v57 }
 0x8a8   :  { %5813 = vmatmul.mubr.msk.f32.vlgmr.msra.gmra.mrb[84].mxu1 %vm2621_vm2, %v6437_v60 }
 0x8a9   :  { %5815 = vmatprep.mubr.msk.f32.mxu1 %vm2622_vm3, %v6437_v60  ;;  %5881 = vmatpush3.bf16.msra.mxu1 %v6359_v39 }
 0x8aa   :  { %v2617_v63 = vpop.xlane.xlu1 %2616  ;;  %5882 = vmatprep.subr.bf16.mxu1 %v6360_v40 }
 0x8ab   :  { %vm2623_vm4 = vcmp.eq.s32.totalorder %v2617_v63, %v2619_v57  ;;  %v6362_v63 = vld [vmem:[%s7736_s12 + $0x8] sm:$0xff]  }
 0x8ac   :  { %5816 = vmatmul.mubr.msk.f32.gmra.mrb[86].mxu1 %vm2623_vm4, %v6437_v60 }
 0x8ad   :  { %5883 = vmatpush3.bf16.msra.mxu1 %v6360_v40 }
 0x8ae   :  { %5888 = vmatprep.subr.bf16.mxu1 %v6361_v47 }
 0x97b   :  { %v7199_v0 = vpop.f32.mrb[84].mxu1 }
 0x97c   :  { %v2770_v1 = vmax.f32 %v7199_v0, 0.0  ;;  %v7202_v2 = vpop.f32.mrb[85].mxu1 }
 0x97d   :  { %v2769_v3 = vmax.f32 %v7202_v2, 0.0 }
 0x97f   :  { %v6158_v4 = vpack.c.bf16 %v2770_v1, %v2769_v3  ;;  %v7205_v5 = vpop.f32.mrb[86].mxu1 }
 0x980   :  { %v2772_v6 = vmax.f32 %v7205_v5, 0.0  ;;  %v7208_v7 = vpop.f32.mrb[87].mxu1 }
 0x981   :  { %v2771_v8 = vmax.f32 %v7208_v7, 0.0  ;;  %6159 = vmatprep.subr.bf16.mxu0 %v6158_v4 }
 0x982   :  { %6161 = vmatpush3.bf16.msra.mxu0 %v6158_v4  ;;  %v6363_v4 = vld [vmem:[%s7736_s12 + $0x20] sm:$0xff]  }
 0x983   :  { %v6162_v9 = vpack.c.bf16 %v2772_v6, %v2771_v8 }
 0x985   :  { %6163 = vmatprep.subr.bf16.mxu0 %v6162_v9 }
 0x986   :  { %6165 = vmatpush3.bf16.msra.mxu0 %v6162_v9 }
 0x987   :  { %5952 = vmatprep.subr.bf16.mxu0 %v6377_v48 }
 0x989   :  { %5827 = vmatmul.mubr.msk.f32.vlgmr.msra.gmra.mrb[16].mxu0 %vm253_vm0, %v7214_v10 }
 0x98a   :  { %5829 = vmatprep.mubr.msk.f32.mxu0 %vm253_vm0, %v7221_v11  ;;  %5953 = vmatpush3.bf16.msra.mxu0 %v6377_v48 }
 0x98b   :  { %5954 = vmatprep.subr.bf16.mxu0 %v6378_v49 }
 0x98d   :  { %5830 = vmatmul.mubr.msk.f32.gmra.mrb[18].mxu0 %vm253_vm0, %v7228_v12 }
 0x98e   :  { %5832 = vmatprep.mubr.msk.f32.mxu0 %vm253_vm0, %v7235_v13  ;;  %5955 = vmatpush3.bf16.msra.mxu0 %v6378_v49 }
 0x991   :  { %5833 = vmatmul.mubr.msk.f32.gmra.mrb[20].mxu0 %vm253_vm0, %v7242_v14 }
 0x992   :  { %5835 = vmatprep.mubr.msk.f32.mxu0 %vm253_vm0, %v7249_v15 }
 0x995   :  { %5836 = vmatmul.mubr.msk.f32.gmra.mrb[22].mxu0 %vm253_vm0, %v7256_v16 }
 0x996   :  { %5838 = vmatprep.mubr.msk.f32.mxu0 %vm253_vm0, %v7263_v17 }
 0x999   :  { %5839 = vmatmul.mubr.msk.f32.gmra.mrb[24].mxu0 %vm253_vm0, %v7270_v45 }
 0x99a   :  { %5841 = vmatprep.mubr.msk.f32.mxu0 %vm253_vm0, %v7277_v30 }
 0x99d   :  { %5842 = vmatmul.mubr.msk.f32.gmra.mrb[26].mxu0 %vm253_vm0, %v7284_v44 }
 0x99e   :  { %5844 = vmatprep.mubr.msk.f32.mxu0 %vm253_vm0, %v7291_v43 }
 0x9a1   :  { %5845 = vmatmul.mubr.msk.f32.gmra.mrb[28].mxu0 %vm253_vm0, %v7298_v18 }
 0x9a2   :  { %5847 = vmatprep.mubr.msk.f32.mxu0 %vm253_vm0, %v7305_v21 }
 0x9a5   :  { %5848 = vmatmul.mubr.msk.f32.gmra.mrb[30].mxu0 %vm253_vm0, %v7312_v35 }
 0x9a6   :  { %5850 = vmatprep.mubr.msk.f32.mxu0 %vm253_vm0, %v7319_v20 }
 0x9a9   :  { %5851 = vmatmul.mubr.msk.f32.gmra.mrb[32].mxu0 %vm253_vm0, %v7326_v22 }
 0x9aa   :  { %5853 = vmatprep.mubr.msk.f32.mxu0 %vm253_vm0, %v7333_v23 }
 0x9ad   :  { %5854 = vmatmul.mubr.msk.f32.gmra.mrb[34].mxu0 %vm253_vm0, %v7340_v24 }
 0x9ae   :  { %5856 = vmatprep.mubr.msk.f32.mxu0 %vm253_vm0, %v7347_v25 }
 0x9b1   :  { %5857 = vmatmul.mubr.msk.f32.gmra.mrb[36].mxu0 %vm253_vm0, %v7354_v27 }
 0x9b2   :  { %5859 = vmatprep.mubr.msk.f32.mxu0 %vm253_vm0, %v7361_v29 }
 0x9b5   :  { %5860 = vmatmul.mubr.msk.f32.gmra.mrb[38].mxu0 %vm253_vm0, %v7368_v31 }
 0x9b6   :  { %5862 = vmatprep.mubr.msk.f32.mxu0 %vm253_vm0, %v7375_v32 }
 0x9b9   :  { %5863 = vmatmul.mubr.msk.f32.gmra.mrb[40].mxu0 %vm253_vm0, %v7382_v26 }
 0x9ba   :  { %5865 = vmatprep.mubr.msk.f32.mxu0 %vm253_vm0, %v7389_v28 }
 0x9bd   :  { %5866 = vmatmul.mubr.msk.f32.gmra.mrb[42].mxu0 %vm253_vm0, %v7396_v34 }
 0x9be   :  { %5868 = vmatprep.mubr.msk.f32.mxu0 %vm253_vm0, %v7403_v41 }
 0x9c1   :  { %5869 = vmatmul.mubr.msk.f32.gmra.mrb[44].mxu0 %vm253_vm0, %v7410_v46 }
 0x9c2   :  { %5871 = vmatprep.mubr.msk.f32.mxu0 %vm253_vm0, %v7417_v36 }
 0x9c5   :  { %5872 = vmatmul.mubr.msk.f32.gmra.mrb[46].mxu0 %vm253_vm0, %v7424_v33 }
 0x9c6   :  { %5874 = vmatprep.mubr.msk.f32.mxu0 %vm253_vm0, %v7431_v37 }
 0x9c9   :  { %5875 = vmatmul.mubr.msk.f32.gmra.mrb[48].mxu0 %vm253_vm0, %v7438_v42 }
 0x9ca   :  { %5877 = vmatprep.mubr.msk.f32.mxu0 %vm253_vm0, %v7445_v19 }
 0x9cd   :  { %5878 = vmatmul.mubr.msk.f32.gmra.mrb[50].mxu0 %vm253_vm0, %v7452_v38 }
 0xa5c   :  { %v5828_v50 = vpop.f32.mrb[16].mxu0 }
 0xa5d   :  { %v2839_v51 = vpop.f32.mrb[17].mxu0 }
 0xa5e   :  { %v3018_v52 = vpack.c.bf16 %v5828_v50, %v2839_v51 }
 0xa60   :  { %v5831_v53 = vpop.f32.mrb[18].mxu0 }
 0xa61   :  { %v2849_v54 = vpop.f32.mrb[19].mxu0 }
 0xa62   :  { %v3019_v55 = vpack.c.bf16 %v5831_v53, %v2849_v54 }
 0xa64   :  { %v5834_v56 = vpop.f32.mrb[20].mxu0 }
 0xa65   :  { %v2859_v57 = vpop.f32.mrb[21].mxu0 }
 0xa66   :  { %v3020_v59 = vpack.c.bf16 %v5834_v56, %v2859_v57 }
 0xa68   :  { %v5837_v60 = vpop.f32.mrb[22].mxu0  ;;  %5884 = vmatprep.mubr.msk.bf16.mxu1 %vm253_vm0, %v3020_v59 }
 0xa69   :  { %v2869_v61 = vpop.f32.mrb[23].mxu0 }
 0xa6a   :  { %v3021_v62 = vpack.c.bf16 %v5837_v60, %v2869_v61 }
 0xa6c   :  { %5885 = vmatmul.mubr.msk.bf16.vlgmr.msra.gmra.mrb[88].mxu1 %vm253_vm0, %v3021_v62  ;;  %v5840_v1 = vpop.f32.mrb[24].mxu0 }
 0xa6d   :  { %5889 = vmatpush3.bf16.msra.mxu1 %v6361_v47  ;;  %5892 = vmatprep.mubr.msk.bf16.mxu1 %vm253_vm0, %v3018_v52  ;;  %v2879_v3 = vpop.f32.mrb[25].mxu0  ;;  %v6364_v47 = vld [vmem:[%s7736_s12 + $0x28] sm:$0xff]   ;;  %v6365_v52 = vld [vmem:[%s7736_s12 + $0x30] sm:$0xff]  }
 0xa6e   :  { %5890 = vmatprep.subr.bf16.mxu1 %v6362_v63  ;;  %v3156_v6 = vpack.c.bf16 %v5840_v1, %v2879_v3  ;;  %v6367_v1 = vld [vmem:[%s7736_s12 + $0x40] sm:$0xff]  }
 0xa70   :  { %v5843_v8 = vpop.f32.mrb[26].mxu0 }
 0xa71   :  { %5891 = vmatpush3.bf16.msra.mxu1 %v6362_v63  ;;  %v2889_v9 = vpop.f32.mrb[27].mxu0 }
 0xa72   :  { %5896 = vmatprep.subr.bf16.mxu1 %v6363_v4  ;;  %v3157_v39 = vpack.c.bf16 %v5843_v8, %v2889_v9 }
 0xa74   :  { %v5846_v40 = vpop.f32.mrb[28].mxu0 }
 0xa75   :  { %v2899_v48 = vpop.f32.mrb[29].mxu0 }
 0xa76   :  { %v3229_v49 = vpack.c.bf16 %v5846_v40, %v2899_v48 }
 0xa78   :  { %5893 = vmatmul.mubr.msk.bf16.vlgmr.msra.gmra.mrb[88].mxu1 %vm253_vm0, %v3019_v55  ;;  %v5849_v50 = vpop.f32.mrb[30].mxu0  ;;  %v6366_v55 = vld [vmem:[%s7736_s12 + $0x38] sm:$0xff]  }
 0xa79   :  { %5897 = vmatpush3.bf16.msra.mxu1 %v6363_v4  ;;  %5900 = vmatprep.mubr.msk.bf16.mxu1 %vm253_vm0, %v3156_v6  ;;  %v2909_v51 = vpop.f32.mrb[31].mxu0 }
 0xa7a   :  { %5898 = vmatprep.subr.bf16.mxu1 %v6364_v47  ;;  %v3230_v53 = vpack.c.bf16 %v5849_v50, %v2909_v51  ;;  %v6369_v50 = vld [vmem:[%s7736_s12 + $0x50] sm:$0xff]  }
 0xa7c   :  { %v5852_v54 = vpop.f32.mrb[32].mxu0 }
 0xa7d   :  { %5899 = vmatpush3.bf16.msra.mxu1 %v6364_v47  ;;  %v2919_v56 = vpop.f32.mrb[33].mxu0 }
 0xa7e   :  { %5904 = vmatprep.subr.bf16.mxu1 %v6365_v52  ;;  %v3302_v57 = vpack.c.bf16 %v5852_v54, %v2919_v56 }
 0xa80   :  { %v5855_v59 = vpop.f32.mrb[34].mxu0 }
 0xa81   :  { %v2929_v60 = vpop.f32.mrb[35].mxu0 }
 0xa82   :  { %v3303_v61 = vpack.c.bf16 %v5855_v59, %v2929_v60 }
 0xa84   :  { %5901 = vmatmul.mubr.msk.bf16.vlgmr.msra.gmra.mrb[88].mxu1 %vm253_vm0, %v3157_v39  ;;  %v5858_v62 = vpop.f32.mrb[36].mxu0  ;;  %v6368_v39 = vld [vmem:[%s7736_s12 + $0x48] sm:$0xff]  }
 0xa85   :  { %5905 = vmatpush3.bf16.msra.mxu1 %v6365_v52  ;;  %5908 = vmatprep.mubr.msk.bf16.mxu1 %vm253_vm0, %v3229_v49  ;;  %v2939_v63 = vpop.f32.mrb[37].mxu0 }
 0xa86   :  { %5906 = vmatprep.subr.bf16.mxu1 %v6366_v55  ;;  %v3375_v3 = vpack.c.bf16 %v5858_v62, %v2939_v63  ;;  %v6371_v63 = vld [vmem:[%s7736_s12 + $0x60] sm:$0xff]  }
 0xa88   :  { %v5861_v4 = vpop.f32.mrb[38].mxu0 }
 0xa89   :  { %5907 = vmatpush3.bf16.msra.mxu1 %v6366_v55  ;;  %v2949_v6 = vpop.f32.mrb[39].mxu0 }
 0xa8a   :  { %5912 = vmatprep.subr.bf16.mxu1 %v6367_v1  ;;  %v3376_v8 = vpack.c.bf16 %v5861_v4, %v2949_v6 }
 0xa8c   :  { %v5864_v9 = vpop.f32.mrb[40].mxu0 }
 0xa8d   :  { %v2959_v40 = vpop.f32.mrb[41].mxu0 }
 0xa8e   :  { %v3448_v48 = vpack.c.bf16 %v5864_v9, %v2959_v40  ;;  %v6374_v40 = vld [vmem:[%s7736_s12 + $0x78] sm:$0xff]  }
 0xa90   :  { %5909 = vmatmul.mubr.msk.bf16.vlgmr.msra.gmra.mrb[88].mxu1 %vm253_vm0, %v3230_v53  ;;  %v5867_v47 = vpop.f32.mrb[42].mxu0  ;;  %v6370_v53 = vld [vmem:[%s7736_s12 + $0x58] sm:$0xff]  }
 0xa91   :  { %5913 = vmatpush3.bf16.msra.mxu1 %v6367_v1  ;;  %5916 = vmatprep.mubr.msk.bf16.mxu1 %vm253_vm0, %v3302_v57  ;;  %v2969_v49 = vpop.f32.mrb[43].mxu0 }
 0xa92   :  { %5914 = vmatprep.subr.bf16.mxu1 %v6368_v39  ;;  %v3449_v51 = vpack.c.bf16 %v5867_v47, %v2969_v49 }
 0xa94   :  { %v5870_v52 = vpop.f32.mrb[44].mxu0 }
 0xa95   :  { %5915 = vmatpush3.bf16.msra.mxu1 %v6368_v39  ;;  %v2979_v54 = vpop.f32.mrb[45].mxu0  ;;  %v6376_v39 = vld [vmem:[%s7736_s12 + $0x88] sm:$0xff]  }
 0xa96   :  { %5920 = vmatprep.subr.bf16.mxu1 %v6369_v50  ;;  %v3521_v56 = vpack.c.bf16 %v5870_v52, %v2979_v54 }
 0xa98   :  { %v5873_v59 = vpop.f32.mrb[46].mxu0 }
 0xa99   :  { %v2989_v60 = vpop.f32.mrb[47].mxu0 }
 0xa9a   :  { %v3522_v55 = vpack.c.bf16 %v5873_v59, %v2989_v60 }
 0xa9c   :  { %5917 = vmatmul.mubr.msk.bf16.vlgmr.msra.gmra.mrb[88].mxu1 %vm253_vm0, %v3303_v61  ;;  %v5876_v57 = vpop.f32.mrb[48].mxu0  ;;  %v6372_v61 = vld [vmem:[%s7736_s12 + $0x68] sm:$0xff]  }
 0xa9d   :  { %5921 = vmatpush3.bf16.msra.mxu1 %v6369_v50  ;;  %5924 = vmatprep.mubr.msk.bf16.mxu1 %vm253_vm0, %v3375_v3  ;;  %v2999_v62 = vpop.f32.mrb[49].mxu0  ;;  %v6373_v3 = vld [vmem:[%s7736_s12 + $0x70] sm:$0xff]  }
 0xa9e   :  { %5922 = vmatprep.subr.bf16.mxu1 %v6370_v53  ;;  %v3594_v1 = vpack.c.bf16 %v5876_v57, %v2999_v62 }
 0xaa0   :  { %v5879_v4 = vpop.f32.mrb[50].mxu0 }
 0xaa1   :  { %5923 = vmatpush3.bf16.msra.mxu1 %v6370_v53  ;;  %v3009_v6 = vpop.f32.mrb[51].mxu0 }
 0xaa2   :  { %5928 = vmatprep.subr.bf16.mxu1 %v6371_v63  ;;  %v3595_v9 = vpack.c.bf16 %v5879_v4, %v3009_v6 }
 0xaa8   :  { %5925 = vmatmul.mubr.msk.bf16.vlgmr.msra.gmra.mrb[88].mxu1 %vm253_vm0, %v3376_v8  ;;  %v6375_v8 = vld [vmem:[%s7736_s12 + $0x80] sm:$0xff]  }
 0xaa9   :  { %5929 = vmatpush3.bf16.msra.mxu1 %v6371_v63  ;;  %5932 = vmatprep.mubr.msk.bf16.mxu1 %vm253_vm0, %v3448_v48 }
 0xaaa   :  { %5930 = vmatprep.subr.bf16.mxu1 %v6372_v61 }
 0xaad   :  { %5931 = vmatpush3.bf16.msra.mxu1 %v6372_v61 }
 0xaae   :  { %5936 = vmatprep.subr.bf16.mxu1 %v6373_v3 }
 0xab4   :  { %5933 = vmatmul.mubr.msk.bf16.vlgmr.msra.gmra.mrb[88].mxu1 %vm253_vm0, %v3449_v51 }
 0xab5   :  { %5937 = vmatpush3.bf16.msra.mxu1 %v6373_v3  ;;  %5940 = vmatprep.mubr.msk.bf16.mxu1 %vm253_vm0, %v3521_v56 }
 0xab6   :  { %5938 = vmatprep.subr.bf16.mxu1 %v6374_v40 }
 0xab9   :  { %5939 = vmatpush3.bf16.msra.mxu1 %v6374_v40 }
 0xaba   :  { %5944 = vmatprep.subr.bf16.mxu1 %v6375_v8 }
 0xac0   :  { %5941 = vmatmul.mubr.msk.bf16.vlgmr.msra.gmra.mrb[88].mxu1 %vm253_vm0, %v3522_v55 }
 0xac1   :  { %5945 = vmatpush3.bf16.msra.mxu1 %v6375_v8  ;;  %5948 = vmatprep.mubr.msk.bf16.mxu1 %vm253_vm0, %v3594_v1  ;;  %v6386_v8 = vld [vmem:[%s7738_s14 + $0x38] sm:$0xff]  }
 0xac2   :  { %5946 = vmatprep.subr.bf16.mxu1 %v6376_v39 }
 0xac5   :  { %5947 = vmatpush3.bf16.msra.mxu1 %v6376_v39 }
 0xacc   :  { %5949 = vmatmul.mubr.msk.bf16.vlgmr.msra.gmra.mrb[88].mxu1 %vm253_vm0, %v3595_v9 }
 0xb9f   :  { %v5950_v48 = vpop.f32.mrb[88].mxu1 }
 0xba0   :  { %v3648_v47 = vpop.f32.mrb[89].mxu1  ;;  %v3669_v50 = vmax.f32 %v5950_v48, 0.0 }
 0xba1   :  { %v5951_v49 = vpop.f32.mrb[90].mxu1  ;;  %v3667_v54 = vmax.f32 %v3648_v47, 0.0 }
 0xba2   :  { %v3670_v51 = vmax.f32 %v5951_v49, 0.0  ;;  %v3651_v52 = vpop.f32.mrb[91].mxu1  ;;  %v6387_v49 = vld [vmem:[%s7738_s14 + $0x40] sm:$0xff]  }
 0xba3   :  { %v3668_v56 = vmax.f32 %v3651_v52, 0.0 }
 0xba4   :  { %v3672_v59 = vpack.c.bf16 %v3670_v51, %v3669_v50 }
 0xba5   :  { %v3671_v60 = vpack.c.bf16 %v3668_v56, %v3667_v54 }
 0xba7   :  { %5956 = vmatprep.mubr.msk.bf16.mxu0 %vm253_vm0, %v3671_v60  ;;  %v6388_v60 = vld [vmem:[%s7738_s14 + $0x48] sm:$0xff]  }
 0xba8   :  { %5957 = vmatmul.mubr.msk.bf16.vlgmr.msra.gmra.mrb[52].mxu0 %vm253_vm0, %v3672_v59 }
 0xba9   :  { %5968 = vmatprep.mubr.msk.f32.mxu0 %vm253_vm0, %v7122_v58 }
 0xc7b   :  { %v5958_v53 = vpop.f32.mrb[52].mxu0 }
 0xc7c   :  { %v7539_v55 = vadd.f32 %v5958_v53, %v7208_v7  ;;  %v3729_v57 = vpop.f32.mrb[53].mxu0 }
 0xc7d   :  { %v7542_v62 = vadd.f32 %v3729_v57, %v7202_v2  ;;  %v5959_v63 = vpop.f32.mrb[54].mxu0 }
 0xc7e   :  { %v7545_v1 = vadd.f32 %v5959_v63, %v7205_v5  ;;  %v3732_v4 = vpop.f32.mrb[55].mxu0  ;;  %v3786_v7 = vmax.f32 %v7539_v55, 0.0  ;;  %v6380_v5 = vld [vmem:[%s7738_s14 + $0x18] sm:$0xff]  }
 0xc7f   :  { %v7548_v6 = vadd.f32 %v7199_v0, %v3732_v4  ;;  %v3784_v9 = vmax.f32 %v7542_v62, 0.0  ;;  %v6379_v0 = vld [vmem:[%s7738_s14 + $0x10] sm:$0xff]  }
 0xc80   :  { %v3787_v58 = vmax.f32 %v7545_v1, 0.0  ;;  %6022 = vmatprep.subr.bf16.mxu1 %v6379_v0  ;;  %v6389_v4 = vld [vmem:[%s7738_s14 + $0x50] sm:$0xff]  }
 0xc81   :  { %v3785_v61 = vmax.f32 %v7548_v6, 0.0  ;;  %6023 = vmatpush3.bf16.msra.mxu1 %v6379_v0  ;;  %v6390_v0 = vld [vmem:[%s7738_s14 + $0x58] sm:$0xff]  }
 0xc82   :  { %v6170_v2 = vpack.c.bf16 %v3787_v58, %v3786_v7  ;;  %6024 = vmatprep.subr.bf16.mxu1 %v6380_v5 }
 0xc83   :  { %v6166_v3 = vpack.c.bf16 %v3785_v61, %v3784_v9 }
 0xc85   :  { %6167 = vmatprep.subr.bf16.mxu0 %v6166_v3  ;;  %6025 = vmatpush3.bf16.msra.mxu1 %v6380_v5 }
 0xc86   :  { %6169 = vmatpush3.bf16.msra.mxu0 %v6166_v3 }
 0xc87   :  { %6171 = vmatprep.subr.bf16.mxu0 %v6170_v2 }
 0xc8a   :  { %6173 = vmatpush3.bf16.msra.mxu0 %v6170_v2 }
 0xc8d   :  { %5969 = vmatmul.mubr.msk.f32.vlgmr.msra.gmra.mrb[56].mxu0 %vm253_vm0, %v7214_v10  ;;  %v6381_v10 = vld [vmem:[%s7738_s14] sm:$0xff]  }
 0xc8e   :  { %5971 = vmatprep.mubr.msk.f32.mxu0 %vm253_vm0, %v7221_v11  ;;  %6030 = vmatprep.subr.bf16.mxu1 %v6381_v10  ;;  %v6397_v11 = vld [vmem:[%s7739_s15] sm:$0xff]  }
 0xc8f   :  { %6094 = vmatprep.subr.bf16.mxu0 %v6397_v11 }
 0xc90   :  { %6095 = vmatpush3.bf16.msra.mxu0 %v6397_v11 }
 0xc91   :  { %5972 = vmatmul.mubr.msk.f32.gmra.mrb[58].mxu0 %vm253_vm0, %v7228_v12  ;;  %v6398_v12 = vld [vmem:[%s7739_s15 + $0x8] sm:$0xff]  }
 0xc92   :  { %5974 = vmatprep.mubr.msk.f32.mxu0 %vm253_vm0, %v7235_v13  ;;  %6096 = vmatprep.subr.bf16.mxu0 %v6398_v12 }
 0xc94   :  { %6097 = vmatpush3.bf16.msra.mxu0 %v6398_v12  ;;  %v6391_v12 = vld [vmem:[%s7738_s14 + $0x60] sm:$0xff]  }
 0xc95   :  { %5975 = vmatmul.mubr.msk.f32.gmra.mrb[60].mxu0 %vm253_vm0, %v7242_v14 }
 0xc96   :  { %5977 = vmatprep.mubr.msk.f32.mxu0 %vm253_vm0, %v7249_v15 }
 0xc99   :  { %5978 = vmatmul.mubr.msk.f32.gmra.mrb[62].mxu0 %vm253_vm0, %v7256_v16 }
 0xc9a   :  { %5980 = vmatprep.mubr.msk.f32.mxu0 %vm253_vm0, %v7263_v17 }
 0xc9d   :  { %5981 = vmatmul.mubr.msk.f32.gmra.mrb[64].mxu0 %vm253_vm0, %v7270_v45 }
 0xc9e   :  { %5983 = vmatprep.mubr.msk.f32.mxu0 %vm253_vm0, %v7277_v30 }
 0xca1   :  { %5984 = vmatmul.mubr.msk.f32.gmra.mrb[66].mxu0 %vm253_vm0, %v7284_v44 }
 0xca2   :  { %5986 = vmatprep.mubr.msk.f32.mxu0 %vm253_vm0, %v7291_v43 }
 0xca5   :  { %5987 = vmatmul.mubr.msk.f32.gmra.mrb[68].mxu0 %vm253_vm0, %v7298_v18 }
 0xca6   :  { %5989 = vmatprep.mubr.msk.f32.mxu0 %vm253_vm0, %v7305_v21 }
 0xca9   :  { %5990 = vmatmul.mubr.msk.f32.gmra.mrb[70].mxu0 %vm253_vm0, %v7312_v35 }
 0xcaa   :  { %5992 = vmatprep.mubr.msk.f32.mxu0 %vm253_vm0, %v7319_v20  ;;  %v6382_v20 = vld [vmem:[%s7738_s14 + $0x8] sm:$0xff]  }
 0xcad   :  { %5993 = vmatmul.mubr.msk.f32.gmra.mrb[72].mxu0 %vm253_vm0, %v7326_v22 }
 0xcae   :  { %5995 = vmatprep.mubr.msk.f32.mxu0 %vm253_vm0, %v7333_v23 }
 0xcb1   :  { %5996 = vmatmul.mubr.msk.f32.gmra.mrb[74].mxu0 %vm253_vm0, %v7340_v24  ;;  %v6383_v24 = vld [vmem:[%s7738_s14 + $0x20] sm:$0xff]  }
 0xcb2   :  { %5998 = vmatprep.mubr.msk.f32.mxu0 %vm253_vm0, %v7347_v25 }
 0xcb5   :  { %5999 = vmatmul.mubr.msk.f32.gmra.mrb[76].mxu0 %vm253_vm0, %v7354_v27 }
 0xcb6   :  { %6001 = vmatprep.mubr.msk.f32.mxu0 %vm253_vm0, %v7361_v29 }
 0xcb9   :  { %6002 = vmatmul.mubr.msk.f32.gmra.mrb[78].mxu0 %vm253_vm0, %v7368_v31 }
 0xcba   :  { %6004 = vmatprep.mubr.msk.f32.mxu0 %vm253_vm0, %v7375_v32 }
 0xcbd   :  { %6005 = vmatmul.mubr.msk.f32.gmra.mrb[80].mxu0 %vm253_vm0, %v7382_v26 }
 0xcbe   :  { %6007 = vmatprep.mubr.msk.f32.mxu0 %vm253_vm0, %v7389_v28  ;;  %v6384_v28 = vld [vmem:[%s7738_s14 + $0x28] sm:$0xff]  }
 0xcc1   :  { %6008 = vmatmul.mubr.msk.f32.gmra.mrb[82].mxu0 %vm253_vm0, %v7396_v34 }
 0xcc2   :  { %6010 = vmatprep.mubr.msk.f32.mxu0 %vm253_vm0, %v7403_v41 }
 0xcc5   :  { %6011 = vmatmul.mubr.msk.f32.gmra.mrb[84].mxu0 %vm253_vm0, %v7410_v46 }
 0xcc6   :  { %6013 = vmatprep.mubr.msk.f32.mxu0 %vm253_vm0, %v7417_v36  ;;  %v6385_v36 = vld [vmem:[%s7738_s14 + $0x30] sm:$0xff]  }
 0xcc9   :  { %6014 = vmatmul.mubr.msk.f32.gmra.mrb[86].mxu0 %vm253_vm0, %v7424_v33 }
 0xcca   :  { %6016 = vmatprep.mubr.msk.f32.mxu0 %vm253_vm0, %v7431_v37 }
 0xccd   :  { %6017 = vmatmul.mubr.msk.f32.gmra.mrb[88].mxu0 %vm253_vm0, %v7438_v42 }
 0xcce   :  { %6019 = vmatprep.mubr.msk.f32.mxu0 %vm253_vm0, %v7445_v19 }
 0xcd1   :  { %6020 = vmatmul.mubr.msk.f32.gmra.mrb[90].mxu0 %vm253_vm0, %v7452_v38 }
 0xd60   :  { %v5970_v13 = vpop.f32.mrb[56].mxu0 }
 0xd61   :  { %v3854_v14 = vpop.f32.mrb[57].mxu0 }
 0xd62   :  { %v4033_v15 = vpack.c.bf16 %v5970_v13, %v3854_v14 }
 0xd64   :  { %v5973_v16 = vpop.f32.mrb[58].mxu0 }
 0xd65   :  { %v3864_v17 = vpop.f32.mrb[59].mxu0 }
 0xd66   :  { %v4034_v45 = vpack.c.bf16 %v5973_v16, %v3864_v17  ;;  %v6392_v17 = vld [vmem:[%s7738_s14 + $0x68] sm:$0xff]  }
 0xd68   :  { %v5976_v30 = vpop.f32.mrb[60].mxu0 }
 0xd69   :  { %v3874_v44 = vpop.f32.mrb[61].mxu0 }
 0xd6a   :  { %v4035_v43 = vpack.c.bf16 %v5976_v30, %v3874_v44  ;;  %v6394_v30 = vld [vmem:[%s7738_s14 + $0x78] sm:$0xff]   ;;  %v6395_v44 = vld [vmem:[%s7738_s14 + $0x80] sm:$0xff]  }
 0xd6c   :  { %v5979_v18 = vpop.f32.mrb[62].mxu0  ;;  %6026 = vmatprep.mubr.msk.bf16.mxu1 %vm253_vm0, %v4035_v43  ;;  %v6396_v43 = vld [vmem:[%s7738_s14 + $0x88] sm:$0xff]  }
 0xd6d   :  { %v3884_v21 = vpop.f32.mrb[63].mxu0 }
 0xd6e   :  { %v4036_v35 = vpack.c.bf16 %v5979_v18, %v3884_v21 }
 0xd70   :  { %6027 = vmatmul.mubr.msk.bf16.vlgmr.msra.gmra.mrb[92].mxu1 %vm253_vm0, %v4036_v35  ;;  %v5982_v22 = vpop.f32.mrb[64].mxu0 }
 0xd71   :  { %6031 = vmatpush3.bf16.msra.mxu1 %v6381_v10  ;;  %6034 = vmatprep.mubr.msk.bf16.mxu1 %vm253_vm0, %v4033_v15  ;;  %v3894_v23 = vpop.f32.mrb[65].mxu0 }
 0xd72   :  { %6032 = vmatprep.subr.bf16.mxu1 %v6382_v20  ;;  %v4171_v25 = vpack.c.bf16 %v5982_v22, %v3894_v23 }
 0xd74   :  { %v5985_v27 = vpop.f32.mrb[66].mxu0 }
 0xd75   :  { %6033 = vmatpush3.bf16.msra.mxu1 %v6382_v20  ;;  %v3904_v29 = vpop.f32.mrb[67].mxu0 }
 0xd76   :  { %6038 = vmatprep.subr.bf16.mxu1 %v6383_v24  ;;  %v4172_v31 = vpack.c.bf16 %v5985_v27, %v3904_v29 }
 0xd78   :  { %v5988_v32 = vpop.f32.mrb[68].mxu0 }
 0xd79   :  { %v3914_v26 = vpop.f32.mrb[69].mxu0 }
 0xd7a   :  { %v4244_v34 = vpack.c.bf16 %v5988_v32, %v3914_v26 }
 0xd7c   :  { %6035 = vmatmul.mubr.msk.bf16.vlgmr.msra.gmra.mrb[92].mxu1 %vm253_vm0, %v4034_v45  ;;  %v5991_v41 = vpop.f32.mrb[70].mxu0  ;;  %v6393_v45 = vld [vmem:[%s7738_s14 + $0x70] sm:$0xff]  }
 0xd7d   :  { %6039 = vmatpush3.bf16.msra.mxu1 %v6383_v24  ;;  %6042 = vmatprep.mubr.msk.bf16.mxu1 %vm253_vm0, %v4171_v25  ;;  %v3924_v46 = vpop.f32.mrb[71].mxu0 }
 0xd7e   :  { %6040 = vmatprep.subr.bf16.mxu1 %v6384_v28  ;;  %v4245_v33 = vpack.c.bf16 %v5991_v41, %v3924_v46 }
 0xd80   :  { %v5994_v37 = vpop.f32.mrb[72].mxu0 }
 0xd81   :  { %6041 = vmatpush3.bf16.msra.mxu1 %v6384_v28  ;;  %v3934_v42 = vpop.f32.mrb[73].mxu0 }
 0xd82   :  { %6046 = vmatprep.subr.bf16.mxu1 %v6385_v36  ;;  %v4317_v19 = vpack.c.bf16 %v5994_v37, %v3934_v42 }
 0xd84   :  { %v5997_v38 = vpop.f32.mrb[74].mxu0 }
 0xd85   :  { %v3944_v40 = vpop.f32.mrb[75].mxu0 }
 0xd86   :  { %v4318_v39 = vpack.c.bf16 %v5997_v38, %v3944_v40 }
 0xd88   :  { %6043 = vmatmul.mubr.msk.bf16.vlgmr.msra.gmra.mrb[92].mxu1 %vm253_vm0, %v4172_v31  ;;  %v6000_v48 = vpop.f32.mrb[76].mxu0 }
 0xd89   :  { %6047 = vmatpush3.bf16.msra.mxu1 %v6385_v36  ;;  %6050 = vmatprep.mubr.msk.bf16.mxu1 %vm253_vm0, %v4244_v34  ;;  %v3954_v47 = vpop.f32.mrb[77].mxu0 }
 0xd8a   :  { %6048 = vmatprep.subr.bf16.mxu1 %v6386_v8  ;;  %v4390_v50 = vpack.c.bf16 %v6000_v48, %v3954_v47 }
 0xd8c   :  { %v6003_v51 = vpop.f32.mrb[78].mxu0 }
 0xd8d   :  { %6049 = vmatpush3.bf16.msra.mxu1 %v6386_v8  ;;  %v3964_v52 = vpop.f32.mrb[79].mxu0 }
 0xd8e   :  { %6054 = vmatprep.subr.bf16.mxu1 %v6387_v49  ;;  %v4391_v54 = vpack.c.bf16 %v6003_v51, %v3964_v52 }
 0xd90   :  { %v6006_v56 = vpop.f32.mrb[80].mxu0 }
 0xd91   :  { %v3974_v59 = vpop.f32.mrb[81].mxu0 }
 0xd92   :  { %v4463_v53 = vpack.c.bf16 %v6006_v56, %v3974_v59 }
 0xd94   :  { %6051 = vmatmul.mubr.msk.bf16.vlgmr.msra.gmra.mrb[92].mxu1 %vm253_vm0, %v4245_v33  ;;  %v6009_v57 = vpop.f32.mrb[82].mxu0 }
 0xd95   :  { %6055 = vmatpush3.bf16.msra.mxu1 %v6387_v49  ;;  %6058 = vmatprep.mubr.msk.bf16.mxu1 %vm253_vm0, %v4317_v19  ;;  %v3984_v63 = vpop.f32.mrb[83].mxu0 }
 0xd96   :  { %6056 = vmatprep.subr.bf16.mxu1 %v6388_v60  ;;  %v4464_v9 = vpack.c.bf16 %v6009_v57, %v3984_v63 }
 0xd98   :  { %v6012_v58 = vpop.f32.mrb[84].mxu0 }
 0xd99   :  { %6057 = vmatpush3.bf16.msra.mxu1 %v6388_v60  ;;  %v3994_v61 = vpop.f32.mrb[85].mxu0 }
 0xd9a   :  { %6062 = vmatprep.subr.bf16.mxu1 %v6389_v4  ;;  %v4536_v7 = vpack.c.bf16 %v6012_v58, %v3994_v61 }
 0xd9c   :  { %v6015_v3 = vpop.f32.mrb[86].mxu0 }
 0xd9d   :  { %v4004_v2 = vpop.f32.mrb[87].mxu0 }
 0xd9e   :  { %v4537_v5 = vpack.c.bf16 %v6015_v3, %v4004_v2 }
 0xda0   :  { %6059 = vmatmul.mubr.msk.bf16.vlgmr.msra.gmra.mrb[92].mxu1 %vm253_vm0, %v4318_v39  ;;  %v6018_v10 = vpop.f32.mrb[88].mxu0 }
 0xda1   :  { %6063 = vmatpush3.bf16.msra.mxu1 %v6389_v4  ;;  %6066 = vmatprep.mubr.msk.bf16.mxu1 %vm253_vm0, %v4390_v50  ;;  %v4014_v11 = vpop.f32.mrb[89].mxu0 }
 0xda2   :  { %6064 = vmatprep.subr.bf16.mxu1 %v6390_v0  ;;  %v4609_v13 = vpack.c.bf16 %v6018_v10, %v4014_v11 }
 0xda4   :  { %v6021_v14 = vpop.f32.mrb[90].mxu0 }
 0xda5   :  { %6065 = vmatpush3.bf16.msra.mxu1 %v6390_v0  ;;  %v4024_v15 = vpop.f32.mrb[91].mxu0 }
 0xda6   :  { %6070 = vmatprep.subr.bf16.mxu1 %v6391_v12  ;;  %v4610_v16 = vpack.c.bf16 %v6021_v14, %v4024_v15 }
 0xdac   :  { %6067 = vmatmul.mubr.msk.bf16.vlgmr.msra.gmra.mrb[92].mxu1 %vm253_vm0, %v4391_v54 }
 0xdad   :  { %6071 = vmatpush3.bf16.msra.mxu1 %v6391_v12  ;;  %6074 = vmatprep.mubr.msk.bf16.mxu1 %vm253_vm0, %v4463_v53 }
 0xdae   :  { %6072 = vmatprep.subr.bf16.mxu1 %v6392_v17 }
 0xdb1   :  { %6073 = vmatpush3.bf16.msra.mxu1 %v6392_v17 }
 0xdb2   :  { %6078 = vmatprep.subr.bf16.mxu1 %v6393_v45 }
 0xdb8   :  { %6075 = vmatmul.mubr.msk.bf16.vlgmr.msra.gmra.mrb[92].mxu1 %vm253_vm0, %v4464_v9 }
 0xdb9   :  { %6079 = vmatpush3.bf16.msra.mxu1 %v6393_v45  ;;  %6082 = vmatprep.mubr.msk.bf16.mxu1 %vm253_vm0, %v4536_v7 }
 0xdba   :  { %6080 = vmatprep.subr.bf16.mxu1 %v6394_v30 }
 0xdbd   :  { %6081 = vmatpush3.bf16.msra.mxu1 %v6394_v30 }
 0xdbe   :  { %6086 = vmatprep.subr.bf16.mxu1 %v6395_v44 }
 0xdc4   :  { %6083 = vmatmul.mubr.msk.bf16.vlgmr.msra.gmra.mrb[92].mxu1 %vm253_vm0, %v4537_v5 }
 0xdc5   :  { %6087 = vmatpush3.bf16.msra.mxu1 %v6395_v44  ;;  %6090 = vmatprep.mubr.msk.bf16.mxu1 %vm253_vm0, %v4609_v13 }
 0xdc6   :  { %6088 = vmatprep.subr.bf16.mxu1 %v6396_v43 }
 0xdc9   :  { %6089 = vmatpush3.bf16.msra.mxu1 %v6396_v43 }
 0xdd0   :  { %6091 = vmatmul.mubr.msk.bf16.vlgmr.msra.gmra.mrb[92].mxu1 %vm253_vm0, %v4610_v16 }
 0xea3   :  { %v6092_v18 = vpop.f32.mrb[92].mxu1 }
 0xea4   :  { %v4663_v21 = vpop.f32.mrb[93].mxu1  ;;  %v4684_v20 = vmax.f32 %v6092_v18, 0.0 }
 0xea5   :  { %v6093_v35 = vpop.f32.mrb[94].mxu1  ;;  %v4682_v24 = vmax.f32 %v4663_v21, 0.0 }
 0xea6   :  { %v4685_v22 = vmax.f32 %v6093_v35, 0.0  ;;  %v4666_v23 = vpop.f32.mrb[95].mxu1 }
 0xea7   :  { %v4683_v25 = vmax.f32 %v4666_v23, 0.0 }
 0xea8   :  { %v4687_v27 = vpack.c.bf16 %v4685_v22, %v4684_v20 }
 0xea9   :  { %v4686_v29 = vpack.c.bf16 %v4683_v25, %v4682_v24 }
 0xeab   :  { %6098 = vmatprep.mubr.msk.bf16.mxu0 %vm253_vm0, %v4686_v29 }
 0xeac   :  { %6099 = vmatmul.mubr.msk.bf16.vlgmr.msra.gmra.mrb[92].mxu0 %vm253_vm0, %v4687_v27 }
 0xf7f   :  { %v6100_v31 = vpop.f32.mrb[92].mxu0 }
 0xf80   :  { %v4761_v32 = vadd.f32 %v6100_v31, %v7539_v55  ;;  %v4744_v26 = vpop.f32.mrb[93].mxu0 }
 0xf81   :  { %v4759_v28 = vadd.f32 %v4744_v26, %v7542_v62  ;;  %v6101_v34 = vpop.f32.mrb[94].mxu0 }
 0xf82   :  { %4765 = vst.msk [vmem:[%s7740_s16 + $0x10] sm:$0xff] %vm253_vm0, %v4761_v32  ;;  %v4762_v41 = vadd.f32 %v6101_v34, %v7545_v1  ;;  %v4747_v46 = vpop.f32.mrb[95].mxu0 }
 0xf83   :  { %4763 = vst.msk [vmem:[%s7740_s16] sm:$0xff] %vm253_vm0, %v4759_v28  ;;  %v4760_v36 = vadd.f32 %v4747_v46, %v7548_v6 }
 0xf84   :  { %4766 = vst.msk [vmem:[%s7740_s16 + $0x18] sm:$0xff] %vm253_vm0, %v4762_v41 }
 0xf85   :  { %4764 = vst.msk [vmem:[%s7740_s16 + $0x8] sm:$0xff] %vm253_vm0, %v4760_v36 }

// kernel: vqvae_forward.7
= control target key start
LH: loop header
LB: loop body
LE: loop exit
PB: predicated region body
PF: predicated region fallthrough
CT: control target
= control target key end

     0   :  { %vm108_vm0 = vcmask 523264   ;;  %s2525_s4 = inlined_call_operand.vmem [shape: bf16[64,128], index: 4, kind: input, shape index: {}]   ;;  %s2526_s5 = inlined_call_operand.vmem [shape: bf16[64,128], index: 5, kind: input, shape index: {}]   ;;  %s2527_s0 = inlined_call_operand.vmem [shape: f32[128,64], index: 0, kind: input, shape index: {}]   ;;  %s2528_s1 = inlined_call_operand.vmem [shape: f32[128,64], index: 1, kind: input, shape index: {}]   ;;  %s2529_s6 = inlined_call_operand.vmem [shape: bf16[64,128], index: 6, kind: input, shape index: {}]   ;;  %s2530_s7 = inlined_call_operand.vmem [shape: bf16[64,128], index: 7, kind: input, shape index: {}]   ;;  %s2531_s2 = inlined_call_operand.vmem [shape: f32[128,64], index: 2, kind: input, shape index: {}]   ;;  %s2532_s3 = inlined_call_operand.vmem [shape: f32[128,64], index: 3, kind: input, shape index: {}]   ;;  %s2533_s8 = inlined_call_operand.vmem [shape: f32[1,128], index: 8, kind: input, shape index: {}]   ;;  %s2534_s9 = inlined_call_operand.vmem [shape: f32[1,128], index: 9, kind: input, shape index: {}]   ;;  %s2535_s10 = inlined_call_operand.vmem [shape: f32[512,128], index: 10, kind: output, shape index: {}]  }
   0x1   :  { %v1460_v0 = vld [vmem:[%s2525_s4] sm:$0xff]   ;;  %v1462_v2 = vld [vmem:[%s2525_s4 + $0x8] sm:$0xff]   ;;  %v1464_v4 = vld [vmem:[%s2525_s4 + $0x10] sm:$0xff]  }
   0x2   :  { %v1461_v1 = vld [vmem:[%s2526_s5] sm:$0xff]   ;;  %1364 = vmatprep.subr.bf16.mxu0 %v1460_v0  ;;  %v1463_v3 = vld [vmem:[%s2526_s5 + $0x8] sm:$0xff]   ;;  %v1465_v5 = vld [vmem:[%s2526_s5 + $0x10] sm:$0xff]  }
   0x3   :  { %1388 = vmatprep.subr.bf16.mxu1 %v1461_v1  ;;  %1365 = vmatpush3.bf16.msra.mxu0 %v1460_v0  ;;  %v1466_v6 = vld [vmem:[%s2525_s4 + $0x18] sm:$0xff]   ;;  %v36_v8 = vld [vmem:[%s2527_s0] sm:$0xff]  ;;  %v37_v9 = vld [vmem:[%s2527_s0 + $0x8] sm:$0xff] }
   0x4   :  { %1389 = vmatpush3.bf16.msra.mxu1 %v1461_v1  ;;  %1366 = vmatprep.subr.bf16.mxu0 %v1462_v2  ;;  %v1467_v7 = vld [vmem:[%s2526_s5 + $0x18] sm:$0xff]   ;;  %v230_v10 = vld [vmem:[%s2528_s1] sm:$0xff]  ;;  %v52_v11 = vmax.f32 %v36_v8, 0.0  ;;  %v53_v12 = vmax.f32 %v37_v9, 0.0  ;;  %v231_v13 = vld [vmem:[%s2528_s1 + $0x8] sm:$0xff] }
   0x5   :  { %1390 = vmatprep.subr.bf16.mxu1 %v1463_v3  ;;  %v246_v14 = vmax.f32 %v230_v10, 0.0  ;;  %v38_v15 = vld [vmem:[%s2527_s0 + $0x10] sm:$0xff]  ;;  %v39_v16 = vld [vmem:[%s2527_s0 + $0x18] sm:$0xff]  ;;  %v247_v17 = vmax.f32 %v231_v13, 0.0  ;;  %v1468_v22 = vld [vmem:[%s2529_s6] sm:$0xff]  }
   0x6   :  { %v54_v18 = vmax.f32 %v38_v15, 0.0  ;;  %v55_v19 = vmax.f32 %v39_v16, 0.0  ;;  %v232_v20 = vld [vmem:[%s2528_s1 + $0x10] sm:$0xff]  ;;  %v233_v21 = vld [vmem:[%s2528_s1 + $0x18] sm:$0xff]  ;;  %v68_v23 = vpack.c.bf16 %v53_v12, %v52_v11  ;;  %v1469_v27 = vld [vmem:[%s2530_s7] sm:$0xff]  }
   0x7   :  { %1367 = vmatpush3.bf16.msra.mxu0 %v1462_v2  ;;  %v248_v24 = vmax.f32 %v232_v20, 0.0  ;;  %v249_v25 = vmax.f32 %v233_v21, 0.0  ;;  %v262_v26 = vpack.c.bf16 %v247_v17, %v246_v14  ;;  %v40_v28 = vld [vmem:[%s2527_s0 + $0x20] sm:$0xff]  ;;  %v41_v29 = vld [vmem:[%s2527_s0 + $0x28] sm:$0xff]  ;;  %v42_v36 = vld [vmem:[%s2527_s0 + $0x30] sm:$0xff] }
   0x8   :  { %1391 = vmatpush3.bf16.msra.mxu1 %v1463_v3  ;;  %1368 = vmatprep.subr.bf16.mxu0 %v1464_v4  ;;  %v234_v30 = vld [vmem:[%s2528_s1 + $0x20] sm:$0xff]  ;;  %v69_v31 = vpack.c.bf16 %v55_v19, %v54_v18  ;;  %v56_v32 = vmax.f32 %v40_v28, 0.0  ;;  %v57_v33 = vmax.f32 %v41_v29, 0.0  ;;  %v235_v34 = vld [vmem:[%s2528_s1 + $0x28] sm:$0xff]  ;;  %v43_v39 = vld [vmem:[%s2527_s0 + $0x38] sm:$0xff]  ;;  %v58_v46 = vmax.f32 %v42_v36, 0.0 }
   0x9   :  { %1392 = vmatprep.subr.bf16.mxu1 %v1465_v5  ;;  %1372 = vmatprep.mubr.msk.bf16.mxu0 %vm108_vm0, %v68_v23  ;;  %v250_v35 = vmax.f32 %v234_v30, 0.0  ;;  %v263_v37 = vpack.c.bf16 %v249_v25, %v248_v24  ;;  %v251_v38 = vmax.f32 %v235_v34, 0.0  ;;  %v236_v40 = vld [vmem:[%s2528_s1 + $0x30] sm:$0xff]  ;;  %v237_v41 = vld [vmem:[%s2528_s1 + $0x38] sm:$0xff]  ;;  %v1470_v43 = vld [vmem:[%s2529_s6 + $0x8] sm:$0xff]   ;;  %v59_v47 = vmax.f32 %v43_v39, 0.0 }
   0xa   :  { %1396 = vmatprep.mubr.msk.bf16.mxu1 %vm108_vm0, %v262_v26  ;;  %v70_v42 = vpack.c.bf16 %v57_v33, %v56_v32  ;;  %v1471_v45 = vld [vmem:[%s2530_s7 + $0x8] sm:$0xff]   ;;  %v44_v48 = vld [vmem:[%s2527_s0 + $0x40] sm:$0xff]  ;;  %v252_v51 = vmax.f32 %v236_v40, 0.0  ;;  %v253_v52 = vmax.f32 %v237_v41, 0.0  ;;  %v46_v58 = vld [vmem:[%s2527_s0 + $0x50] sm:$0xff] }
   0xb   :  { %1369 = vmatpush3.bf16.msra.mxu0 %v1464_v4  ;;  %v264_v44 = vpack.c.bf16 %v251_v38, %v250_v35  ;;  %v45_v49 = vld [vmem:[%s2527_s0 + $0x48] sm:$0xff]  ;;  %v238_v50 = vld [vmem:[%s2528_s1 + $0x40] sm:$0xff]  ;;  %v60_v53 = vmax.f32 %v44_v48, 0.0  ;;  %v47_v59 = vld [vmem:[%s2527_s0 + $0x58] sm:$0xff]  ;;  %v71_v62 = vpack.c.bf16 %v59_v47, %v58_v46 }
   0xc   :  { %1393 = vmatpush3.bf16.msra.mxu1 %v1465_v5  ;;  %1370 = vmatprep.subr.bf16.mxu0 %v1466_v6  ;;  %v61_v54 = vmax.f32 %v45_v49, 0.0  ;;  %v239_v55 = vld [vmem:[%s2528_s1 + $0x48] sm:$0xff]  ;;  %v254_v56 = vmax.f32 %v238_v50, 0.0  ;;  %v1472_v60 = vld [vmem:[%s2529_s6 + $0x10] sm:$0xff]   ;;  %v265_v0 = vpack.c.bf16 %v253_v52, %v252_v51  ;;  %v241_v2 = vld [vmem:[%s2528_s1 + $0x58] sm:$0xff] }
   0xd   :  { %1394 = vmatprep.subr.bf16.mxu1 %v1467_v7  ;;  %v255_v57 = vmax.f32 %v239_v55, 0.0  ;;  %v240_v61 = vld [vmem:[%s2528_s1 + $0x50] sm:$0xff]  ;;  %v48_v3 = vld [vmem:[%s2527_s0 + $0x60] sm:$0xff]  ;;  %v49_v5 = vld [vmem:[%s2527_s0 + $0x68] sm:$0xff]  ;;  %v257_v12 = vmax.f32 %v241_v2, 0.0 }
   0xe   :  { %v1473_v63 = vld [vmem:[%s2530_s7 + $0x10] sm:$0xff]   ;;  %v72_v1 = vpack.c.bf16 %v61_v54, %v60_v53  ;;  %v256_v8 = vmax.f32 %v240_v61, 0.0  ;;  %v242_v9 = vld [vmem:[%s2528_s1 + $0x60] sm:$0xff]  ;;  %v243_v10 = vld [vmem:[%s2528_s1 + $0x68] sm:$0xff]  ;;  %v64_v13 = vmax.f32 %v48_v3, 0.0  ;;  %v65_v14 = vmax.f32 %v49_v5, 0.0 }
   0xf   :  { %1371 = vmatpush3.bf16.msra.mxu0 %v1466_v6  ;;  %v266_v4 = vpack.c.bf16 %v255_v57, %v254_v56  ;;  %v62_v6 = vmax.f32 %v46_v58, 0.0  ;;  %v1474_v11 = vld [vmem:[%s2529_s6 + $0x18] sm:$0xff]   ;;  %v258_v16 = vmax.f32 %v242_v9, 0.0  ;;  %v259_v17 = vmax.f32 %v243_v10, 0.0  ;;  %v50_v21 = vld [vmem:[%s2527_s0 + $0x70] sm:$0xff]  ;;  %v423_v26 = vld [vmem:[%s2531_s2] sm:$0xff] }
  0x10   :  { %1395 = vmatpush3.bf16.msra.mxu1 %v1467_v7  ;;  %1412 = vmatprep.subr.bf16.mxu0 %v1468_v22  ;;  %v63_v7 = vmax.f32 %v47_v59, 0.0  ;;  %v1475_v15 = vld [vmem:[%s2530_s7 + $0x18] sm:$0xff]   ;;  %v267_v19 = vpack.c.bf16 %v257_v12, %v256_v8  ;;  %v74_v20 = vpack.c.bf16 %v65_v14, %v64_v13  ;;  %v244_v23 = vld [vmem:[%s2528_s1 + $0x70] sm:$0xff]  ;;  %v616_v28 = vld [vmem:[%s2532_s3] sm:$0xff]  ;;  %v66_v30 = vmax.f32 %v50_v21, 0.0 }
  0x11   :  { %1436 = vmatprep.subr.bf16.mxu1 %v1469_v27  ;;  %v268_v24 = vpack.c.bf16 %v259_v17, %v258_v16  ;;  %v245_v25 = vld [vmem:[%s2528_s1 + $0x78] sm:$0xff]  ;;  %v617_v29 = vld [vmem:[%s2532_s3 + $0x8] sm:$0xff]  ;;  %v260_v32 = vmax.f32 %v244_v23, 0.0  ;;  %v439_v34 = vmax.f32 %v423_v26, 0.0  ;;  %v632_v36 = vmax.f32 %v616_v28, 0.0  ;;  %v425_v41 = vld [vmem:[%s2531_s2 + $0x10] sm:$0xff] }
  0x12   :  { %1373 = vmatmul.mubr.msk.bf16.vlgmr.msra.gmra.mrb[0].mxu0 %vm108_vm0, %v69_v31  ;;  %v73_v18 = vpack.c.bf16 %v63_v7, %v62_v6  ;;  %v261_v33 = vmax.f32 %v245_v25, 0.0  ;;  %v427_v46 = vld [vmem:[%s2531_s2 + $0x20] sm:$0xff]  ;;  %v428_v47 = vld [vmem:[%s2531_s2 + $0x28] sm:$0xff]  ;;  %v441_v50 = vmax.f32 %v425_v41, 0.0  ;;  %v429_v61 = vld [vmem:[%s2531_s2 + $0x30] sm:$0xff] }
  0x13   :  { %1397 = vmatmul.mubr.msk.bf16.vlgmr.msra.gmra.mrb[0].mxu1 %vm108_vm0, %v263_v37  ;;  %1413 = vmatpush3.bf16.msra.mxu0 %v1468_v22  ;;  %v51_v22 = vld [vmem:[%s2527_s0 + $0x78] sm:$0xff]  ;;  %v633_v37 = vmax.f32 %v617_v29, 0.0  ;;  %v620_v48 = vld [vmem:[%s2532_s3 + $0x20] sm:$0xff]  ;;  %v621_v49 = vld [vmem:[%s2532_s3 + $0x28] sm:$0xff]  ;;  %v443_v54 = vmax.f32 %v427_v46, 0.0  ;;  %v444_v55 = vmax.f32 %v428_v47, 0.0 }
  0x14   :  { %1437 = vmatpush3.bf16.msra.mxu1 %v1469_v27  ;;  %1376 = vmatprep.mubr.msk.bf16.mxu0 %vm108_vm0, %v70_v42  ;;  %v424_v27 = vld [vmem:[%s2531_s2 + $0x8] sm:$0xff]  ;;  %v67_v31 = vmax.f32 %v51_v22, 0.0  ;;  %v269_v39 = vpack.c.bf16 %v261_v33, %v260_v32  ;;  %v426_v42 = vld [vmem:[%s2531_s2 + $0x18] sm:$0xff]  ;;  %v636_v56 = vmax.f32 %v620_v48, 0.0  ;;  %v637_v57 = vmax.f32 %v621_v49, 0.0  ;;  %v431_v2 = vld [vmem:[%s2531_s2 + $0x40] sm:$0xff] }
  0x15   :  { %1400 = vmatprep.mubr.msk.bf16.mxu1 %vm108_vm0, %v264_v44  ;;  %1414 = vmatprep.subr.bf16.mxu0 %v1470_v43  ;;  %v440_v35 = vmax.f32 %v424_v27, 0.0  ;;  %v648_v44 = vpack.c.bf16 %v633_v37, %v632_v36  ;;  %v442_v51 = vmax.f32 %v426_v42, 0.0  ;;  %v432_v3 = vld [vmem:[%s2531_s2 + $0x48] sm:$0xff]  ;;  %v445_v6 = vmax.f32 %v429_v61, 0.0  ;;  %v433_v17 = vld [vmem:[%s2531_s2 + $0x50] sm:$0xff]  ;;  %v627_v21 = vld [vmem:[%s2532_s3 + $0x58] sm:$0xff] }
  0x16   :  { %1438 = vmatprep.subr.bf16.mxu1 %v1471_v45  ;;  %v75_v38 = vpack.c.bf16 %v67_v31, %v66_v30  ;;  %v625_v5 = vld [vmem:[%s2532_s3 + $0x48] sm:$0xff]  ;;  %v447_v10 = vmax.f32 %v431_v2, 0.0  ;;  %v435_v22 = vld [vmem:[%s2531_s2 + $0x60] sm:$0xff]  ;;  %v449_v26 = vmax.f32 %v433_v17, 0.0  ;;  %v643_v29 = vmax.f32 %v627_v21, 0.0  ;;  %v437_v37 = vld [vmem:[%s2531_s2 + $0x70] sm:$0xff] }
  0x17   :  { %1415 = vmatpush3.bf16.msra.mxu0 %v1470_v43  ;;  %v455_v40 = vpack.c.bf16 %v440_v35, %v439_v34  ;;  %v618_v43 = vld [vmem:[%s2532_s3 + $0x10] sm:$0xff]  ;;  %v456_v58 = vpack.c.bf16 %v442_v51, %v441_v50  ;;  %v641_v13 = vmax.f32 %v625_v5, 0.0  ;;  %v436_v23 = vld [vmem:[%s2531_s2 + $0x68] sm:$0xff]  ;;  %v451_v30 = vmax.f32 %v435_v22, 0.0  ;;  %v631_v41 = vld [vmem:[%s2532_s3 + $0x78] sm:$0xff] }
  0x18   :  { %1439 = vmatpush3.bf16.msra.mxu1 %v1471_v45  ;;  %1416 = vmatprep.subr.bf16.mxu0 %v1472_v60  ;;  %v619_v45 = vld [vmem:[%s2532_s3 + $0x18] sm:$0xff]  ;;  %v634_v52 = vmax.f32 %v618_v43, 0.0  ;;  %v629_v25 = vld [vmem:[%s2532_s3 + $0x68] sm:$0xff]  ;;  %v452_v31 = vmax.f32 %v436_v23, 0.0  ;;  %v453_v42 = vmax.f32 %v437_v37, 0.0 }
  0x19   :  { %1440 = vmatprep.subr.bf16.mxu1 %v1473_v63  ;;  %v635_v53 = vmax.f32 %v619_v45, 0.0  ;;  %v645_v33 = vmax.f32 %v629_v25, 0.0  ;;  %v647_v45 = vmax.f32 %v631_v41, 0.0 }
  0x1a   :  { %1377 = vmatmul.mubr.msk.bf16.gmra.mrb[4].mxu0 %vm108_vm0, %v71_v62  ;;  %v430_v62 = vld [vmem:[%s2531_s2 + $0x38] sm:$0xff]  ;;  %v461_v36 = vpack.c.bf16 %v452_v31, %v451_v30 }
  0x1b   :  { %1401 = vmatmul.mubr.msk.bf16.gmra.mrb[4].mxu1 %vm108_vm0, %v265_v0  ;;  %1380 = vmatprep.mubr.msk.bf16.mxu0 %vm108_vm0, %v72_v1  ;;  %v649_v59 = vpack.c.bf16 %v635_v53, %v634_v52  ;;  %v650_v0 = vpack.c.bf16 %v637_v57, %v636_v56  ;;  %v623_v1 = vld [vmem:[%s2532_s3 + $0x38] sm:$0xff]  ;;  %v446_v7 = vmax.f32 %v430_v62, 0.0 }
  0x1c   :  { %1404 = vmatprep.mubr.msk.bf16.mxu1 %vm108_vm0, %v266_v4  ;;  %1417 = vmatpush3.bf16.msra.mxu0 %v1472_v60  ;;  %v457_v60 = vpack.c.bf16 %v444_v55, %v443_v54  ;;  %v624_v4 = vld [vmem:[%s2532_s3 + $0x40] sm:$0xff]  ;;  %v639_v9 = vmax.f32 %v623_v1, 0.0 }
  0x1d   :  { %1441 = vmatpush3.bf16.msra.mxu1 %v1473_v63  ;;  %1418 = vmatprep.subr.bf16.mxu0 %v1474_v11  ;;  %v622_v63 = vld [vmem:[%s2532_s3 + $0x30] sm:$0xff]  ;;  %v640_v12 = vmax.f32 %v624_v4, 0.0  ;;  %v458_v14 = vpack.c.bf16 %v446_v7, %v445_v6 }
  0x1e   :  { %1442 = vmatprep.subr.bf16.mxu1 %v1475_v15  ;;  %v638_v8 = vmax.f32 %v622_v63, 0.0 }
  0x20   :  { %1419 = vmatpush3.bf16.msra.mxu0 %v1474_v11  ;;  %v448_v11 = vmax.f32 %v432_v3, 0.0 }
  0x21   :  { %1443 = vmatpush3.bf16.msra.mxu1 %v1475_v15  ;;  %v651_v15 = vpack.c.bf16 %v639_v9, %v638_v8 }
  0x22   :  { %1381 = vmatmul.mubr.msk.bf16.gmra.mrb[8].mxu0 %vm108_vm0, %v73_v18  ;;  %v459_v16 = vpack.c.bf16 %v448_v11, %v447_v10  ;;  %v434_v18 = vld [vmem:[%s2531_s2 + $0x58] sm:$0xff] }
  0x23   :  { %1405 = vmatmul.mubr.msk.bf16.gmra.mrb[8].mxu1 %vm108_vm0, %v267_v19  ;;  %1384 = vmatprep.mubr.msk.bf16.mxu0 %vm108_vm0, %v74_v20  ;;  %v626_v19 = vld [vmem:[%s2532_s3 + $0x50] sm:$0xff]  ;;  %v652_v20 = vpack.c.bf16 %v641_v13, %v640_v12  ;;  %v450_v27 = vmax.f32 %v434_v18, 0.0 }
  0x24   :  { %1408 = vmatprep.mubr.msk.bf16.mxu1 %vm108_vm0, %v268_v24  ;;  %v628_v24 = vld [vmem:[%s2532_s3 + $0x60] sm:$0xff]  ;;  %v642_v28 = vmax.f32 %v626_v19, 0.0 }
  0x25   :  { %v644_v32 = vmax.f32 %v628_v24, 0.0  ;;  %v460_v34 = vpack.c.bf16 %v450_v27, %v449_v26 }
  0x26   :  { %v653_v35 = vpack.c.bf16 %v643_v29, %v642_v28 }
  0x2a   :  { %1385 = vmatmul.mubr.msk.bf16.gmra.mrb[12].mxu0 %vm108_vm0, %v75_v38  ;;  %v438_v38 = vld [vmem:[%s2531_s2 + $0x78] sm:$0xff] }
  0x2b   :  { %1409 = vmatmul.mubr.msk.bf16.gmra.mrb[12].mxu1 %vm108_vm0, %v269_v39  ;;  %1420 = vmatprep.mubr.msk.bf16.mxu0 %vm108_vm0, %v455_v40  ;;  %v654_v39 = vpack.c.bf16 %v645_v33, %v644_v32  ;;  %v630_v40 = vld [vmem:[%s2532_s3 + $0x70] sm:$0xff]  ;;  %v454_v43 = vmax.f32 %v438_v38, 0.0 }
  0x2c   :  { %1444 = vmatprep.mubr.msk.bf16.mxu1 %vm108_vm0, %v648_v44  ;;  %v646_v44 = vmax.f32 %v630_v40, 0.0 }
  0x2d   :  { %v462_v46 = vpack.c.bf16 %v454_v43, %v453_v42 }
  0x2e   :  { %v655_v47 = vpack.c.bf16 %v647_v45, %v646_v44 }
  0x32   :  { %1421 = vmatmul.mubr.msk.bf16.vlgmr.msra.gmra.mrb[16].mxu0 %vm108_vm0, %v456_v58 }
  0x33   :  { %1445 = vmatmul.mubr.msk.bf16.vlgmr.msra.gmra.mrb[16].mxu1 %vm108_vm0, %v649_v59  ;;  %1424 = vmatprep.mubr.msk.bf16.mxu0 %vm108_vm0, %v457_v60 }
  0x34   :  { %1448 = vmatprep.mubr.msk.bf16.mxu1 %vm108_vm0, %v650_v0 }
  0x3a   :  { %1425 = vmatmul.mubr.msk.bf16.gmra.mrb[20].mxu0 %vm108_vm0, %v458_v14 }
  0x3b   :  { %1449 = vmatmul.mubr.msk.bf16.gmra.mrb[20].mxu1 %vm108_vm0, %v651_v15  ;;  %1428 = vmatprep.mubr.msk.bf16.mxu0 %vm108_vm0, %v459_v16 }
  0x3c   :  { %1452 = vmatprep.mubr.msk.bf16.mxu1 %vm108_vm0, %v652_v20 }
  0x42   :  { %1429 = vmatmul.mubr.msk.bf16.gmra.mrb[24].mxu0 %vm108_vm0, %v460_v34 }
  0x43   :  { %1453 = vmatmul.mubr.msk.bf16.gmra.mrb[24].mxu1 %vm108_vm0, %v653_v35  ;;  %1432 = vmatprep.mubr.msk.bf16.mxu0 %vm108_vm0, %v461_v36 }
  0x44   :  { %1456 = vmatprep.mubr.msk.bf16.mxu1 %vm108_vm0, %v654_v39 }
  0x4a   :  { %1433 = vmatmul.mubr.msk.bf16.gmra.mrb[28].mxu0 %vm108_vm0, %v462_v46 }
  0x4b   :  { %1457 = vmatmul.mubr.msk.bf16.gmra.mrb[28].mxu1 %vm108_vm0, %v655_v47 }
  0xe5   :  { %v1805_v48 = vpop.f32.mrb[0].mxu0 }
  0xe6   :  { %v1807_v49 = vpop.f32.mrb[0].mxu1  ;;  %v1809_v50 = vpop.f32.mrb[1].mxu0  ;;  %v899_v62 = vmul.f32 %v1805_v48, %v1805_v48 }
  0xe7   :  { %v1811_v51 = vpop.f32.mrb[1].mxu1  ;;  %v1813_v52 = vpop.f32.mrb[2].mxu0  ;;  %v897_v56 = vmul.f32 %v1809_v50, %v1809_v50  ;;  %v937_v1 = vmul.f32 %v1807_v49, %v1807_v49 }
  0xe8   :  { %v935_v53 = vmul.f32 %v1811_v51, %v1811_v51  ;;  %v1817_v54 = vpop.f32.mrb[2].mxu1  ;;  %v1819_v55 = vpop.f32.mrb[3].mxu0  ;;  %v900_v4 = vmul.f32 %v1813_v52, %v1813_v52 }
  0xe9   :  { %v809_v57 = vadd.f32 %v1819_v55, %v1809_v50  ;;  %v898_v58 = vmul.f32 %v1819_v55, %v1819_v55  ;;  %v1827_v59 = vpop.f32.mrb[3].mxu1  ;;  %v938_v8 = vmul.f32 %v1817_v54, %v1817_v54 }
  0xea   :  { %v831_v60 = vadd.f32 %v1827_v59, %v1811_v51  ;;  %v936_v61 = vmul.f32 %v1827_v59, %v1827_v59 }
  0xeb   :  { %v810_v63 = vadd.f32 %v1805_v48, %v809_v57  ;;  %v913_v0 = vadd.f32 %v898_v58, %v897_v56 }
  0xec   :  { %v832_v2 = vadd.f32 %v1807_v49, %v831_v60  ;;  %v951_v3 = vadd.f32 %v936_v61, %v935_v53 }
  0xed   :  { %v914_v5 = vadd.f32 %v913_v0, %v899_v62  ;;  %v1841_v6 = vpop.f32.mrb[4].mxu0  ;;  %v811_v7 = vadd.f32 %v1813_v52, %v810_v63 }
  0xee   :  { %v952_v9 = vadd.f32 %v951_v3, %v937_v1  ;;  %v1846_v10 = vpop.f32.mrb[4].mxu1  ;;  %v1848_v11 = vpop.f32.mrb[5].mxu0  ;;  %v833_v12 = vadd.f32 %v1817_v54, %v832_v2  ;;  %v903_v30 = vmul.f32 %v1841_v6, %v1841_v6 }
  0xef   :  { %v812_v13 = vadd.f32 %v811_v7, %v1848_v11  ;;  %v901_v14 = vmul.f32 %v1848_v11, %v1848_v11  ;;  %v915_v15 = vadd.f32 %v914_v5, %v900_v4  ;;  %v1854_v16 = vpop.f32.mrb[5].mxu1  ;;  %v1856_v17 = vpop.f32.mrb[6].mxu0  ;;  %v941_v33 = vmul.f32 %v1846_v10, %v1846_v10 }
  0xf0   :  { %v834_v18 = vadd.f32 %v833_v12, %v1854_v16  ;;  %v939_v19 = vmul.f32 %v1854_v16, %v1854_v16  ;;  %v953_v20 = vadd.f32 %v952_v9, %v938_v8  ;;  %v1861_v21 = vpop.f32.mrb[6].mxu1  ;;  %v1863_v22 = vpop.f32.mrb[7].mxu0  ;;  %v904_v36 = vmul.f32 %v1856_v17, %v1856_v17 }
  0xf1   :  { %v916_v23 = vadd.f32 %v915_v15, %v901_v14  ;;  %v813_v24 = vadd.f32 %v812_v13, %v1863_v22  ;;  %v902_v25 = vmul.f32 %v1863_v22, %v1863_v22  ;;  %v1868_v26 = vpop.f32.mrb[7].mxu1  ;;  %v942_v40 = vmul.f32 %v1861_v21, %v1861_v21 }
  0xf2   :  { %v954_v27 = vadd.f32 %v953_v20, %v939_v19  ;;  %v835_v28 = vadd.f32 %v834_v18, %v1868_v26  ;;  %v940_v29 = vmul.f32 %v1868_v26, %v1868_v26 }
  0xf3   :  { %v814_v31 = vadd.f32 %v1841_v6, %v813_v24  ;;  %v917_v32 = vadd.f32 %v916_v23, %v902_v25 }
  0xf4   :  { %v836_v34 = vadd.f32 %v1846_v10, %v835_v28  ;;  %v955_v35 = vadd.f32 %v954_v27, %v940_v29 }
  0xf5   :  { %v918_v37 = vadd.f32 %v917_v32, %v903_v30  ;;  %v1881_v38 = vpop.f32.mrb[8].mxu0  ;;  %v815_v39 = vadd.f32 %v1856_v17, %v814_v31 }
  0xf6   :  { %v956_v41 = vadd.f32 %v955_v35, %v941_v33  ;;  %v1886_v42 = vpop.f32.mrb[8].mxu1  ;;  %v1888_v43 = vpop.f32.mrb[9].mxu0  ;;  %v837_v44 = vadd.f32 %v1861_v21, %v836_v34  ;;  %v907_v7 = vmul.f32 %v1881_v38, %v1881_v38 }
  0xf7   :  { %v816_v45 = vadd.f32 %v815_v39, %v1888_v43  ;;  %v905_v46 = vmul.f32 %v1888_v43, %v1888_v43  ;;  %v919_v47 = vadd.f32 %v918_v37, %v904_v36  ;;  %v1894_v53 = vpop.f32.mrb[9].mxu1  ;;  %v1896_v56 = vpop.f32.mrb[10].mxu0  ;;  %v945_v12 = vmul.f32 %v1886_v42, %v1886_v42 }
  0xf8   :  { %v838_v57 = vadd.f32 %v837_v44, %v1894_v53  ;;  %v943_v58 = vmul.f32 %v1894_v53, %v1894_v53  ;;  %v957_v60 = vadd.f32 %v956_v41, %v942_v40  ;;  %v1901_v61 = vpop.f32.mrb[10].mxu1  ;;  %v1903_v62 = vpop.f32.mrb[11].mxu0  ;;  %v908_v15 = vmul.f32 %v1896_v56, %v1896_v56 }
  0xf9   :  { %v920_v63 = vadd.f32 %v919_v47, %v905_v46  ;;  %v817_v0 = vadd.f32 %v816_v45, %v1903_v62  ;;  %v906_v1 = vmul.f32 %v1903_v62, %v1903_v62  ;;  %v1908_v2 = vpop.f32.mrb[11].mxu1  ;;  %v946_v23 = vmul.f32 %v1901_v61, %v1901_v61 }
  0xfa   :  { %v958_v3 = vadd.f32 %v957_v60, %v943_v58  ;;  %v839_v4 = vadd.f32 %v838_v57, %v1908_v2  ;;  %v944_v5 = vmul.f32 %v1908_v2, %v1908_v2 }
  0xfb   :  { %v818_v8 = vadd.f32 %v1881_v38, %v817_v0  ;;  %v921_v9 = vadd.f32 %v920_v63, %v906_v1 }
  0xfc   :  { %v840_v13 = vadd.f32 %v1886_v42, %v839_v4  ;;  %v959_v14 = vadd.f32 %v958_v3, %v944_v5 }
  0xfd   :  { %v922_v18 = vadd.f32 %v921_v9, %v907_v7  ;;  %v1921_v19 = vpop.f32.mrb[12].mxu0  ;;  %v819_v20 = vadd.f32 %v1896_v56, %v818_v8 }
  0xfe   :  { %v960_v24 = vadd.f32 %v959_v14, %v945_v12  ;;  %v1926_v25 = vpop.f32.mrb[12].mxu1  ;;  %v1928_v27 = vpop.f32.mrb[13].mxu0  ;;  %v841_v28 = vadd.f32 %v1901_v61, %v840_v13  ;;  %v911_v58 = vmul.f32 %v1921_v19, %v1921_v19 }
  0xff   :  { %2565 = vst [vmem:[#allocation2_spill] sm:$0xff] %v1926_v25  ;;  %v820_v29 = vadd.f32 %v819_v20, %v1928_v27  ;;  %v909_v30 = vmul.f32 %v1928_v27, %v1928_v27  ;;  %v923_v31 = vadd.f32 %v922_v18, %v908_v15  ;;  %v1934_v32 = vpop.f32.mrb[13].mxu1  ;;  %v1936_v33 = vpop.f32.mrb[14].mxu0  ;;  %v949_v0 = vmul.f32 %v1926_v25, %v1926_v25 }
 0x100   :  { %v842_v34 = vadd.f32 %v841_v28, %v1934_v32  ;;  %v947_v35 = vmul.f32 %v1934_v32, %v1934_v32  ;;  %v961_v36 = vadd.f32 %v960_v24, %v946_v23  ;;  %v1941_v37 = vpop.f32.mrb[14].mxu1  ;;  %v1943_v39 = vpop.f32.mrb[15].mxu0  ;;  %v912_v4 = vmul.f32 %v1936_v33, %v1936_v33 }
 0x101   :  { %2566 = vst [vmem:[#allocation3_spill] sm:$0xff] %v1941_v37  ;;  %v924_v40 = vadd.f32 %v923_v31, %v909_v30  ;;  %v821_v41 = vadd.f32 %v820_v29, %v1943_v39  ;;  %v910_v44 = vmul.f32 %v1943_v39, %v1943_v39  ;;  %v1948_v45 = vpop.f32.mrb[15].mxu1  ;;  %v950_v9 = vmul.f32 %v1941_v37, %v1941_v37 }
 0x102   :  { %v962_v46 = vadd.f32 %v961_v36, %v947_v35  ;;  %v843_v47 = vadd.f32 %v842_v34, %v1948_v45  ;;  %v948_v57 = vmul.f32 %v1948_v45, %v1948_v45 }
 0x103   :  { %v822_v60 = vadd.f32 %v1921_v19, %v821_v41  ;;  %v925_v63 = vadd.f32 %v924_v40, %v910_v44 }
 0x104   :  { %v844_v1 = vadd.f32 %v1926_v25, %v843_v47  ;;  %v963_v3 = vadd.f32 %v962_v46, %v948_v57 }
 0x105   :  { %v823_v5 = vadd.f32 %v1936_v33, %v822_v60  ;;  %v926_v7 = vadd.f32 %v925_v63, %v911_v58  ;;  %v1962_v8 = vpop.f32.mrb[16].mxu0 }
 0x106   :  { %2567 = vst [vmem:[#allocation4_spill] sm:$0xff] %v1962_v8  ;;  %v845_v12 = vadd.f32 %v1941_v37, %v844_v1  ;;  %v964_v13 = vadd.f32 %v963_v3, %v949_v0  ;;  %v1967_v14 = vpop.f32.mrb[16].mxu1  ;;  %v1969_v15 = vpop.f32.mrb[17].mxu0  ;;  %v975_v23 = vmul.f32 %v1962_v8, %v1962_v8 }
 0x107   :  { %2568 = vst [vmem:[#allocation5_spill] sm:$0xff] %v1967_v14  ;;  %2569 = vst [vmem:[#allocation6_spill] sm:$0xff] %v1969_v15  ;;  %v824_v18 = vrot.slane %v823_v5, 4  ;;  %v927_v20 = vadd.f32 %v926_v7, %v912_v4  ;;  %v1973_v24 = vpop.f32.mrb[17].mxu1  ;;  %v1975_v28 = vpop.f32.mrb[18].mxu0  ;;  %v1013_v31 = vmul.f32 %v1967_v14, %v1967_v14  ;;  %v973_v34 = vmul.f32 %v1969_v15, %v1969_v15 }
 0x108   :  { %2570 = vst [vmem:[#allocation7_spill] sm:$0xff] %v1973_v24  ;;  %2571 = vst [vmem:[#allocation8_spill] sm:$0xff] %v1975_v28  ;;  %v846_v29 = vrot.slane %v845_v12, 4  ;;  %v965_v30 = vadd.f32 %v964_v13, %v950_v9  ;;  %v1981_v35 = vpop.f32.mrb[18].mxu1  ;;  %v1983_v36 = vpop.f32.mrb[19].mxu0  ;;  %v1011_v44 = vmul.f32 %v1973_v24, %v1973_v24 }
 0x109   :  { %2572 = vst [vmem:[#allocation9_spill] sm:$0xff] %v1981_v35  ;;  %2573 = vst [vmem:[#allocation10_spill] sm:$0xff] %v1983_v36  ;;  %v825_v40 = vadd.f32 %v824_v18, %v823_v5  ;;  %v928_v41 = vrot.slane %v927_v20, 4  ;;  %v853_v46 = vadd.f32 %v1983_v36, %v1969_v15  ;;  %v1989_v47 = vpop.f32.mrb[19].mxu1  ;;  %v974_v60 = vmul.f32 %v1983_v36, %v1983_v36 }
 0x10a   :  { %2574 = vst [vmem:[#allocation11_spill] sm:$0xff] %v1989_v47  ;;  %v847_v57 = vadd.f32 %v846_v29, %v845_v12  ;;  %v966_v58 = vrot.slane %v965_v30, 4  ;;  %v875_v63 = vadd.f32 %v1989_v47, %v1973_v24  ;;  %v1012_v4 = vmul.f32 %v1989_v47, %v1989_v47 }
 0x10b   :  { %v826_v0 = vrot.slane %v825_v40, 2  ;;  %v929_v1 = vadd.f32 %v928_v41, %v927_v20  ;;  %v854_v3 = vadd.f32 %v1962_v8, %v853_v46  ;;  %v989_v9 = vadd.f32 %v974_v60, %v973_v34 }
 0x10c   :  { %v848_v5 = vrot.slane %v847_v57, 2  ;;  %v967_v7 = vadd.f32 %v966_v58, %v965_v30  ;;  %v876_v13 = vadd.f32 %v1967_v14, %v875_v63  ;;  %v1027_v29 = vadd.f32 %v1012_v4, %v1011_v44 }
 0x10d   :  { %v827_v12 = vadd.f32 %v826_v0, %v825_v40  ;;  %v930_v18 = vrot.slane %v929_v1, 2  ;;  %v1999_v15 = vpop.f32.mrb[20].mxu0  ;;  %v855_v36 = vadd.f32 %v1975_v28, %v854_v3  ;;  %v976_v20 = vmul.f32 %v1975_v28, %v1975_v28 }
 0x10e   :  { %v849_v24 = vadd.f32 %v848_v5, %v847_v57  ;;  %v968_v37 = vrot.slane %v967_v7, 2  ;;  %v990_v41 = vadd.f32 %v989_v9, %v975_v23  ;;  %v2004_v46 = vpop.f32.mrb[20].mxu1  ;;  %v2006_v47 = vpop.f32.mrb[21].mxu0  ;;  %v1014_v40 = vmul.f32 %v1981_v35, %v1981_v35 }
 0x10f   :  { %2575 = vst [vmem:[#allocation12_spill] sm:$0xff] %v2004_v46  ;;  %2576 = vst [vmem:[#allocation13_spill] sm:$0xff] %v2006_v47  ;;  %v828_v30 = vrot.slane %v827_v12, 1  ;;  %v931_v34 = vadd.f32 %v930_v18, %v929_v1  ;;  %v1028_v44 = vadd.f32 %v1027_v29, %v1013_v31  ;;  %v2010_v58 = vpop.f32.mrb[21].mxu1  ;;  %v2012_v60 = vpop.f32.mrb[22].mxu0  ;;  %v856_v0 = vadd.f32 %v855_v36, %v2006_v47 }
 0x110   :  { %2577 = vst [vmem:[#allocation14_spill] sm:$0xff] %v2010_v58  ;;  %2578 = vst [vmem:[#allocation15_spill] sm:$0xff] %v2012_v60  ;;  %v850_v57 = vrot.slane %v849_v24, 1  ;;  %v969_v63 = vadd.f32 %v968_v37, %v967_v7  ;;  %v977_v23 = vmul.f32 %v2006_v47, %v2006_v47  ;;  %v2017_v3 = vpop.f32.mrb[22].mxu1  ;;  %v2019_v4 = vpop.f32.mrb[23].mxu0  ;;  %v991_v9 = vadd.f32 %v990_v41, %v976_v20 }
 0x111   :  { %2579 = vst [vmem:[#allocation16_spill] sm:$0xff] %v2017_v3  ;;  %v829_v1 = vadd.f32 %v828_v30, %v827_v12  ;;  %v932_v5 = vrot.slane %v931_v34, 1  ;;  %v877_v31 = vadd.f32 %v1981_v35, %v876_v13  ;;  %v2022_v18 = vpop.f32.mrb[23].mxu1  ;;  %v1015_v37 = vmul.f32 %v2010_v58, %v2010_v58 }
 0x112   :  { %2580 = vst [vmem:[#allocation17_spill] sm:$0xff] %v2022_v18  ;;  %v851_v29 = vadd.f32 %v850_v57, %v849_v24  ;;  %v970_v14 = vrot.slane %v969_v63, 1  ;;  %v1029_v36 = vadd.f32 %v1028_v44, %v1014_v40  ;;  %v992_v28 = vadd.f32 %v991_v9, %v977_v23 }
 0x113   :  { %v933_v7 = vadd.f32 %v932_v5, %v931_v34  ;;  %v878_v47 = vadd.f32 %v877_v31, %v2010_v58  ;;  %v857_v20 = vadd.f32 %v856_v0, %v2019_v4  ;;  %v978_v13 = vmul.f32 %v2019_v4, %v2019_v4 }
 0x114   :  { %v2027_v8 = vadd.f32 %v851_v29, %v829_v1  ;;  %v971_v25 = vadd.f32 %v970_v14, %v969_v63  ;;  %v1030_v12 = vadd.f32 %v1029_v36, %v1015_v37  ;;  %v1016_v41 = vmul.f32 %v2022_v18, %v2022_v18 }
 0x115   :  { %v879_v24 = vadd.f32 %v878_v47, %v2022_v18  ;;  %v2035_v30 = vpop.f32.mrb[24].mxu0  ;;  %v979_v40 = vmul.f32 %v1999_v15, %v1999_v15  ;;  %v1017_v14 = vmul.f32 %v2004_v46, %v2004_v46  ;;  %v858_v63 = vadd.f32 %v1999_v15, %v857_v20 }
 0x116   :  { %2581 = vst [vmem:[#allocation18_spill] sm:$0xff] %v2035_v30  ;;  %v2037_v34 = vadd.f32 %v971_v25, %v933_v7  ;;  %v2043_v44 = vpop.f32.mrb[24].mxu1  ;;  %v2045_v57 = vpop.f32.mrb[25].mxu0  ;;  %v993_v47 = vadd.f32 %v992_v28, %v978_v13  ;;  %v1031_v23 = vadd.f32 %v1030_v12, %v1016_v41  ;;  %v980_v5 = vmul.f32 %v2012_v60, %v2012_v60 }
 0x117   :  { %2582 = vst [vmem:[#allocation19_spill] sm:$0xff] %v2043_v44  ;;  %2583 = vst [vmem:[#allocation20_spill] sm:$0xff] %v2045_v57  ;;  %v880_v0 = vadd.f32 %v2004_v46, %v879_v24  ;;  %v2049_v1 = vpop.f32.mrb[25].mxu1  ;;  %v2051_v25 = vpop.f32.mrb[26].mxu0  ;;  %v1018_v9 = vmul.f32 %v2017_v3, %v2017_v3  ;;  %v981_v31 = vmul.f32 %v2045_v57, %v2045_v57 }
 0x118   :  { %2584 = vst [vmem:[#allocation21_spill] sm:$0xff] %v2049_v1  ;;  %2585 = vst [vmem:[#allocation22_spill] sm:$0xff] %v2051_v25  ;;  %v1019_v29 = vmul.f32 %v2049_v1, %v2049_v1  ;;  %v2061_v28 = vpop.f32.mrb[26].mxu1  ;;  %v2063_v37 = vpop.f32.mrb[27].mxu0  ;;  %v994_v36 = vadd.f32 %v993_v47, %v979_v40  ;;  %v1032_v7 = vadd.f32 %v1031_v23, %v1017_v14 }
 0x119   :  { %2586 = vst [vmem:[#allocation23_spill] sm:$0xff] %v2061_v28  ;;  %2587 = vst [vmem:[#allocation24_spill] sm:$0xff] %v2063_v37  ;;  %v859_v12 = vadd.f32 %v2012_v60, %v858_v63  ;;  %v881_v20 = vadd.f32 %v2017_v3, %v880_v0  ;;  %v2067_v13 = vpop.f32.mrb[27].mxu1  ;;  %v982_v24 = vmul.f32 %v2063_v37, %v2063_v37 }
 0x11a   :  { %2588 = vst [vmem:[#allocation25_spill] sm:$0xff] %v2067_v13  ;;  %v1020_v41 = vmul.f32 %v2067_v13, %v2067_v13  ;;  %v995_v18 = vadd.f32 %v994_v36, %v980_v5  ;;  %v1033_v35 = vadd.f32 %v1032_v7, %v1018_v9  ;;  %v983_v23 = vmul.f32 %v2035_v30, %v2035_v30 }
 0x11b   :  { %v860_v46 = vadd.f32 %v859_v12, %v2045_v57  ;;  %v882_v58 = vadd.f32 %v881_v20, %v2049_v1  ;;  %v1021_v3 = vmul.f32 %v2043_v44, %v2043_v44  ;;  %v1022_v36 = vmul.f32 %v2061_v28, %v2061_v28 }
 0x11c   :  { %v996_v40 = vadd.f32 %v995_v18, %v981_v31  ;;  %v1034_v14 = vadd.f32 %v1033_v35, %v1019_v29  ;;  %v984_v29 = vmul.f32 %v2051_v25, %v2051_v25 }
 0x11d   :  { %v861_v63 = vadd.f32 %v860_v46, %v2063_v37  ;;  %v883_v47 = vadd.f32 %v882_v58, %v2067_v13  ;;  %v2077_v0 = vpop.f32.mrb[28].mxu0 }
 0x11e   :  { %2589 = vst [vmem:[#allocation26_spill] sm:$0xff] %v2077_v0  ;;  %v2083_v60 = vpop.f32.mrb[28].mxu1  ;;  %v2085_v5 = vpop.f32.mrb[29].mxu0  ;;  %v997_v18 = vadd.f32 %v996_v40, %v982_v24  ;;  %v1035_v46 = vadd.f32 %v1034_v14, %v1020_v41 }
 0x11f   :  { %2590 = vst [vmem:[#allocation27_spill] sm:$0xff] %v2083_v60  ;;  %v862_v9 = vadd.f32 %v2035_v30, %v861_v63  ;;  %v884_v35 = vadd.f32 %v2043_v44, %v883_v47  ;;  %v2089_v31 = vpop.f32.mrb[29].mxu1  ;;  %v2091_v58 = vpop.f32.mrb[30].mxu0  ;;  %v985_v7 = vmul.f32 %v2085_v5, %v2085_v5 }
 0x120   :  { %2591 = vst [vmem:[#allocation28_spill] sm:$0xff] %v2089_v31  ;;  %v1023_v12 = vmul.f32 %v2089_v31, %v2089_v31  ;;  %v2101_v20 = vpop.f32.mrb[30].mxu1  ;;  %v2103_v24 = vpop.f32.mrb[31].mxu0  ;;  %v998_v41 = vadd.f32 %v997_v18, %v983_v23  ;;  %v1036_v40 = vadd.f32 %v1035_v46, %v1021_v3  ;;  %v1025_v46 = vmul.f32 %v2083_v60, %v2083_v60 }
 0x121   :  { %2592 = vst [vmem:[#allocation29_spill] sm:$0xff] %v2103_v24  ;;  %v863_v14 = vadd.f32 %v2051_v25, %v862_v9  ;;  %v885_v63 = vadd.f32 %v2061_v28, %v884_v35  ;;  %v2107_v47 = vpop.f32.mrb[31].mxu1  ;;  %v986_v44 = vmul.f32 %v2103_v24, %v2103_v24  ;;  %v987_v35 = vmul.f32 %v2077_v0, %v2077_v0 }
 0x122   :  { %2593 = vst [vmem:[#allocation30_spill] sm:$0xff] %v2107_v47  ;;  %v1024_v13 = vmul.f32 %v2107_v47, %v2107_v47  ;;  %v999_v30 = vadd.f32 %v998_v41, %v984_v29  ;;  %v1037_v57 = vadd.f32 %v1036_v40, %v1022_v36 }
 0x123   :  { %v864_v1 = vadd.f32 %v863_v14, %v2085_v5  ;;  %v886_v37 = vadd.f32 %v885_v63, %v2089_v31 }
 0x124   :  { %v1000_v23 = vadd.f32 %v999_v30, %v985_v7  ;;  %v1038_v3 = vadd.f32 %v1037_v57, %v1023_v12  ;;  %v988_v30 = vmul.f32 %v2091_v58, %v2091_v58  ;;  %v1026_v57 = vmul.f32 %v2101_v20, %v2101_v20 }
 0x125   :  { %v865_v9 = vadd.f32 %v864_v1, %v2103_v24  ;;  %v887_v18 = vadd.f32 %v886_v37, %v2107_v47 }
 0x126   :  { %v1001_v25 = vadd.f32 %v1000_v23, %v986_v44  ;;  %v1039_v41 = vadd.f32 %v1038_v3, %v1024_v13 }
 0x127   :  { %v866_v28 = vadd.f32 %v2077_v0, %v865_v9  ;;  %v888_v29 = vadd.f32 %v2083_v60, %v887_v18 }
 0x128   :  { %v1002_v37 = vadd.f32 %v1001_v25, %v987_v35  ;;  %v1040_v7 = vadd.f32 %v1039_v41, %v1025_v46 }
 0x129   :  { %v867_v1 = vadd.f32 %v2091_v58, %v866_v28  ;;  %v889_v36 = vadd.f32 %v2101_v20, %v888_v29 }
 0x12a   :  { %v1003_v40 = vadd.f32 %v1002_v37, %v988_v30  ;;  %v1041_v63 = vadd.f32 %v1040_v7, %v1026_v57 }
 0x12b   :  { %v868_v12 = vrot.slane %v867_v1, 4  ;;  %v890_v14 = vrot.slane %v889_v36, 4 }
 0x12c   :  { %v1004_v23 = vrot.slane %v1003_v40, 4  ;;  %v1042_v13 = vrot.slane %v1041_v63, 4 }
 0x12d   :  { %v869_v44 = vadd.f32 %v868_v12, %v867_v1  ;;  %v891_v9 = vadd.f32 %v890_v14, %v889_v36 }
 0x12e   :  { %v1005_v18 = vadd.f32 %v1004_v23, %v1003_v40  ;;  %v1043_v47 = vadd.f32 %v1042_v13, %v1041_v63 }
 0x12f   :  { %v870_v3 = vrot.slane %v869_v44, 2  ;;  %v892_v60 = vrot.slane %v891_v9, 2 }
 0x130   :  { %v1006_v0 = vrot.slane %v1005_v18, 2  ;;  %v1044_v28 = vrot.slane %v1043_v47, 2 }
 0x131   :  { %v871_v31 = vadd.f32 %v870_v3, %v869_v44  ;;  %v893_v24 = vadd.f32 %v892_v60, %v891_v9 }
 0x132   :  { %v1007_v35 = vadd.f32 %v1006_v0, %v1005_v18  ;;  %v1045_v46 = vadd.f32 %v1044_v28, %v1043_v47  ;;  %v1062_v47 = vlaneseq }
 0x133   :  { %v872_v25 = vrot.slane %v871_v31, 1  ;;  %v894_v29 = vrot.slane %v893_v24, 1 }
 0x134   :  { %v1008_v30 = vrot.slane %v1007_v35, 1  ;;  %v1046_v37 = vrot.slane %v1045_v46, 1 }
 0x135   :  { %v873_v41 = vadd.f32 %v872_v25, %v871_v31  ;;  %v895_v36 = vadd.f32 %v894_v29, %v893_v24  ;;  %v1063_v31 = vshrl.u32 %v1062_v47, 7 }
 0x136   :  { %v1009_v1 = vadd.f32 %v1008_v30, %v1007_v35  ;;  %v1047_v40 = vadd.f32 %v1046_v37, %v1045_v46 }
 0x137   :  { %v874_v57 = vadd.f32 %v873_v41, %v2027_v8  ;;  %v1057_v8 = vld [vmem:[%s2533_s8] sm:$0x1]  ;;  %v1064_v13 = vsub.s32 0, %v1063_v31 }
 0x138   :  { %v1010_v7 = vadd.f32 %v1009_v1, %v2037_v34  ;;  %v1059_v34 = vld [vmem:[%s2534_s9] sm:$0x1] }
 0x139   :  { %v896_v12 = vadd.f32 %v895_v36, %v874_v57 }
 0x13a   :  { %v1048_v14 = vadd.f32 %v1047_v40, %v1010_v7 }
 0x13b   :  { %v1050_v63 = vmul.f32 0.001953125, %v896_v12 }
 0x13c   :  { %v1051_v44 = vmul.f32 0.001953125, %v1048_v14 }
 0x13d   :  { %v1052_v60 = vmul.f32 %v1050_v63, %v1050_v63 }
 0x13f   :  { %v1053_v23 = vsub.f32 %v1051_v44, %v1052_v60 }
 0x141   :  { %v1054_v9 = vmax.f32 %v1053_v23, 0.0 }
 0x143   :  { %v1055_v0 = vadd.f32 1e-05, %v1054_v9 }
 0x145   :  { %1476 = vrsqrt.f32 %v1055_v0 }
 0x14f   :  { %v1477_v24 = vpop.eup %1476 }
 0x150   :  { %v1058_v3 = vmul.f32 %v1477_v24, %v1057_v8  ;;  %v2594_v8 = vld [vmem:[#allocation2_spill] sm:$0xff]  ;;  %v2595_v24 = vld [vmem:[#allocation3_spill] sm:$0xff] }
 0x152   :  { %v1060_v18 = vmul.f32 %v1058_v3, %v1050_v63  ;;  %v2137_v28 = vrot.slane %v1058_v3, %v1064_v13 }
 0x154   :  { %v1061_v25 = vsub.f32 %v1059_v34, %v1060_v18  ;;  %v1066_v35 = vmul.f32 %v2137_v28, %v1809_v50  ;;  %v1067_v29 = vmul.f32 %v2137_v28, %v1819_v55  ;;  %v1068_v46 = vmul.f32 %v1805_v48, %v2137_v28 }
 0x155   :  { %v1069_v41 = vmul.f32 %v1813_v52, %v2137_v28  ;;  %v1070_v30 = vmul.f32 %v2137_v28, %v1848_v11  ;;  %v1071_v37 = vmul.f32 %v2137_v28, %v1863_v22  ;;  %v1072_v57 = vmul.f32 %v1841_v6, %v2137_v28 }
 0x156   :  { %v1073_v50 = vmul.f32 %v1856_v17, %v2137_v28  ;;  %v1074_v55 = vmul.f32 %v2137_v28, %v1888_v43  ;;  %v1075_v48 = vmul.f32 %v2137_v28, %v1903_v62  ;;  %v1076_v52 = vmul.f32 %v1881_v38, %v2137_v28 }
 0x157   :  { %v1077_v11 = vmul.f32 %v1896_v56, %v2137_v28  ;;  %v1078_v22 = vmul.f32 %v2137_v28, %v1928_v27  ;;  %v1079_v6 = vmul.f32 %v2137_v28, %v1943_v39  ;;  %v1080_v17 = vmul.f32 %v1921_v19, %v2137_v28 }
 0x158   :  { %v1081_v43 = vmul.f32 %v1936_v33, %v2137_v28  ;;  %v2171_v1 = vrot.slane %v1061_v25, %v1064_v13  ;;  %v1120_v38 = vmul.f32 %v2137_v28, %v1811_v51  ;;  %v1121_v56 = vmul.f32 %v2137_v28, %v1827_v59 }
 0x159   :  { %v1122_v62 = vmul.f32 %v1807_v49, %v2137_v28  ;;  %v1123_v27 = vmul.f32 %v1817_v54, %v2137_v28  ;;  %v1124_v19 = vmul.f32 %v2137_v28, %v1854_v16  ;;  %v1125_v33 = vmul.f32 %v2137_v28, %v1868_v26 }
 0x15a   :  { %v1088_v39 = vadd.f32 %v2171_v1, %v1066_v35  ;;  %v1089_v36 = vadd.f32 %v2171_v1, %v1067_v29  ;;  %v1090_v51 = vadd.f32 %v2171_v1, %v1068_v46  ;;  %v1091_v59 = vadd.f32 %v2171_v1, %v1069_v41 }
 0x15b   :  { %v1092_v7 = vadd.f32 %v2171_v1, %v1070_v30  ;;  %v1093_v49 = vadd.f32 %v2171_v1, %v1071_v37  ;;  %v1094_v54 = vadd.f32 %v2171_v1, %v1072_v57  ;;  %v1095_v12 = vadd.f32 %v2171_v1, %v1073_v50 }
 0x15c   :  { %v1096_v16 = vadd.f32 %v2171_v1, %v1074_v55  ;;  %v1097_v26 = vadd.f32 %v2171_v1, %v1075_v48  ;;  %v1098_v40 = vadd.f32 %v2171_v1, %v1076_v52  ;;  %v1099_v14 = vadd.f32 %v2171_v1, %v1077_v11  ;;  %1104 = vst [vmem:[%s2535_s10] sm:$0xff] %v1088_v39  ;;  %v2596_v48 = vld [vmem:[#allocation6_spill] sm:$0xff] }
 0x15d   :  { %1105 = vst [vmem:[%s2535_s10 + $0x8] sm:$0xff] %v1089_v36  ;;  %1106 = vst [vmem:[%s2535_s10 + $0x10] sm:$0xff] %v1090_v51  ;;  %v1100_v63 = vadd.f32 %v2171_v1, %v1078_v22  ;;  %v1101_v44 = vadd.f32 %v2171_v1, %v1079_v6  ;;  %v1102_v60 = vadd.f32 %v2171_v1, %v1080_v17  ;;  %v2597_v11 = vld [vmem:[#allocation10_spill] sm:$0xff]  ;;  %v2598_v6 = vld [vmem:[#allocation4_spill] sm:$0xff] }
 0x15e   :  { %1107 = vst [vmem:[%s2535_s10 + $0x18] sm:$0xff] %v1091_v59  ;;  %v1103_v23 = vadd.f32 %v2171_v1, %v1081_v43  ;;  %1108 = vst [vmem:[%s2535_s10 + $0x20] sm:$0xff] %v1092_v7  ;;  %v1126_v9 = vmul.f32 %v1846_v10, %v2137_v28  ;;  %v1127_v0 = vmul.f32 %v1861_v21, %v2137_v28  ;;  %v2599_v43 = vld [vmem:[#allocation8_spill] sm:$0xff]  ;;  %v2604_v7 = vld [vmem:[#allocation18_spill] sm:$0xff] }
 0x15f   :  { %1109 = vst [vmem:[%s2535_s10 + $0x28] sm:$0xff] %v1093_v49  ;;  %1110 = vst [vmem:[%s2535_s10 + $0x30] sm:$0xff] %v1094_v54  ;;  %v1128_v47 = vmul.f32 %v2137_v28, %v1894_v53  ;;  %v1129_v31 = vmul.f32 %v2137_v28, %v1908_v2  ;;  %v1130_v10 = vmul.f32 %v1886_v42, %v2137_v28  ;;  %v2602_v36 = vld [vmem:[#allocation20_spill] sm:$0xff]  ;;  %v2605_v54 = vld [vmem:[#allocation22_spill] sm:$0xff] }
 0x160   :  { %1111 = vst [vmem:[%s2535_s10 + $0x38] sm:$0xff] %v1095_v12  ;;  %1112 = vst [vmem:[%s2535_s10 + $0x40] sm:$0xff] %v1096_v16  ;;  %v1131_v21 = vmul.f32 %v1901_v61, %v2137_v28  ;;  %v1132_v53 = vmul.f32 %v2137_v28, %v1934_v32  ;;  %v1133_v2 = vmul.f32 %v2137_v28, %v1948_v45  ;;  %v2603_v59 = vld [vmem:[#allocation24_spill] sm:$0xff] }
 0x161   :  { %1113 = vst [vmem:[%s2535_s10 + $0x48] sm:$0xff] %v1097_v26  ;;  %1114 = vst [vmem:[%s2535_s10 + $0x50] sm:$0xff] %v1098_v40  ;;  %v1134_v13 = vmul.f32 %v2594_v8, %v2137_v28  ;;  %v1135_v3 = vmul.f32 %v2595_v24, %v2137_v28  ;;  %v1136_v34 = vadd.f32 %v1120_v38, %v2171_v1  ;;  %v2606_v26 = vld [vmem:[#allocation29_spill] sm:$0xff]  ;;  %v2607_v40 = vld [vmem:[#allocation26_spill] sm:$0xff] }
 0x162   :  { %1115 = vst [vmem:[%s2535_s10 + $0x58] sm:$0xff] %v1099_v14  ;;  %1116 = vst [vmem:[%s2535_s10 + $0x60] sm:$0xff] %v1100_v63  ;;  %v1137_v18 = vadd.f32 %v1121_v56, %v2171_v1  ;;  %v1138_v42 = vadd.f32 %v1122_v62, %v2171_v1  ;;  %v1139_v61 = vadd.f32 %v1123_v27, %v2171_v1  ;;  %v2600_v56 = vld [vmem:[#allocation13_spill] sm:$0xff] }
 0x163   :  { %1117 = vst [vmem:[%s2535_s10 + $0x68] sm:$0xff] %v1101_v44  ;;  %1118 = vst [vmem:[%s2535_s10 + $0x70] sm:$0xff] %v1102_v60  ;;  %v1140_v25 = vadd.f32 %v1124_v19, %v2171_v1  ;;  %v1141_v32 = vadd.f32 %v1125_v33, %v2171_v1  ;;  %v1142_v45 = vadd.f32 %v1126_v9, %v2171_v1  ;;  %v2601_v33 = vld [vmem:[#allocation15_spill] sm:$0xff] }
 0x164   :  { %1119 = vst [vmem:[%s2535_s10 + $0x78] sm:$0xff] %v1103_v23  ;;  %v1143_v35 = vadd.f32 %v1127_v0, %v2171_v1  ;;  %v1144_v29 = vadd.f32 %v1128_v47, %v2171_v1  ;;  %v1145_v46 = vadd.f32 %v1129_v31, %v2171_v1  ;;  %1152 = vst [vmem:[%s2535_s10 + $0x80] sm:$0xff] %v1136_v34 }
 0x165   :  { %1153 = vst [vmem:[%s2535_s10 + $0x88] sm:$0xff] %v1137_v18  ;;  %v1146_v41 = vadd.f32 %v1130_v10, %v2171_v1  ;;  %v1147_v30 = vadd.f32 %v1131_v21, %v2171_v1  ;;  %v1148_v37 = vadd.f32 %v1132_v53, %v2171_v1  ;;  %v1149_v57 = vadd.f32 %v1133_v2, %v2171_v1  ;;  %v2609_v18 = vld [vmem:[#allocation11_spill] sm:$0xff] }
 0x166   :  { %1154 = vst [vmem:[%s2535_s10 + $0x90] sm:$0xff] %v1138_v42  ;;  %1155 = vst [vmem:[%s2535_s10 + $0x98] sm:$0xff] %v1139_v61  ;;  %v1150_v50 = vadd.f32 %v1134_v13, %v2171_v1  ;;  %v1151_v55 = vadd.f32 %v1135_v3, %v2171_v1  ;;  %v1168_v52 = vmul.f32 %v2137_v28, %v2596_v48  ;;  %v2608_v3 = vld [vmem:[#allocation7_spill] sm:$0xff]  ;;  %v2610_v61 = vld [vmem:[#allocation5_spill] sm:$0xff] }
 0x167   :  { %1156 = vst [vmem:[%s2535_s10 + $0xa0] sm:$0xff] %v1140_v25  ;;  %1157 = vst [vmem:[%s2535_s10 + $0xa8] sm:$0xff] %v1141_v32  ;;  %v1169_v22 = vmul.f32 %v2137_v28, %v2597_v11  ;;  %v1170_v17 = vmul.f32 %v2598_v6, %v2137_v28  ;;  %v1171_v38 = vmul.f32 %v2599_v43, %v2137_v28  ;;  %v2611_v32 = vld [vmem:[#allocation9_spill] sm:$0xff] }
 0x168   :  { %1158 = vst [vmem:[%s2535_s10 + $0xb0] sm:$0xff] %v1142_v45  ;;  %1159 = vst [vmem:[%s2535_s10 + $0xb8] sm:$0xff] %v1143_v35  ;;  %v1172_v62 = vmul.f32 %v2137_v28, %v2600_v56  ;;  %v1173_v27 = vmul.f32 %v2137_v28, %v2019_v4  ;;  %v1174_v19 = vmul.f32 %v1999_v15, %v2137_v28  ;;  %v2612_v35 = vld [vmem:[#allocation14_spill] sm:$0xff] }
 0x169   :  { %1160 = vst [vmem:[%s2535_s10 + $0xc0] sm:$0xff] %v1144_v29  ;;  %1161 = vst [vmem:[%s2535_s10 + $0xc8] sm:$0xff] %v1145_v46  ;;  %v1175_v39 = vmul.f32 %v2601_v33, %v2137_v28  ;;  %v1176_v51 = vmul.f32 %v2137_v28, %v2602_v36  ;;  %v1177_v4 = vmul.f32 %v2137_v28, %v2603_v59  ;;  %v2613_v46 = vld [vmem:[#allocation17_spill] sm:$0xff] }
 0x16a   :  { %1162 = vst [vmem:[%s2535_s10 + $0xd0] sm:$0xff] %v1146_v41  ;;  %1163 = vst [vmem:[%s2535_s10 + $0xd8] sm:$0xff] %v1147_v30  ;;  %v1178_v49 = vmul.f32 %v2604_v7, %v2137_v28  ;;  %v1179_v12 = vmul.f32 %v2605_v54, %v2137_v28  ;;  %v1180_v16 = vmul.f32 %v2137_v28, %v2085_v5  ;;  %v2614_v30 = vld [vmem:[#allocation12_spill] sm:$0xff] }
 0x16b   :  { %1164 = vst [vmem:[%s2535_s10 + $0xe0] sm:$0xff] %v1148_v37  ;;  %1165 = vst [vmem:[%s2535_s10 + $0xe8] sm:$0xff] %v1149_v57  ;;  %v1181_v15 = vmul.f32 %v2137_v28, %v2606_v26  ;;  %v1182_v14 = vmul.f32 %v2607_v40, %v2137_v28  ;;  %v1183_v63 = vmul.f32 %v2091_v58, %v2137_v28  ;;  %v2615_v57 = vld [vmem:[#allocation16_spill] sm:$0xff] }
 0x16c   :  { %1166 = vst [vmem:[%s2535_s10 + $0xf0] sm:$0xff] %v1150_v50  ;;  %1167 = vst [vmem:[%s2535_s10 + $0xf8] sm:$0xff] %v1151_v55  ;;  %v1184_v44 = vadd.f32 %v1168_v52, %v2171_v1  ;;  %v1185_v60 = vadd.f32 %v1169_v22, %v2171_v1  ;;  %v1186_v23 = vadd.f32 %v1170_v17, %v2171_v1  ;;  %v2616_v55 = vld [vmem:[#allocation21_spill] sm:$0xff]  ;;  %v2618_v22 = vld [vmem:[#allocation19_spill] sm:$0xff] }
 0x16d   :  { %v1187_v9 = vadd.f32 %v1171_v38, %v2171_v1  ;;  %v1188_v0 = vadd.f32 %v1172_v62, %v2171_v1  ;;  %v1189_v5 = vadd.f32 %v1173_v27, %v2171_v1  ;;  %v1190_v47 = vadd.f32 %v1174_v19, %v2171_v1  ;;  %v2617_v52 = vld [vmem:[#allocation25_spill] sm:$0xff]  ;;  %v2619_v17 = vld [vmem:[#allocation23_spill] sm:$0xff]  ;;  %v2620_v38 = vld [vmem:[#allocation28_spill] sm:$0xff] }
 0x16e   :  { %v1191_v31 = vadd.f32 %v1175_v39, %v2171_v1  ;;  %v1192_v10 = vadd.f32 %v1176_v51, %v2171_v1  ;;  %v1193_v58 = vadd.f32 %v1177_v4, %v2171_v1  ;;  %1200 = vst [vmem:[%s2535_s10 + $0x100] sm:$0xff] %v1184_v44  ;;  %1201 = vst [vmem:[%s2535_s10 + $0x108] sm:$0xff] %v1185_v60  ;;  %v2621_v62 = vld [vmem:[#allocation30_spill] sm:$0xff]  ;;  %v2622_v19 = vld [vmem:[#allocation27_spill] sm:$0xff] }
 0x16f   :  { %v1194_v21 = vadd.f32 %v1178_v49, %v2171_v1  ;;  %v1195_v53 = vadd.f32 %v1179_v12, %v2171_v1  ;;  %v1196_v2 = vadd.f32 %v1180_v16, %v2171_v1  ;;  %v1197_v8 = vadd.f32 %v1181_v15, %v2171_v1  ;;  %1202 = vst [vmem:[%s2535_s10 + $0x110] sm:$0xff] %v1186_v23 }
 0x170   :  { %1203 = vst [vmem:[%s2535_s10 + $0x118] sm:$0xff] %v1187_v9  ;;  %1204 = vst [vmem:[%s2535_s10 + $0x120] sm:$0xff] %v1188_v0  ;;  %v1198_v13 = vadd.f32 %v1182_v14, %v2171_v1  ;;  %v1199_v24 = vadd.f32 %v1183_v63, %v2171_v1  ;;  %v1216_v34 = vmul.f32 %v2137_v28, %v2608_v3 }
 0x171   :  { %1205 = vst [vmem:[%s2535_s10 + $0x128] sm:$0xff] %v1189_v5  ;;  %1206 = vst [vmem:[%s2535_s10 + $0x130] sm:$0xff] %v1190_v47  ;;  %v1217_v42 = vmul.f32 %v2137_v28, %v2609_v18  ;;  %v1218_v25 = vmul.f32 %v2610_v61, %v2137_v28  ;;  %v1219_v45 = vmul.f32 %v2611_v32, %v2137_v28 }
 0x172   :  { %1207 = vst [vmem:[%s2535_s10 + $0x138] sm:$0xff] %v1191_v31  ;;  %1208 = vst [vmem:[%s2535_s10 + $0x140] sm:$0xff] %v1192_v10  ;;  %v1220_v29 = vmul.f32 %v2137_v28, %v2612_v35  ;;  %v1221_v41 = vmul.f32 %v2137_v28, %v2613_v46  ;;  %v1222_v37 = vmul.f32 %v2614_v30, %v2137_v28 }
 0x173   :  { %1209 = vst [vmem:[%s2535_s10 + $0x148] sm:$0xff] %v1193_v58  ;;  %1210 = vst [vmem:[%s2535_s10 + $0x150] sm:$0xff] %v1194_v21  ;;  %v1223_v50 = vmul.f32 %v2615_v57, %v2137_v28  ;;  %v1224_v48 = vmul.f32 %v2137_v28, %v2616_v55  ;;  %v1225_v11 = vmul.f32 %v2137_v28, %v2617_v52 }
 0x174   :  { %1211 = vst [vmem:[%s2535_s10 + $0x158] sm:$0xff] %v1195_v53  ;;  %1212 = vst [vmem:[%s2535_s10 + $0x160] sm:$0xff] %v1196_v2  ;;  %v1226_v6 = vmul.f32 %v2618_v22, %v2137_v28  ;;  %v1227_v43 = vmul.f32 %v2619_v17, %v2137_v28  ;;  %v1228_v56 = vmul.f32 %v2137_v28, %v2620_v38 }
 0x175   :  { %1213 = vst [vmem:[%s2535_s10 + $0x168] sm:$0xff] %v1197_v8  ;;  %1214 = vst [vmem:[%s2535_s10 + $0x170] sm:$0xff] %v1198_v13  ;;  %v1229_v27 = vmul.f32 %v2137_v28, %v2621_v62  ;;  %v1230_v33 = vmul.f32 %v2622_v19, %v2137_v28  ;;  %v1231_v39 = vmul.f32 %v2101_v20, %v2137_v28 }
 0x176   :  { %1215 = vst [vmem:[%s2535_s10 + $0x178] sm:$0xff] %v1199_v24  ;;  %v1232_v36 = vadd.f32 %v1216_v34, %v2171_v1  ;;  %v1233_v51 = vadd.f32 %v1217_v42, %v2171_v1  ;;  %v1234_v59 = vadd.f32 %v1218_v25, %v2171_v1  ;;  %v1235_v4 = vadd.f32 %v1219_v45, %v2171_v1 }
 0x177   :  { %v1236_v7 = vadd.f32 %v1220_v29, %v2171_v1  ;;  %v1237_v49 = vadd.f32 %v1221_v41, %v2171_v1  ;;  %v1238_v54 = vadd.f32 %v1222_v37, %v2171_v1  ;;  %v1239_v12 = vadd.f32 %v1223_v50, %v2171_v1 }
 0x178   :  { %v1240_v16 = vadd.f32 %v1224_v48, %v2171_v1  ;;  %v1241_v20 = vadd.f32 %v1225_v11, %v2171_v1  ;;  %1248 = vst [vmem:[%s2535_s10 + $0x180] sm:$0xff] %v1232_v36  ;;  %1249 = vst [vmem:[%s2535_s10 + $0x188] sm:$0xff] %v1233_v51  ;;  %v1242_v28 = vadd.f32 %v1226_v6, %v2171_v1 }
 0x179   :  { %v1243_v26 = vadd.f32 %v1227_v43, %v2171_v1  ;;  %v1244_v15 = vadd.f32 %v1228_v56, %v2171_v1  ;;  %v1245_v40 = vadd.f32 %v1229_v27, %v2171_v1  ;;  %1250 = vst [vmem:[%s2535_s10 + $0x190] sm:$0xff] %v1234_v59  ;;  %1251 = vst [vmem:[%s2535_s10 + $0x198] sm:$0xff] %v1235_v4 }
 0x17a   :  { %1252 = vst [vmem:[%s2535_s10 + $0x1a0] sm:$0xff] %v1236_v7  ;;  %1253 = vst [vmem:[%s2535_s10 + $0x1a8] sm:$0xff] %v1237_v49  ;;  %v1246_v14 = vadd.f32 %v1230_v33, %v2171_v1  ;;  %v1247_v63 = vadd.f32 %v1231_v39, %v2171_v1 }
 0x17b   :  { %1254 = vst [vmem:[%s2535_s10 + $0x1b0] sm:$0xff] %v1238_v54  ;;  %1255 = vst [vmem:[%s2535_s10 + $0x1b8] sm:$0xff] %v1239_v12 }
 0x17c   :  { %1256 = vst [vmem:[%s2535_s10 + $0x1c0] sm:$0xff] %v1240_v16  ;;  %1257 = vst [vmem:[%s2535_s10 + $0x1c8] sm:$0xff] %v1241_v20 }
 0x17d   :  { %1258 = vst [vmem:[%s2535_s10 + $0x1d0] sm:$0xff] %v1242_v28  ;;  %1259 = vst [vmem:[%s2535_s10 + $0x1d8] sm:$0xff] %v1243_v26 }
 0x17e   :  { %1260 = vst [vmem:[%s2535_s10 + $0x1e0] sm:$0xff] %v1244_v15  ;;  %1261 = vst [vmem:[%s2535_s10 + $0x1e8] sm:$0xff] %v1245_v40 }
 0x17f   :  { %1262 = vst [vmem:[%s2535_s10 + $0x1f0] sm:$0xff] %v1246_v14  ;;  %1263 = vst [vmem:[%s2535_s10 + $0x1f8] sm:$0xff] %v1247_v63 }

</bundles_post_ra>
